<compile_context>
chip_gen: v7x
topology: tpu7x:2x2x1
jax: 0.10.0
libtpu: 0.0.40
codegen_flags: <defaults>
</compile_context>

<pallas_src>
import jax
import jax.numpy as jnp
from jax.experimental import pallas as pl
from jax.experimental.pallas import tpu as pltpu

LATENT_DIM = 32
CHANNELS = 1
IMG_SIZE = 16
IMG_FLAT = CHANNELS * IMG_SIZE * IMG_SIZE   # prod(img_shape)
BN_EPS = 0.8                                # nn.BatchNorm1d(out_feat, 0.8) -> eps=0.8
LRELU_SLOPE = 0.2

HIDDEN = (128, 256, 512, 1024)
DIMS = (LATENT_DIM,) + HIDDEN + (IMG_FLAT,)
MAX_F = max(DIMS[1:])                       # 1024 (packed-vector slab width)
VEC_ROWS = 16                               # 11 used rows, padded to a multiple of 8

# Row layout of the packed (VEC_ROWS, MAX_F) f32 slab:
#   0: b1 | 1: b2  2: g2  3: bt2 | 4: b3  5: g3  6: bt3 |
#   7: b4  8: g4  9: bt4 | 10: b5
ROW_B1, ROW_B2, ROW_G2, ROW_BT2 = 0, 1, 2, 3
ROW_B3, ROW_G3, ROW_BT3 = 4, 5, 6
ROW_B4, ROW_G4, ROW_BT4 = 7, 8, 9
ROW_B5 = 10


def _leaky_relu(x):
    return jnp.where(x > 0, x, LRELU_SLOPE * x)


def _batchnorm(x, gamma, beta):
    # Training-mode BatchNorm1d: per-feature batch mean / biased variance,
    # fused into a single reduce pass + one scale/shift apply.
    mean = jnp.mean(x, axis=0, keepdims=True)
    mean_sq = jnp.mean(x * x, axis=0, keepdims=True)
    var = jnp.maximum(mean_sq - mean * mean, 0.0)
    scale = gamma * jax.lax.rsqrt(var + BN_EPS)
    shift = beta - mean * scale
    return x * scale + shift


def generator_kernel(z_ref, w1_ref, w2_ref, w3_ref, w4_hbm, w5_hbm, vec_ref,
                     out_ref, w4_vmem, w5_vmem, dma_sem):
    # Kick off the two big weight DMAs immediately so they overlap with the
    # layer 1-3 compute below (w4 ~1 MiB, w5 ~0.5 MiB in bf16).
    w4_copy = pltpu.make_async_copy(w4_hbm, w4_vmem, dma_sem.at[0])
    w5_copy = pltpu.make_async_copy(w5_hbm, w5_vmem, dma_sem.at[1])
    w4_copy.start()
    w5_copy.start()

    def row(r, width):
        # Static slice of the packed bias/BN slab -> (1, width) f32.
        return vec_ref[r:r + 1, 0:width]

    def dot(a_f32, w_bf16):
        # bf16 MXU matmul with f32 accumulation; activations stay f32 outside.
        return jnp.dot(a_f32.astype(jnp.bfloat16), w_bf16,
                       preferred_element_type=jnp.float32)

    x = z_ref[...]

    # block(latent_dim, 128, normalize=False)
    h = _leaky_relu(dot(x, w1_ref[...]) + row(ROW_B1, 128))

    # block(128, 256)
    h = dot(h, w2_ref[...]) + row(ROW_B2, 256)
    h = _leaky_relu(_batchnorm(h, row(ROW_G2, 256), row(ROW_BT2, 256)))

    # block(256, 512)
    h = dot(h, w3_ref[...]) + row(ROW_B3, 512)
    h = _leaky_relu(_batchnorm(h, row(ROW_G3, 512), row(ROW_BT3, 512)))

    # block(512, 1024)  -- w4 consumed from the manually-DMA'd VMEM scratch.
    w4_copy.wait()
    h = dot(h, w4_vmem[...]) + row(ROW_B4, 1024)
    h = _leaky_relu(_batchnorm(h, row(ROW_G4, 1024), row(ROW_BT4, 1024)))

    # Linear(1024, C*H*W) + Tanh
    w5_copy.wait()
    out = dot(h, w5_vmem[...]) + row(ROW_B5, IMG_FLAT)
    out_ref[...] = jnp.tanh(out)


def init_params(key):
    """Deterministic PyTorch-style init: U(-1/sqrt(fan_in), 1/sqrt(fan_in)).

    Returns (weights, vec):
      weights : list of 5 bf16 (fan_in, fan_out) matrices
      vec     : one packed (VEC_ROWS, MAX_F) f32 slab holding all biases and
                BatchNorm gamma/beta rows (zero-padded on lanes and sublanes).
    """
    weights = []
    rows = []
    for li in range(len(DIMS) - 1):
        fan_in, fan_out = DIMS[li], DIMS[li + 1]
        key, kw, kb = jax.random.split(key, 3)
        bound = 1.0 / (fan_in ** 0.5)
        w = jax.random.uniform(kw, (fan_in, fan_out), jnp.float32, -bound, bound)
        b = jax.random.uniform(kb, (fan_out,), jnp.float32, -bound, bound)
        weights.append(w.astype(jnp.bfloat16))
        rows.append(jnp.pad(b, (0, MAX_F - fan_out)))
        # BatchNorm affine params (gamma=1, beta=0) for layers 2..4 only
        if 1 <= li <= 3:
            rows.append(jnp.pad(jnp.ones((fan_out,), jnp.float32),
                                (0, MAX_F - fan_out)))
            rows.append(jnp.pad(jnp.zeros((fan_out,), jnp.float32),
                                (0, MAX_F - fan_out)))
    vec = jnp.stack(rows, axis=0)                              # (11, MAX_F)
    vec = jnp.pad(vec, ((0, VEC_ROWS - vec.shape[0]), (0, 0)))  # (16, MAX_F)
    return weights, vec


def generator_forward(z, weights, vec):
    B = z.shape[0]
    w1, w2, w3, w4, w5 = weights

    # Small inputs go through the normal BlockSpec prologue; the two big
    # weights stay in HBM (pl.ANY) and are overlapped manually in-kernel.
    in_specs = [
        pl.BlockSpec(z.shape, lambda i: (0, 0)),
        pl.BlockSpec(w1.shape, lambda i: (0, 0)),
        pl.BlockSpec(w2.shape, lambda i: (0, 0)),
        pl.BlockSpec(w3.shape, lambda i: (0, 0)),
        pl.BlockSpec(memory_space=pl.ANY),      # w4: manual async copy
        pl.BlockSpec(memory_space=pl.ANY),      # w5: manual async copy
        pl.BlockSpec(vec.shape, lambda i: (0, 0)),
    ]

    flops = 2 * B * sum(a * b for a, b in zip(DIMS[:-1], DIMS[1:]))
    transcendentals = B * IMG_FLAT + sum(HIDDEN[1:])        # tanh + rsqrt
    bytes_accessed = (sum(int(w.size) * w.dtype.itemsize for w in weights)
                      + int(vec.size) * 4
                      + int(z.size) * 4
                      + B * IMG_FLAT * 4)

    out_flat = pl.pallas_call(
        generator_kernel,
        out_shape=jax.ShapeDtypeStruct((B, IMG_FLAT), jnp.float32),
        grid=(1,),
        in_specs=in_specs,
        out_specs=pl.BlockSpec((B, IMG_FLAT), lambda i: (0, 0)),
        scratch_shapes=[
            pltpu.VMEM(w4.shape, jnp.bfloat16),   # w4 landing buffer
            pltpu.VMEM(w5.shape, jnp.bfloat16),   # w5 landing buffer
            pltpu.SemaphoreType.DMA((2,)),
        ],
        compiler_params=pltpu.CompilerParams(
            dimension_semantics=("arbitrary",)),
        cost_estimate=pl.CostEstimate(flops=flops,
                                      transcendentals=transcendentals,
                                      bytes_accessed=bytes_accessed),
    )(z, w1, w2, w3, w4, w5, vec)
    # img = img.view(img.size(0), *img_shape)  -> NCHW
    return out_flat.reshape(B, CHANNELS, IMG_SIZE, IMG_SIZE)


if __name__ == "__main__":
    key = jax.random.PRNGKey(0)
    kz, kp = jax.random.split(key)
    batch = 2
    z = jax.random.normal(kz, (batch, LATENT_DIM), jnp.float32)
    weights, vec = init_params(kp)

    img = generator_forward(z, weights, vec)
    img = jax.block_until_ready(img)

    assert img.shape == (batch, CHANNELS, IMG_SIZE, IMG_SIZE)
    assert bool(jnp.all(jnp.isfinite(img)))
    assert bool(jnp.all(jnp.abs(img) <= 1.0))  # tanh range
    print("KERNEL_OK")
</pallas_src>

<mosaic_0001>
module attributes {stable_mosaic.version = 11 : i64} {
  func.func @generator_kernel(%arg0: i32, %arg1: memref<2x32xf32, #tpu.memory_space<vmem>>, %arg2: memref<32x128xbf16, #tpu.memory_space<vmem>>, %arg3: memref<128x256xbf16, #tpu.memory_space<vmem>>, %arg4: memref<256x512xbf16, #tpu.memory_space<vmem>>, %arg5: memref<512x1024xbf16, #tpu.memory_space<any>>, %arg6: memref<1024x256xbf16, #tpu.memory_space<any>>, %arg7: memref<16x1024xf32, #tpu.memory_space<vmem>>, %arg8: memref<2x256xf32, #tpu.memory_space<vmem>>, %arg9: memref<512x1024xbf16, #tpu.memory_space<vmem>>, %arg10: memref<1024x256xbf16, #tpu.memory_space<vmem>>, %arg11: memref<2x!tpu.dma_semaphore, #tpu.memory_space<semaphore_mem>>) attributes {dimension_semantics = [#tpu.dimension_semantics<arbitrary>], iteration_bounds = array<i64: 1>, scalar_prefetch = 0 : i64, scratch_operands = 3 : i64, tpu.core_type = #tpu.core_type<tc>, window_params = [{pipeline_mode = #tpu.pipeline_mode<synchronous>, transform_indices = @transform_0, window_bounds = array<i64: 2, 32>}, {pipeline_mode = #tpu.pipeline_mode<synchronous>, transform_indices = @transform_1, window_bounds = array<i64: 32, 128>}, {pipeline_mode = #tpu.pipeline_mode<synchronous>, transform_indices = @transform_2, window_bounds = array<i64: 128, 256>}, {pipeline_mode = #tpu.pipeline_mode<synchronous>, transform_indices = @transform_3, window_bounds = array<i64: 256, 512>}, {}, {}, {pipeline_mode = #tpu.pipeline_mode<synchronous>, transform_indices = @transform_6, window_bounds = array<i64: 16, 1024>}, {pipeline_mode = #tpu.pipeline_mode<synchronous>, transform_indices = @transform_7, window_bounds = array<i64: 2, 256>}]} {
    %c0_i32 = arith.constant 0 : i32
    %0 = tpu.memref_slice %arg11[%c0_i32] : memref<2x!tpu.dma_semaphore, #tpu.memory_space<semaphore_mem>> -> memref<1x!tpu.dma_semaphore, #tpu.memory_space<semaphore_mem>>
    %1 = tpu.memref_squeeze %0 : memref<1x!tpu.dma_semaphore, #tpu.memory_space<semaphore_mem>> -> memref<!tpu.dma_semaphore, #tpu.memory_space<semaphore_mem>>
    tpu.enqueue_dma source(%arg5 : memref<512x1024xbf16, #tpu.memory_space<any>>) target(%arg9 : memref<512x1024xbf16, #tpu.memory_space<vmem>>) target_semaphore(%1 : memref<!tpu.dma_semaphore, #tpu.memory_space<semaphore_mem>>)
    %c1_i32 = arith.constant 1 : i32
    %2 = tpu.memref_slice %arg11[%c1_i32] : memref<2x!tpu.dma_semaphore, #tpu.memory_space<semaphore_mem>> -> memref<1x!tpu.dma_semaphore, #tpu.memory_space<semaphore_mem>>
    %3 = tpu.memref_squeeze %2 : memref<1x!tpu.dma_semaphore, #tpu.memory_space<semaphore_mem>> -> memref<!tpu.dma_semaphore, #tpu.memory_space<semaphore_mem>>
    tpu.enqueue_dma source(%arg6 : memref<1024x256xbf16, #tpu.memory_space<any>>) target(%arg10 : memref<1024x256xbf16, #tpu.memory_space<vmem>>) target_semaphore(%3 : memref<!tpu.dma_semaphore, #tpu.memory_space<semaphore_mem>>)
    %c0 = arith.constant 0 : index
    %c0_0 = arith.constant 0 : index
    %4 = vector.load %arg1[%c0, %c0_0] : memref<2x32xf32, #tpu.memory_space<vmem>>, vector<2x32xf32>
    %c0_1 = arith.constant 0 : index
    %c0_2 = arith.constant 0 : index
    %5 = vector.load %arg2[%c0_1, %c0_2] : memref<32x128xbf16, #tpu.memory_space<vmem>>, vector<32x128xbf16>
    %6 = arith.truncf %4 : vector<2x32xf32> to vector<2x32xbf16>
    %cst = arith.constant dense<0.000000e+00> : vector<2x128xf32>
    %7 = tpu.matmul %6, %5, %cst {dimension_numbers = #tpu.dot_dimension_numbers<[1], [0], [0], [1], [0, 0, 1, 1], [], []>} : vector<2x32xbf16>, vector<32x128xbf16>, vector<2x128xf32> -> vector<2x128xf32>
    %c0_3 = arith.constant 0 : index
    %c0_4 = arith.constant 0 : index
    %8 = vector.load %arg7[%c0_3, %c0_4] : memref<16x1024xf32, #tpu.memory_space<vmem>>, vector<1x128xf32>
    %9 = vector.broadcast %8 : vector<1x128xf32> to vector<2x128xf32>
    %10 = arith.addf %7, %9 : vector<2x128xf32>
    %cst_5 = arith.constant 0.000000e+00 : f32
    %11 = vector.broadcast %cst_5 : f32 to vector<2x128xf32>
    %12 = arith.cmpf ogt, %10, %11 : vector<2x128xf32>
    %cst_6 = arith.constant 2.000000e-01 : f32
    %13 = vector.broadcast %cst_6 : f32 to vector<2x128xf32>
    %14 = arith.mulf %13, %10 : vector<2x128xf32>
    %15 = arith.select %12, %10, %14 : vector<2x128xi1>, vector<2x128xf32>
    %c0_7 = arith.constant 0 : index
    %c0_8 = arith.constant 0 : index
    %16 = vector.load %arg3[%c0_7, %c0_8] : memref<128x256xbf16, #tpu.memory_space<vmem>>, vector<128x256xbf16>
    %17 = arith.truncf %15 : vector<2x128xf32> to vector<2x128xbf16>
    %cst_9 = arith.constant dense<0.000000e+00> : vector<2x256xf32>
    %18 = tpu.matmul %17, %16, %cst_9 {dimension_numbers = #tpu.dot_dimension_numbers<[1], [0], [0], [1], [0, 0, 1, 1], [], []>} : vector<2x128xbf16>, vector<128x256xbf16>, vector<2x256xf32> -> vector<2x256xf32>
    %c1 = arith.constant 1 : index
    %c0_10 = arith.constant 0 : index
    %19 = vector.load %arg7[%c1, %c0_10] : memref<16x1024xf32, #tpu.memory_space<vmem>>, vector<1x256xf32>
    %20 = vector.broadcast %19 : vector<1x256xf32> to vector<2x256xf32>
    %21 = arith.addf %18, %20 : vector<2x256xf32>
    %c2 = arith.constant 2 : index
    %c0_11 = arith.constant 0 : index
    %22 = vector.load %arg7[%c2, %c0_11] : memref<16x1024xf32, #tpu.memory_space<vmem>>, vector<1x256xf32>
    %c3 = arith.constant 3 : index
    %c0_12 = arith.constant 0 : index
    %23 = vector.load %arg7[%c3, %c0_12] : memref<16x1024xf32, #tpu.memory_space<vmem>>, vector<1x256xf32>
    %cst_13 = arith.constant dense<0.000000e+00> : vector<256xf32>
    %24 = vector.multi_reduction <add>, %21, %cst_13 [0] : vector<2x256xf32> to vector<256xf32>
    %25 = vector.shape_cast %24 : vector<256xf32> to vector<1x256xf32>
    %cst_14 = arith.constant 2.000000e+00 : f32
    %26 = vector.broadcast %cst_14 : f32 to vector<1x256xf32>
    %27 = arith.divf %25, %26 : vector<1x256xf32>
    %28 = arith.mulf %21, %21 : vector<2x256xf32>
    %cst_15 = arith.constant dense<0.000000e+00> : vector<256xf32>
    %29 = vector.multi_reduction <add>, %28, %cst_15 [0] : vector<2x256xf32> to vector<256xf32>
    %30 = vector.shape_cast %29 : vector<256xf32> to vector<1x256xf32>
    %cst_16 = arith.constant 2.000000e+00 : f32
    %31 = vector.broadcast %cst_16 : f32 to vector<1x256xf32>
    %32 = arith.divf %30, %31 : vector<1x256xf32>
    %33 = arith.mulf %27, %27 : vector<1x256xf32>
    %34 = arith.subf %32, %33 : vector<1x256xf32>
    %cst_17 = arith.constant 0.000000e+00 : f32
    %35 = vector.broadcast %cst_17 : f32 to vector<1x256xf32>
    %36 = arith.maximumf %34, %35 : vector<1x256xf32>
    %cst_18 = arith.constant 8.000000e-01 : f32
    %37 = vector.broadcast %cst_18 : f32 to vector<1x256xf32>
    %38 = arith.addf %36, %37 : vector<1x256xf32>
    %39 = math.rsqrt %38 : vector<1x256xf32>
    %40 = arith.mulf %22, %39 : vector<1x256xf32>
    %41 = arith.mulf %27, %40 : vector<1x256xf32>
    %42 = arith.subf %23, %41 : vector<1x256xf32>
    %43 = vector.broadcast %40 : vector<1x256xf32> to vector<2x256xf32>
    %44 = arith.mulf %21, %43 : vector<2x256xf32>
    %45 = vector.broadcast %42 : vector<1x256xf32> to vector<2x256xf32>
    %46 = arith.addf %44, %45 : vector<2x256xf32>
    %cst_19 = arith.constant 0.000000e+00 : f32
    %47 = vector.broadcast %cst_19 : f32 to vector<2x256xf32>
    %48 = arith.cmpf ogt, %46, %47 : vector<2x256xf32>
    %cst_20 = arith.constant 2.000000e-01 : f32
    %49 = vector.broadcast %cst_20 : f32 to vector<2x256xf32>
    %50 = arith.mulf %49, %46 : vector<2x256xf32>
    %51 = arith.select %48, %46, %50 : vector<2x256xi1>, vector<2x256xf32>
    %c0_21 = arith.constant 0 : index
    %c0_22 = arith.constant 0 : index
    %52 = vector.load %arg4[%c0_21, %c0_22] : memref<256x512xbf16, #tpu.memory_space<vmem>>, vector<256x512xbf16>
    %53 = arith.truncf %51 : vector<2x256xf32> to vector<2x256xbf16>
    %cst_23 = arith.constant dense<0.000000e+00> : vector<2x512xf32>
    %54 = tpu.matmul %53, %52, %cst_23 {dimension_numbers = #tpu.dot_dimension_numbers<[1], [0], [0], [1], [0, 0, 1, 1], [], []>} : vector<2x256xbf16>, vector<256x512xbf16>, vector<2x512xf32> -> vector<2x512xf32>
    %c4 = arith.constant 4 : index
    %c0_24 = arith.constant 0 : index
    %55 = vector.load %arg7[%c4, %c0_24] : memref<16x1024xf32, #tpu.memory_space<vmem>>, vector<1x512xf32>
    %56 = vector.broadcast %55 : vector<1x512xf32> to vector<2x512xf32>
    %57 = arith.addf %54, %56 : vector<2x512xf32>
    %c5 = arith.constant 5 : index
    %c0_25 = arith.constant 0 : index
    %58 = vector.load %arg7[%c5, %c0_25] : memref<16x1024xf32, #tpu.memory_space<vmem>>, vector<1x512xf32>
    %c6 = arith.constant 6 : index
    %c0_26 = arith.constant 0 : index
    %59 = vector.load %arg7[%c6, %c0_26] : memref<16x1024xf32, #tpu.memory_space<vmem>>, vector<1x512xf32>
    %cst_27 = arith.constant dense<0.000000e+00> : vector<512xf32>
    %60 = vector.multi_reduction <add>, %57, %cst_27 [0] : vector<2x512xf32> to vector<512xf32>
    %61 = vector.shape_cast %60 : vector<512xf32> to vector<1x512xf32>
    %cst_28 = arith.constant 2.000000e+00 : f32
    %62 = vector.broadcast %cst_28 : f32 to vector<1x512xf32>
    %63 = arith.divf %61, %62 : vector<1x512xf32>
    %64 = arith.mulf %57, %57 : vector<2x512xf32>
    %cst_29 = arith.constant dense<0.000000e+00> : vector<512xf32>
    %65 = vector.multi_reduction <add>, %64, %cst_29 [0] : vector<2x512xf32> to vector<512xf32>
    %66 = vector.shape_cast %65 : vector<512xf32> to vector<1x512xf32>
    %cst_30 = arith.constant 2.000000e+00 : f32
    %67 = vector.broadcast %cst_30 : f32 to vector<1x512xf32>
    %68 = arith.divf %66, %67 : vector<1x512xf32>
    %69 = arith.mulf %63, %63 : vector<1x512xf32>
    %70 = arith.subf %68, %69 : vector<1x512xf32>
    %cst_31 = arith.constant 0.000000e+00 : f32
    %71 = vector.broadcast %cst_31 : f32 to vector<1x512xf32>
    %72 = arith.maximumf %70, %71 : vector<1x512xf32>
    %cst_32 = arith.constant 8.000000e-01 : f32
    %73 = vector.broadcast %cst_32 : f32 to vector<1x512xf32>
    %74 = arith.addf %72, %73 : vector<1x512xf32>
    %75 = math.rsqrt %74 : vector<1x512xf32>
    %76 = arith.mulf %58, %75 : vector<1x512xf32>
    %77 = arith.mulf %63, %76 : vector<1x512xf32>
    %78 = arith.subf %59, %77 : vector<1x512xf32>
    %79 = vector.broadcast %76 : vector<1x512xf32> to vector<2x512xf32>
    %80 = arith.mulf %57, %79 : vector<2x512xf32>
    %81 = vector.broadcast %78 : vector<1x512xf32> to vector<2x512xf32>
    %82 = arith.addf %80, %81 : vector<2x512xf32>
    %cst_33 = arith.constant 0.000000e+00 : f32
    %83 = vector.broadcast %cst_33 : f32 to vector<2x512xf32>
    %84 = arith.cmpf ogt, %82, %83 : vector<2x512xf32>
    %cst_34 = arith.constant 2.000000e-01 : f32
    %85 = vector.broadcast %cst_34 : f32 to vector<2x512xf32>
    %86 = arith.mulf %85, %82 : vector<2x512xf32>
    %87 = arith.select %84, %82, %86 : vector<2x512xi1>, vector<2x512xf32>
    %c0_i32_35 = arith.constant 0 : i32
    %88 = tpu.memref_slice %arg11[%c0_i32_35] : memref<2x!tpu.dma_semaphore, #tpu.memory_space<semaphore_mem>> -> memref<1x!tpu.dma_semaphore, #tpu.memory_space<semaphore_mem>>
    %89 = tpu.memref_squeeze %88 : memref<1x!tpu.dma_semaphore, #tpu.memory_space<semaphore_mem>> -> memref<!tpu.dma_semaphore, #tpu.memory_space<semaphore_mem>>
    tpu.wait_dma2 semaphore(%89 : memref<!tpu.dma_semaphore, #tpu.memory_space<semaphore_mem>>) src(%arg5 : memref<512x1024xbf16, #tpu.memory_space<any>>) dst(%arg9 : memref<512x1024xbf16, #tpu.memory_space<vmem>>)
    %c0_36 = arith.constant 0 : index
    %c0_37 = arith.constant 0 : index
    %90 = vector.load %arg9[%c0_36, %c0_37] : memref<512x1024xbf16, #tpu.memory_space<vmem>>, vector<512x1024xbf16>
    %91 = arith.truncf %87 : vector<2x512xf32> to vector<2x512xbf16>
    %cst_38 = arith.constant dense<0.000000e+00> : vector<2x1024xf32>
    %92 = tpu.matmul %91, %90, %cst_38 {dimension_numbers = #tpu.dot_dimension_numbers<[1], [0], [0], [1], [0, 0, 1, 1], [], []>} : vector<2x512xbf16>, vector<512x1024xbf16>, vector<2x1024xf32> -> vector<2x1024xf32>
    %c7 = arith.constant 7 : index
    %c0_39 = arith.constant 0 : index
    %93 = vector.load %arg7[%c7, %c0_39] : memref<16x1024xf32, #tpu.memory_space<vmem>>, vector<1x1024xf32>
    %94 = vector.broadcast %93 : vector<1x1024xf32> to vector<2x1024xf32>
    %95 = arith.addf %92, %94 : vector<2x1024xf32>
    %c8 = arith.constant 8 : index
    %c0_40 = arith.constant 0 : index
    %96 = vector.load %arg7[%c8, %c0_40] : memref<16x1024xf32, #tpu.memory_space<vmem>>, vector<1x1024xf32>
    %c9 = arith.constant 9 : index
    %c0_41 = arith.constant 0 : index
    %97 = vector.load %arg7[%c9, %c0_41] : memref<16x1024xf32, #tpu.memory_space<vmem>>, vector<1x1024xf32>
    %cst_42 = arith.constant dense<0.000000e+00> : vector<1024xf32>
    %98 = vector.multi_reduction <add>, %95, %cst_42 [0] : vector<2x1024xf32> to vector<1024xf32>
    %99 = vector.shape_cast %98 : vector<1024xf32> to vector<1x1024xf32>
    %cst_43 = arith.constant 2.000000e+00 : f32
    %100 = vector.broadcast %cst_43 : f32 to vector<1x1024xf32>
    %101 = arith.divf %99, %100 : vector<1x1024xf32>
    %102 = arith.mulf %95, %95 : vector<2x1024xf32>
    %cst_44 = arith.constant dense<0.000000e+00> : vector<1024xf32>
    %103 = vector.multi_reduction <add>, %102, %cst_44 [0] : vector<2x1024xf32> to vector<1024xf32>
    %104 = vector.shape_cast %103 : vector<1024xf32> to vector<1x1024xf32>
    %cst_45 = arith.constant 2.000000e+00 : f32
    %105 = vector.broadcast %cst_45 : f32 to vector<1x1024xf32>
    %106 = arith.divf %104, %105 : vector<1x1024xf32>
    %107 = arith.mulf %101, %101 : vector<1x1024xf32>
    %108 = arith.subf %106, %107 : vector<1x1024xf32>
    %cst_46 = arith.constant 0.000000e+00 : f32
    %109 = vector.broadcast %cst_46 : f32 to vector<1x1024xf32>
    %110 = arith.maximumf %108, %109 : vector<1x1024xf32>
    %cst_47 = arith.constant 8.000000e-01 : f32
    %111 = vector.broadcast %cst_47 : f32 to vector<1x1024xf32>
    %112 = arith.addf %110, %111 : vector<1x1024xf32>
    %113 = math.rsqrt %112 : vector<1x1024xf32>
    %114 = arith.mulf %96, %113 : vector<1x1024xf32>
    %115 = arith.mulf %101, %114 : vector<1x1024xf32>
    %116 = arith.subf %97, %115 : vector<1x1024xf32>
    %117 = vector.broadcast %114 : vector<1x1024xf32> to vector<2x1024xf32>
    %118 = arith.mulf %95, %117 : vector<2x1024xf32>
    %119 = vector.broadcast %116 : vector<1x1024xf32> to vector<2x1024xf32>
    %120 = arith.addf %118, %119 : vector<2x1024xf32>
    %cst_48 = arith.constant 0.000000e+00 : f32
    %121 = vector.broadcast %cst_48 : f32 to vector<2x1024xf32>
    %122 = arith.cmpf ogt, %120, %121 : vector<2x1024xf32>
    %cst_49 = arith.constant 2.000000e-01 : f32
    %123 = vector.broadcast %cst_49 : f32 to vector<2x1024xf32>
    %124 = arith.mulf %123, %120 : vector<2x1024xf32>
    %125 = arith.select %122, %120, %124 : vector<2x1024xi1>, vector<2x1024xf32>
    %c1_i32_50 = arith.constant 1 : i32
    %126 = tpu.memref_slice %arg11[%c1_i32_50] : memref<2x!tpu.dma_semaphore, #tpu.memory_space<semaphore_mem>> -> memref<1x!tpu.dma_semaphore, #tpu.memory_space<semaphore_mem>>
    %127 = tpu.memref_squeeze %126 : memref<1x!tpu.dma_semaphore, #tpu.memory_space<semaphore_mem>> -> memref<!tpu.dma_semaphore, #tpu.memory_space<semaphore_mem>>
    tpu.wait_dma2 semaphore(%127 : memref<!tpu.dma_semaphore, #tpu.memory_space<semaphore_mem>>) src(%arg6 : memref<1024x256xbf16, #tpu.memory_space<any>>) dst(%arg10 : memref<1024x256xbf16, #tpu.memory_space<vmem>>)
    %c0_51 = arith.constant 0 : index
    %c0_52 = arith.constant 0 : index
    %128 = vector.load %arg10[%c0_51, %c0_52] : memref<1024x256xbf16, #tpu.memory_space<vmem>>, vector<1024x256xbf16>
    %129 = arith.truncf %125 : vector<2x1024xf32> to vector<2x1024xbf16>
    %cst_53 = arith.constant dense<0.000000e+00> : vector<2x256xf32>
    %130 = tpu.matmul %129, %128, %cst_53 {dimension_numbers = #tpu.dot_dimension_numbers<[1], [0], [0], [1], [0, 0, 1, 1], [], []>} : vector<2x1024xbf16>, vector<1024x256xbf16>, vector<2x256xf32> -> vector<2x256xf32>
    %c10 = arith.constant 10 : index
    %c0_54 = arith.constant 0 : index
    %131 = vector.load %arg7[%c10, %c0_54] : memref<16x1024xf32, #tpu.memory_space<vmem>>, vector<1x256xf32>
    %132 = vector.broadcast %131 : vector<1x256xf32> to vector<2x256xf32>
    %133 = arith.addf %130, %132 : vector<2x256xf32>
    %134 = math.tanh %133 : vector<2x256xf32>
    %c0_55 = arith.constant 0 : index
    %c0_56 = arith.constant 0 : index
    %135 = vector.load %arg8[%c0_55, %c0_56] : memref<2x256xf32, #tpu.memory_space<vmem>>, vector<2x256xf32>
    tpu.vector_store %arg8[%c0_55, %c0_56], %134 {strides = array<i32>} : memref<2x256xf32, #tpu.memory_space<vmem>>, vector<2x256xf32>,
    return
  }
  func.func @transform_0(%arg0: i32) -> (i32, i32) {
    %c0_i32 = arith.constant 0 : i32
    %c0_i32_0 = arith.constant 0 : i32
    %c0_i32_1 = arith.constant 0 : i32
    return %c0_i32, %c0_i32_0 : i32, i32
  }
  func.func @transform_1(%arg0: i32) -> (i32, i32) {
    %c0_i32 = arith.constant 0 : i32
    %c0_i32_0 = arith.constant 0 : i32
    %c0_i32_1 = arith.constant 0 : i32
    return %c0_i32, %c0_i32_0 : i32, i32
  }
  func.func @transform_2(%arg0: i32) -> (i32, i32) {
    %c0_i32 = arith.constant 0 : i32
    %c0_i32_0 = arith.constant 0 : i32
    %c0_i32_1 = arith.constant 0 : i32
    return %c0_i32, %c0_i32_0 : i32, i32
  }
  func.func @transform_3(%arg0: i32) -> (i32, i32) {
    %c0_i32 = arith.constant 0 : i32
    %c0_i32_0 = arith.constant 0 : i32
    %c0_i32_1 = arith.constant 0 : i32
    return %c0_i32, %c0_i32_0 : i32, i32
  }
  func.func @transform_6(%arg0: i32) -> (i32, i32) {
    %c0_i32 = arith.constant 0 : i32
    %c0_i32_0 = arith.constant 0 : i32
    %c0_i32_1 = arith.constant 0 : i32
    return %c0_i32, %c0_i32_0 : i32, i32
  }
  func.func @transform_7(%arg0: i32) -> (i32, i32) {
    %c0_i32 = arith.constant 0 : i32
    %c0_i32_0 = arith.constant 0 : i32
    %c0_i32_1 = arith.constant 0 : i32
    return %c0_i32, %c0_i32_0 : i32, i32
  }
}

</mosaic_0001>

<bundles_post_ra>
// kernel: tpu_custom_call.1
= control target key start
LH: loop header
LB: loop body
LE: loop exit
PB: predicated region body
PF: predicated region fallthrough
CT: control target
= control target key end

     0   :  { %12 = vsyncpa [#allocation6], 0  ;;  %s3625_s0 = inlined_call_operand.hbm [shape: f32[2,32], index: 0, kind: input, shape index: {}]   ;;  %s3626_s1 = inlined_call_operand.hbm [shape: bf16[32,128], index: 1, kind: input, shape index: {}]   ;;  %s3627_s2 = inlined_call_operand.hbm [shape: bf16[128,256], index: 2, kind: input, shape index: {}]   ;;  %s3628_s3 = inlined_call_operand.hbm [shape: bf16[256,512], index: 3, kind: input, shape index: {}]   ;;  %s3629_s4 = inlined_call_operand.hbm [shape: bf16[512,1024], index: 4, kind: input, shape index: {}]   ;;  %s3630_s5 = inlined_call_operand.hbm [shape: bf16[1024,256], index: 5, kind: input, shape index: {}]   ;;  %s3631_s6 = inlined_call_operand.hbm [shape: f32[16,1024], index: 6, kind: input, shape index: {}]   ;;  %s3632_s7 = inlined_call_operand.hbm [shape: f32[2,256], index: 7, kind: output, shape index: {}]  }
   0x1   :  { %13 = vsyncpa [#allocation9], 0 }
   0x2   :  { %14 = vsyncpa [#allocation12], 0 }
   0x3   :  { %15 = vsyncpa [#allocation7], 0  ;;  %s3098_s24 = smov [#allocation8]   ;;  %s2954_s28 = scalar_lea.hbm %s3626_s1, 256 }
   0x4   :  { %s31_s25 = sshll.u32 %s3098_s24, 4  ;;  %p2955_p0 = scmp.ne.s32.totalorder %s3626_s1, %s2954_s28  ;;  %s32_s25 = int_to_ptr.vmem [resolvable:$true] %s31_s25 }
   0x5   :  { %p2958_p1 = scmp.lt.u32.totalorder %s2954_s28, %s3626_s1 }
   0x7   :  { %p2960_p2 = pnand %p2958_p1, %p2955_p0 }
   0x9   :  { %2963 = shalt.err (!%p2960_p2)
}
   0xa   :  { %s2964_s10 = scalar_lea.vmem %s32_s25, 256  ;;  %p2969_p4 = scmp.lt.s32.totalorder %s32_s25, %s32_s25 }
   0xb   :  { %p2965_p3 = scmp.ne.s32.totalorder %s32_s25, %s2964_s10  ;;  %p2970_p5 = scmp.lt.s32.totalorder %s2964_s10, %s2964_s10 }
   0xd   :  { %p2971_p6 = por %p2970_p5, %p2969_p4 }
   0xf   :  { %p2972_p7 = pnand %p2971_p6, %p2965_p3 }
  0x11   :  { %2975 = shalt.err (!%p2972_p7)
}
  0x12   :  { %s3099_s11 = smov 64   ;;  %s3100_s12 = smov 4  }
  0x13   :  { %37 = dma.hbm_to_vmem [thread:$0]  %s3626_s1, 256, %s32_s25, [#allocation9], %s3099_s11, %s3099_s11, %s3100_s12  }
  0x14   :  { %s3101_s15 = smov [#allocation11]   ;;  %s2976_s19 = scalar_lea.hbm %s3628_s3, 8192 }
  0x15   :  { %s55_s16 = sshll.u32 %s3101_s15, 4  ;;  %p2977_p8 = scmp.ne.s32.totalorder %s3628_s3, %s2976_s19  ;;  %s56_s16 = int_to_ptr.vmem [resolvable:$true] %s55_s16 }
  0x16   :  { %p2980_p9 = scmp.lt.u32.totalorder %s2976_s19, %s3628_s3 }
  0x18   :  { %p2982_p10 = pnand %p2980_p9, %p2977_p8 }
  0x1a   :  { %2985 = shalt.err (!%p2982_p10)
}
  0x1b   :  { %s2986_s24 = scalar_lea.vmem %s56_s16, 8192  ;;  %p2991_p12 = scmp.lt.s32.totalorder %s56_s16, %s56_s16 }
  0x1c   :  { %p2987_p11 = scmp.ne.s32.totalorder %s56_s16, %s2986_s24  ;;  %p2992_p13 = scmp.lt.s32.totalorder %s2986_s24, %s2986_s24 }
  0x1e   :  { %p2993_p0 = por %p2992_p13, %p2991_p12 }
  0x20   :  { %p2994_p1 = pnand %p2993_p0, %p2987_p11 }
  0x22   :  { %2997 = shalt.err (!%p2994_p1)
}
  0x23   :  { %s3102_s1 = smov 256   ;;  %s3103_s25 = smov 16  }
  0x24   :  { %61 = dma.hbm_to_vmem [thread:$0]  %s3628_s3, 8192, %s56_s16, [#allocation12], %s3102_s1, %s3102_s1, %s3103_s25  }
  0x25   :  { %s3104_s28 = smov [#allocation5]   ;;  %s3105_s30 = smov [#allocation10]  }
  0x26   :  { %s22_s29 = sshll.u32 %s3104_s28, 4  ;;  %s43_s8 = sshll.u32 %s3105_s30, 4  ;;  %s23_s29 = int_to_ptr.vmem [resolvable:$true] %s22_s29  ;;  %s3192_s8 = int_to_ptr.vmem [resolvable:$true] %s43_s8 }
  0x27   :  { %s2998_s13 = scalar_lea.hbm %s3625_s0, 32 }
  0x28   :  { %p2999_p2 = scmp.ne.s32.totalorder %s3625_s0, %s2998_s13  ;;  %p3002_p3 = scmp.lt.u32.totalorder %s2998_s13, %s3625_s0 }
  0x2a   :  { %p3004_p4 = pnand %p3002_p3, %p2999_p2 }
  0x2c   :  { %3007 = shalt.err (!%p3004_p4)
}
  0x2d   :  { %s3008_s3 = scalar_lea.vmem %s23_s29, 32  ;;  %p3013_p6 = scmp.lt.s32.totalorder %s23_s29, %s23_s29 }
  0x2e   :  { %p3009_p5 = scmp.ne.s32.totalorder %s23_s29, %s3008_s3  ;;  %p3014_p7 = scmp.lt.s32.totalorder %s3008_s3, %s3008_s3 }
  0x30   :  { %p3015_p8 = por %p3014_p7, %p3013_p6 }
  0x32   :  { %p3016_p9 = pnand %p3015_p8, %p3009_p5 }
  0x34   :  { %3019 = shalt.err (!%p3016_p9)
}
  0x35   :  { %25 = dma.hbm_to_vmem [thread:$0]  %s3625_s0, 32, %s23_s29, [#allocation6]  }
  0x36   :  { %s3020_s22 = scalar_lea.hbm %s3627_s2, 2048 }
  0x37   :  { %p3021_p10 = scmp.ne.s32.totalorder %s3627_s2, %s3020_s22  ;;  %p3024_p11 = scmp.lt.u32.totalorder %s3020_s22, %s3627_s2 }
  0x39   :  { %p3026_p12 = pnand %p3024_p11, %p3021_p10 }
  0x3b   :  { %3029 = shalt.err (!%p3026_p12)
}
  0x3c   :  { %s3030_s27 = scalar_lea.vmem %s3192_s8, 2048  ;;  %p3035_p0 = scmp.lt.s32.totalorder %s3192_s8, %s3192_s8 }
  0x3d   :  { %p3031_p13 = scmp.ne.s32.totalorder %s3192_s8, %s3030_s27  ;;  %p3036_p1 = scmp.lt.s32.totalorder %s3030_s27, %s3030_s27 }
  0x3f   :  { %p3037_p2 = por %p3036_p1, %p3035_p0 }
  0x41   :  { %p3038_p3 = pnand %p3037_p2, %p3031_p13 }
  0x43   :  { %3041 = shalt.err (!%p3038_p3)
}
  0x44   :  { %s3106_s0 = smov 128   ;;  %s3107_s28 = smov 8  }
  0x45   :  { %49 = dma.hbm_to_vmem [thread:$0]  %s3627_s2, 2048, %s3192_s8, [#allocation9], %s3106_s0, %s3106_s0, %s3107_s28  }
  0x46   :  { %s3108_s9 = smov [#allocation13]   ;;  %s3042_s15 = scalar_lea.hbm %s3631_s6, 2048 }
  0x47   :  { %s67_s10 = sshll.u32 %s3108_s9, 4  ;;  %p3043_p4 = scmp.ne.s32.totalorder %s3631_s6, %s3042_s15  ;;  %s68_s10 = int_to_ptr.vmem [resolvable:$true] %s67_s10 }
  0x48   :  { %p3046_p5 = scmp.lt.u32.totalorder %s3042_s15, %s3631_s6 }
  0x4a   :  { %p3048_p6 = pnand %p3046_p5, %p3043_p4 }
  0x4c   :  { %3051 = shalt.err (!%p3048_p6)
}
  0x4d   :  { %s3052_s19 = scalar_lea.vmem %s68_s10, 2048  ;;  %p3057_p8 = scmp.lt.s32.totalorder %s68_s10, %s68_s10 }
  0x4e   :  { %p3053_p7 = scmp.ne.s32.totalorder %s68_s10, %s3052_s19  ;;  %p3058_p9 = scmp.lt.s32.totalorder %s3052_s19, %s3052_s19 }
  0x50   :  { %p3059_p10 = por %p3058_p9, %p3057_p8 }
  0x52   :  { %p3060_p11 = pnand %p3059_p10, %p3053_p7 }
  0x54   :  { %3063 = shalt.err (!%p3060_p11)
}
  0x55   :  { %s3109_s2 = smov 1024  }
  0x56   :  { %73 = dma.hbm_to_vmem [thread:$0]  %s3631_s6, 2048, %s68_s10, [#allocation12], %s3109_s2, %s3109_s2, %s3099_s11  }
  0x57   :  { %3086 = dma.done.wait [#allocation6], 32  }
  0x58   :  { %3087 = vsyncadd [#allocation6], 4294967264 }
  0x59   :  { %3088 = dma.done.wait [#allocation9], 2304  }
  0x5a   :  { %3089 = vsyncadd [#allocation9], 4294964992 }
  0x5b   :  { %3090 = dma.done.wait [#allocation12], 10240  }
  0x5c   :  { %3091 = vsyncadd [#allocation12], 4294957056  ;;  %s94_s21 = sld [smem:[#allocation0]]   ;;  %106 = sst [smem:[#allocation16]] %s3109_s2  ;;  %v3110_v0 = vmov 0.0   ;;  %vm3111_vm0 = vmmov 0  }
  0x5d   :  { %2731 = vmatprep.subr.bf16.mxu0 %v3110_v0  ;;  %2735 = vmatprep.mubr.msk.bf16.mxu0 %vm3111_vm0, %v3110_v0  ;;  %108 = sst [smem:[#allocation16 + $0x1]] %s3109_s2  ;;  %s3112_s22 = smov [#allocation2]   ;;  %vm179_vm1 = vcmask 261120   ;;  %v3120_v21 = vmov 0   ;;  %vm381_vm3 = vcmask 1041408  }
  0x5e   :  { %s102_s23 = sshll.u32 %s3112_s22, 4  ;;  %110 = sst [smem:[#allocation16 + $0x2]] %s3107_s28  ;;  %368 = vmatprep.mubr.bf16.mxu1 %v3120_v21  ;;  %s103_s23 = int_to_ptr.vmem [resolvable:$true] %s102_s23 }
  0x5f   :  { %112 = sst [smem:[#allocation16 + $0x3]] %s3099_s11  ;;  %s3113_s6 = smov 512  }
  0x60   :  { %114 = sst [smem:[#allocation16 + $0x4]] %s3106_s0  ;;  %s3114_s26 = smov 2  }
  0x61   :  { %118 = sst [smem:[#allocation16 + $0x6]] %s3113_s6  ;;  %s3115_s27 = smov [#allocation4]  }
  0x62   :  { %s2638_s24 = sshll.u32 %s94_s21, 26  ;;  %120 = sst [smem:[#allocation16 + $0x7]] %s3099_s11 }
  0x63   :  { %s2639_s25 = sadd.s32 134217728, %s2638_s24  ;;  %122 = sst [smem:[#allocation16 + $0x8]] %s3100_s12 }
  0x64   :  { %116 = sst [smem:[#allocation16 + $0x5]] %s3114_s26  ;;  %s3116_s29 = smov [#allocation15]  }
  0x65   :  { %124 = dma.general %s3629_s4, 32768, %s103_s23, %s3115_s27, %s3116_s29, [#allocation16], %s2639_s25, 0  }
  0x66   :  { %141 = sst [smem:[#allocation18]] %s3102_s1  ;;  %s3117_s28 = smov [#allocation3]  }
  0x67   :  { %143 = sst [smem:[#allocation18 + $0x1]] %s3102_s1  ;;  %s137_s10 = sshll.u32 %s3117_s28, 4  ;;  %s138_s10 = int_to_ptr.vmem [resolvable:$true] %s137_s10 }
  0x68   :  { %145 = sst [smem:[#allocation18 + $0x2]] %s3114_s26  ;;  %s3118_s4 = smov [#allocation4 + $0x1]  }
  0x69   :  { %147 = sst [smem:[#allocation18 + $0x3]] %s3099_s11  ;;  %s3119_s13 = smov [#allocation17]  }
  0x6a   :  { %149 = sst [smem:[#allocation18 + $0x4]] %s3106_s0 }
  0x6b   :  { %151 = sst [smem:[#allocation18 + $0x5]] %s3114_s26 }
  0x6c   :  { %153 = sst [smem:[#allocation18 + $0x6]] %s3106_s0 }
  0x6d   :  { %155 = sst [smem:[#allocation18 + $0x7]] %s3099_s11 }
  0x6e   :  { %157 = sst [smem:[#allocation18 + $0x8]] %s3100_s12 }
  0x6f   :  { %159 = dma.general %s3630_s5, 16384, %s138_s10, %s3118_s4, %s3119_s13, [#allocation18], %s2639_s25, 0  }
  0x70   :  { %v2800_v1 = vld [vmem:[#allocation8] sm:$0xff]   ;;  %v2801_v2 = vld [vmem:[#allocation8 + $0x8] sm:$0xff]   ;;  %v160_v3 = vld [vmem:[#allocation5] sm:$0x3] }
  0x71   :  { %2732 = vmatpush3.bf16.msra.mxu0 %v2800_v1  ;;  %v2802_v4 = vld [vmem:[#allocation10 + $0x4] ss:$8 sps:$4 sm:$0xff]   ;;  %v2804_v5 = vld [vmem:[#allocation10] ss:$8 sps:$4 sm:$0xff]   ;;  %v2805_v6 = vld [vmem:[#allocation10 + $0x14] ss:$8 sps:$4 sm:$0xff]   ;;  %v165_v7 = vpack.c.bf16 %v160_v3, %v160_v3 }
  0x72   :  { %2733 = vmatprep.subr.bf16.mxu0 %v3110_v0  ;;  %336 = vmatprep.subr.bf16.mxu1 %v2802_v4  ;;  %v2807_v8 = vld [vmem:[#allocation10 + $0x10] ss:$8 sps:$4 sm:$0xff]   ;;  %v2808_v9 = vld [vmem:[#allocation10 + $0x24] ss:$8 sps:$4 sm:$0xff]   ;;  %v2810_v10 = vld [vmem:[#allocation10 + $0x20] ss:$8 sps:$4 sm:$0xff]   ;;  %v246_v0 = vlaneseq }
  0x73   :  { %337 = vmatpush1.bf16.msra.mxu1 %v2804_v5  ;;  %v2811_v11 = vld [vmem:[#allocation10 + $0x34] ss:$8 sps:$4 sm:$0xff]   ;;  %v2813_v12 = vld [vmem:[#allocation10 + $0x30] ss:$8 sps:$4 sm:$0xff]   ;;  %v2814_v13 = vld [vmem:[#allocation10 + $0x44] ss:$8 sps:$4 sm:$0xff]  }
  0x74   :  { %338 = vmatprep.subr.bf16.mxu1 %v2805_v6  ;;  %v2816_v14 = vld [vmem:[#allocation10 + $0x40] ss:$8 sps:$4 sm:$0xff]   ;;  %v2817_v15 = vld [vmem:[#allocation10 + $0x54] ss:$8 sps:$4 sm:$0xff]   ;;  %v2819_v16 = vld [vmem:[#allocation10 + $0x50] ss:$8 sps:$4 sm:$0xff]  }
  0x75   :  { %2734 = vmatpush3.bf16.msra.mxu0 %v2801_v2  ;;  %v2820_v17 = vld [vmem:[#allocation10 + $0x64] ss:$8 sps:$4 sm:$0xff]   ;;  %v2822_v18 = vld [vmem:[#allocation10 + $0x60] ss:$8 sps:$4 sm:$0xff]   ;;  %v2823_v19 = vld [vmem:[#allocation10 + $0x74] ss:$8 sps:$4 sm:$0xff]  }
  0x76   :  { %v2825_v20 = vld [vmem:[#allocation10 + $0x70] ss:$8 sps:$4 sm:$0xff]   ;;  %v166_v22 = vld [vmem:[#allocation13] ss:$0 sm:$0xff]  ;;  %v2828_v31 = vld [vmem:[#allocation11 + $0x4] ss:$16 sps:$4 sm:$0xff]  }
  0x77   :  { %339 = vmatpush1.bf16.msra.mxu1 %v2807_v8  ;;  %v2826_v32 = vld [vmem:[#allocation11] ss:$16 sps:$4 sm:$0xff]   ;;  %v2831_v33 = vld [vmem:[#allocation11 + $0x24] ss:$16 sps:$4 sm:$0xff]   ;;  %v2876_v63 = vld [vmem:[#allocation11 + $0xc] ss:$16 sps:$4 sm:$0xff]  }
  0x78   :  { %2736 = vmatmul.mubr.msk.bf16.vlgmr.msra.gmra.mrb[0].mxu0 %vm179_vm1, %v165_v7  ;;  %340 = vmatprep.subr.bf16.mxu1 %v2808_v9  ;;  %v2829_v34 = vld [vmem:[#allocation11 + $0x20] ss:$16 sps:$4 sm:$0xff]   ;;  %v2834_v35 = vld [vmem:[#allocation11 + $0x44] ss:$16 sps:$4 sm:$0xff]   ;;  %v3257_v1 = vshrl.u32 %v246_v0, 7 }
  0x79   :  { %v2832_v36 = vld [vmem:[#allocation11 + $0x40] ss:$16 sps:$4 sm:$0xff]   ;;  %v2837_v37 = vld [vmem:[#allocation11 + $0x64] ss:$16 sps:$4 sm:$0xff]  }
  0x7a   :  { %v2835_v38 = vld [vmem:[#allocation11 + $0x60] ss:$16 sps:$4 sm:$0xff]   ;;  %v2840_v39 = vld [vmem:[#allocation11 + $0x84] ss:$16 sps:$4 sm:$0xff]   ;;  %v3260_v2 = vsub.s32 0, %v3257_v1  ;;  %v3263_v4 = vsub.s32 1, %v3257_v1 }
  0x7b   :  { %341 = vmatpush1.bf16.msra.mxu1 %v2810_v10  ;;  %v2838_v40 = vld [vmem:[#allocation11 + $0x80] ss:$16 sps:$4 sm:$0xff]   ;;  %v2843_v41 = vld [vmem:[#allocation11 + $0xa4] ss:$16 sps:$4 sm:$0xff]  }
  0x7c   :  { %342 = vmatprep.subr.bf16.mxu1 %v2811_v11  ;;  %v2841_v42 = vld [vmem:[#allocation11 + $0xa0] ss:$16 sps:$4 sm:$0xff]   ;;  %v2846_v43 = vld [vmem:[#allocation11 + $0xc4] ss:$16 sps:$4 sm:$0xff]  }
  0x7d   :  { %v2844_v44 = vld [vmem:[#allocation11 + $0xc0] ss:$16 sps:$4 sm:$0xff]   ;;  %v2849_v45 = vld [vmem:[#allocation11 + $0xe4] ss:$16 sps:$4 sm:$0xff]  }
  0x7e   :  { %v2847_v46 = vld [vmem:[#allocation11 + $0xe0] ss:$16 sps:$4 sm:$0xff]   ;;  %v2852_v47 = vld [vmem:[#allocation11 + $0x104] ss:$16 sps:$4 sm:$0xff]  }
  0x7f   :  { %343 = vmatpush1.bf16.msra.mxu1 %v2813_v12  ;;  %v2850_v48 = vld [vmem:[#allocation11 + $0x100] ss:$16 sps:$4 sm:$0xff]   ;;  %v2855_v49 = vld [vmem:[#allocation11 + $0x124] ss:$16 sps:$4 sm:$0xff]  }
  0x80   :  { %344 = vmatprep.subr.bf16.mxu1 %v2814_v13  ;;  %v2853_v50 = vld [vmem:[#allocation11 + $0x120] ss:$16 sps:$4 sm:$0xff]   ;;  %v2858_v51 = vld [vmem:[#allocation11 + $0x144] ss:$16 sps:$4 sm:$0xff]  }
  0x81   :  { %v2856_v52 = vld [vmem:[#allocation11 + $0x140] ss:$16 sps:$4 sm:$0xff]   ;;  %v2861_v53 = vld [vmem:[#allocation11 + $0x164] ss:$16 sps:$4 sm:$0xff]  }
  0x82   :  { %v2859_v54 = vld [vmem:[#allocation11 + $0x160] ss:$16 sps:$4 sm:$0xff]   ;;  %v2864_v55 = vld [vmem:[#allocation11 + $0x184] ss:$16 sps:$4 sm:$0xff]  }
  0x83   :  { %345 = vmatpush1.bf16.msra.mxu1 %v2816_v14  ;;  %v2862_v56 = vld [vmem:[#allocation11 + $0x180] ss:$16 sps:$4 sm:$0xff]   ;;  %v2867_v57 = vld [vmem:[#allocation11 + $0x1a4] ss:$16 sps:$4 sm:$0xff]  }
  0x84   :  { %346 = vmatprep.subr.bf16.mxu1 %v2817_v15  ;;  %v2865_v58 = vld [vmem:[#allocation11 + $0x1a0] ss:$16 sps:$4 sm:$0xff]   ;;  %v2870_v59 = vld [vmem:[#allocation11 + $0x1c4] ss:$16 sps:$4 sm:$0xff]  }
  0x85   :  { %v2868_v60 = vld [vmem:[#allocation11 + $0x1c0] ss:$16 sps:$4 sm:$0xff]   ;;  %v2873_v61 = vld [vmem:[#allocation11 + $0x1e4] ss:$16 sps:$4 sm:$0xff]  }
  0x86   :  { %v2871_v62 = vld [vmem:[#allocation11 + $0x1e0] ss:$16 sps:$4 sm:$0xff]  }
  0x87   :  { %347 = vmatpush1.bf16.msra.mxu1 %v2819_v16  ;;  %v244_v3 = vld [vmem:[#allocation13 + $0x1] ss:$8 sm:$0x3] }
  0x88   :  { %348 = vmatprep.subr.bf16.mxu1 %v2820_v17  ;;  %v249_v5 = vrot.slane %v244_v3, %v3260_v2  ;;  %v253_v6 = vrot.slane %v244_v3, %v3263_v4 }
  0x8b   :  { %349 = vmatpush1.bf16.msra.mxu1 %v2822_v18 }
  0x8c   :  { %350 = vmatprep.subr.bf16.mxu1 %v2823_v19 }
  0x8f   :  { %351 = vmatpush1.bf16.msra.mxu1 %v2825_v20 }
  0x90   :  { %908 = vmatprep.subr.bf16.mxu1 %v2828_v31 }
 0x14b   :  { %v217_v23 = vpop.f32.mrb[0].mxu0 }
 0x14c   :  { %v218_v24 = vadd.f32 %v217_v23, %v166_v22  ;;  %v2737_v25 = vpop.f32.mrb[1].mxu0 }
 0x14d   :  { %v220_v26 = vpop.f32.mrb[2].mxu0 }
 0x14e   :  { %vm223_vm2 = vcmp.gt.f32.partialorder %v218_v24, 0.0  ;;  %v224_v27 = vmul.f32 0.2, %v218_v24  ;;  %v2738_v28 = vpop.f32.mrb[3].mxu0 }
 0x150   :  { %v225_v29 = vsel %vm223_vm2, %v218_v24, %v224_v27 }
 0x151   :  { %v242_v30 = vpack.c.bf16 %v225_v29, %v225_v29 }
 0x153   :  { %369 = vmatmul.mubr.bf16.vlgmr.msra.gmra.mrb[0].mxu1 %v242_v30 }
 0x154   :  { %909 = vmatpush1.bf16.msra.mxu1 %v2826_v32 }
 0x155   :  { %910 = vmatprep.subr.bf16.mxu1 %v2831_v33 }
 0x158   :  { %911 = vmatpush1.bf16.msra.mxu1 %v2829_v34 }
 0x159   :  { %912 = vmatprep.subr.bf16.mxu1 %v2834_v35 }
 0x15c   :  { %913 = vmatpush1.bf16.msra.mxu1 %v2832_v36 }
 0x15d   :  { %914 = vmatprep.subr.bf16.mxu1 %v2837_v37 }
 0x160   :  { %915 = vmatpush1.bf16.msra.mxu1 %v2835_v38 }
 0x161   :  { %916 = vmatprep.subr.bf16.mxu1 %v2840_v39 }
 0x164   :  { %917 = vmatpush1.bf16.msra.mxu1 %v2838_v40 }
 0x165   :  { %918 = vmatprep.subr.bf16.mxu1 %v2843_v41 }
 0x168   :  { %919 = vmatpush1.bf16.msra.mxu1 %v2841_v42 }
 0x169   :  { %920 = vmatprep.subr.bf16.mxu1 %v2846_v43 }
 0x16c   :  { %921 = vmatpush1.bf16.msra.mxu1 %v2844_v44 }
 0x16d   :  { %922 = vmatprep.subr.bf16.mxu1 %v2849_v45 }
 0x170   :  { %923 = vmatpush1.bf16.msra.mxu1 %v2847_v46 }
 0x171   :  { %924 = vmatprep.subr.bf16.mxu1 %v2852_v47 }
 0x174   :  { %925 = vmatpush1.bf16.msra.mxu1 %v2850_v48 }
 0x175   :  { %926 = vmatprep.subr.bf16.mxu1 %v2855_v49 }
 0x178   :  { %927 = vmatpush1.bf16.msra.mxu1 %v2853_v50 }
 0x179   :  { %928 = vmatprep.subr.bf16.mxu1 %v2858_v51 }
 0x17c   :  { %929 = vmatpush1.bf16.msra.mxu1 %v2856_v52 }
 0x17d   :  { %930 = vmatprep.subr.bf16.mxu1 %v2861_v53 }
 0x180   :  { %931 = vmatpush1.bf16.msra.mxu1 %v2859_v54 }
 0x181   :  { %932 = vmatprep.subr.bf16.mxu1 %v2864_v55  ;;  %v3121_v55 = vmov 1966171168  }
 0x184   :  { %933 = vmatpush1.bf16.msra.mxu1 %v2862_v56  ;;  %v431_v56 = vunpack.c.l.s4 %v3121_v55  ;;  %v2921_v55 = vld [vmem:[#allocation11 + $0x1ec] ss:$16 sps:$4 sm:$0xff]  }
 0x185   :  { %934 = vmatprep.subr.bf16.mxu1 %v2867_v57 }
 0x186   :  { %v432_v57 = vunpack.c.0.s8 %v431_v56  ;;  %v2919_v56 = vld [vmem:[#allocation11 + $0x1e8] ss:$16 sps:$4 sm:$0xff]  }
 0x188   :  { %935 = vmatpush1.bf16.msra.mxu1 %v2865_v58 }
 0x189   :  { %936 = vmatprep.subr.bf16.mxu1 %v2870_v59  ;;  %v3282_v59 = vsub.s32 %v432_v57, %v3257_v1  ;;  %v3298_v57 = vld [vmem:[#allocation13 + $0x4] ss:$8 sm:$0xf] }
 0x18c   :  { %937 = vmatpush1.bf16.msra.mxu1 %v2868_v60 }
 0x18d   :  { %938 = vmatprep.subr.bf16.mxu1 %v2873_v61 }
 0x190   :  { %939 = vmatpush1.bf16.msra.mxu1 %v2871_v62 }
 0x191   :  { %949 = vmatprep.subr.bf16.mxu1 %v2876_v63  ;;  %v378_v63 = vld [vmem:[#allocation13 + $0x2] ss:$8 sm:$0x3] }
 0x226   :  { %v370_v7 = vpop.f32.mrb[0].mxu1 }
 0x227   :  { %v3267_v8 = vadd.f32 %v370_v7, %v249_v5  ;;  %v372_v9 = vpop.f32.mrb[1].mxu1 }
 0x228   :  { %v3269_v10 = vadd.f32 %v372_v9, %v253_v6  ;;  %v374_v11 = vpop.f32.mrb[2].mxu1 }
 0x229   :  { %v382_v12 = vsel %vm381_vm3, %v3267_v8, 0.0  ;;  %v399_v13 = vmul.f32 %v3267_v8, %v3267_v8  ;;  %v375_v14 = vpop.f32.mrb[3].mxu1 }
 0x22a   :  { %v383_v15 = vrot.slane %v382_v12, 4  ;;  %v389_v16 = vsel %vm381_vm3, %v3269_v10, 0.0  ;;  %v400_v17 = vmul.f32 %v3269_v10, %v3269_v10 }
 0x22b   :  { %v401_v18 = vsel %vm381_vm3, %v399_v13, 0.0  ;;  %v390_v19 = vrot.slane %v389_v16, 4 }
 0x22c   :  { %v384_v20 = vadd.f32 %v383_v15, %v382_v12  ;;  %v402_v21 = vrot.slane %v401_v18, 4  ;;  %v408_v22 = vsel %vm381_vm3, %v400_v17, 0.0  ;;  %v380_v15 = vld [vmem:[#allocation13 + $0x3] ss:$8 sm:$0x3] }
 0x22d   :  { %v391_v23 = vadd.f32 %v390_v19, %v389_v16  ;;  %v409_v24 = vrot.slane %v408_v22, 4 }
 0x22e   :  { %v385_v25 = vrot.slane %v384_v20, 2  ;;  %v403_v26 = vadd.f32 %v402_v21, %v401_v18 }
 0x22f   :  { %v392_v27 = vrot.slane %v391_v23, 2  ;;  %v410_v28 = vadd.f32 %v409_v24, %v408_v22 }
 0x230   :  { %v386_v29 = vadd.f32 %v385_v25, %v384_v20  ;;  %v404_v30 = vrot.slane %v403_v26, 2  ;;  %v2874_v25 = vld [vmem:[#allocation11 + $0x8] ss:$16 sps:$4 sm:$0xff]  }
 0x231   :  { %v393_v31 = vadd.f32 %v392_v27, %v391_v23  ;;  %v411_v32 = vrot.slane %v410_v28, 2  ;;  %v2879_v27 = vld [vmem:[#allocation11 + $0x2c] ss:$16 sps:$4 sm:$0xff]  }
 0x232   :  { %v387_v33 = vrot.slane %v386_v29, 1  ;;  %v405_v34 = vadd.f32 %v404_v30, %v403_v26  ;;  %v2880_v30 = vld [vmem:[#allocation11 + $0x48] ss:$16 sps:$4 sm:$0xff]  }
 0x233   :  { %v394_v35 = vrot.slane %v393_v31, 1  ;;  %v412_v36 = vadd.f32 %v411_v32, %v410_v28  ;;  %v2877_v28 = vld [vmem:[#allocation11 + $0x28] ss:$16 sps:$4 sm:$0xff]  }
 0x234   :  { %v388_v37 = vadd.f32 %v387_v33, %v386_v29  ;;  %v406_v38 = vrot.slane %v405_v34, 1  ;;  %v2882_v29 = vld [vmem:[#allocation11 + $0x4c] ss:$16 sps:$4 sm:$0xff]   ;;  %v2883_v32 = vld [vmem:[#allocation11 + $0x68] ss:$16 sps:$4 sm:$0xff]  }
 0x235   :  { %v395_v39 = vadd.f32 %v394_v35, %v393_v31  ;;  %v413_v40 = vrot.slane %v412_v36, 1  ;;  %v2885_v31 = vld [vmem:[#allocation11 + $0x6c] ss:$16 sps:$4 sm:$0xff]  }
 0x236   :  { %v397_v41 = vmul.f32 0.5, %v388_v37  ;;  %v407_v42 = vadd.f32 %v406_v38, %v405_v34  ;;  %v2888_v33 = vld [vmem:[#allocation11 + $0x8c] ss:$16 sps:$4 sm:$0xff]   ;;  %v2886_v34 = vld [vmem:[#allocation11 + $0x88] ss:$16 sps:$4 sm:$0xff]  }
 0x237   :  { %v398_v43 = vmul.f32 0.5, %v395_v39  ;;  %v414_v44 = vadd.f32 %v413_v40, %v412_v36  ;;  %v2891_v35 = vld [vmem:[#allocation11 + $0xac] ss:$16 sps:$4 sm:$0xff]   ;;  %v2889_v36 = vld [vmem:[#allocation11 + $0xa8] ss:$16 sps:$4 sm:$0xff]  }
 0x238   :  { %v415_v45 = vmul.f32 0.5, %v407_v42  ;;  %v417_v46 = vmul.f32 %v397_v41, %v397_v41  ;;  %v2894_v37 = vld [vmem:[#allocation11 + $0xcc] ss:$16 sps:$4 sm:$0xff]   ;;  %v2892_v38 = vld [vmem:[#allocation11 + $0xc8] ss:$16 sps:$4 sm:$0xff]  }
 0x239   :  { %v416_v47 = vmul.f32 0.5, %v414_v44  ;;  %v418_v48 = vmul.f32 %v398_v43, %v398_v43  ;;  %v2897_v39 = vld [vmem:[#allocation11 + $0xec] ss:$16 sps:$4 sm:$0xff]   ;;  %v2895_v40 = vld [vmem:[#allocation11 + $0xe8] ss:$16 sps:$4 sm:$0xff]  }
 0x23a   :  { %v419_v49 = vsub.f32 %v415_v45, %v417_v46  ;;  %v2898_v42 = vld [vmem:[#allocation11 + $0x108] ss:$16 sps:$4 sm:$0xff]   ;;  %v2906_v45 = vld [vmem:[#allocation11 + $0x14c] ss:$16 sps:$4 sm:$0xff]  }
 0x23b   :  { %v420_v50 = vsub.f32 %v416_v47, %v418_v48  ;;  %v2901_v44 = vld [vmem:[#allocation11 + $0x128] ss:$16 sps:$4 sm:$0xff]   ;;  %v2909_v47 = vld [vmem:[#allocation11 + $0x16c] ss:$16 sps:$4 sm:$0xff]  }
 0x23c   :  { %v421_v51 = vmax.f32 %v419_v49, 0.0  ;;  %v2904_v46 = vld [vmem:[#allocation11 + $0x148] ss:$16 sps:$4 sm:$0xff]   ;;  %v2912_v49 = vld [vmem:[#allocation11 + $0x18c] ss:$16 sps:$4 sm:$0xff]  }
 0x23d   :  { %v422_v52 = vmax.f32 %v420_v50, 0.0  ;;  %v2907_v48 = vld [vmem:[#allocation11 + $0x168] ss:$16 sps:$4 sm:$0xff]  }
 0x23e   :  { %v423_v53 = vadd.f32 0.8, %v421_v51  ;;  %v2910_v50 = vld [vmem:[#allocation11 + $0x188] ss:$16 sps:$4 sm:$0xff]   ;;  %v2915_v51 = vld [vmem:[#allocation11 + $0x1ac] ss:$16 sps:$4 sm:$0xff]  }
 0x23f   :  { %v424_v54 = vadd.f32 0.8, %v422_v52  ;;  %v2913_v52 = vld [vmem:[#allocation11 + $0x1a8] ss:$16 sps:$4 sm:$0xff]  }
 0x240   :  { %2922 = vrsqrt.f32 %v423_v53  ;;  %v2918_v53 = vld [vmem:[#allocation11 + $0x1cc] ss:$16 sps:$4 sm:$0xff]  }
 0x241   :  { %2924 = vrsqrt.f32 %v424_v54  ;;  %v2916_v54 = vld [vmem:[#allocation11 + $0x1c8] ss:$16 sps:$4 sm:$0xff]  }
 0x24a   :  { %v2923_v58 = vpop.eup %2922 }
 0x24b   :  { %v2925_v60 = vpop.eup %2924 }
 0x24c   :  { %v429_v61 = vcombine.low %v2923_v58, %v2925_v60  ;;  %v571_v58 = vrot.slane %v3298_v57, %v3260_v2  ;;  %v575_v60 = vrot.slane %v3298_v57, %v3263_v4 }
 0x24e   :  { %v436_v62 = vrot.slane %v429_v61, %v3282_v59 }
 0x250   :  { %v443_v0 = vrot.slane %v436_v62, %v3282_v59 }
 0x252   :  { %v445_v3 = vmul.f32 %v443_v0, %v378_v63 }
 0x254   :  { %v450_v5 = vrot.slane %v445_v3, %v3260_v2  ;;  %v454_v6 = vrot.slane %v445_v3, %v3263_v4 }
 0x256   :  { %v457_v7 = vmul.f32 %v450_v5, %v397_v41  ;;  %v458_v9 = vmul.f32 %v454_v6, %v398_v43  ;;  %v478_v11 = vmul.f32 %v450_v5, %v3267_v8  ;;  %v479_v12 = vmul.f32 %v454_v6, %v3269_v10  ;;  %v2900_v41 = vld [vmem:[#allocation11 + $0x10c] ss:$16 sps:$4 sm:$0xff]  }
 0x257   :  { %v2903_v43 = vld [vmem:[#allocation11 + $0x12c] ss:$16 sps:$4 sm:$0xff]  }
 0x258   :  { %v461_v13 = vcombine.low %v457_v7, %v458_v9 }
 0x25a   :  { %v468_v14 = vrot.slane %v461_v13, %v3282_v59 }
 0x25c   :  { %v475_v16 = vrot.slane %v468_v14, %v3282_v59 }
 0x25e   :  { %v477_v17 = vsub.f32 %v380_v15, %v475_v16 }
 0x260   :  { %v484_v18 = vrot.slane %v477_v17, %v3260_v2  ;;  %v488_v19 = vrot.slane %v477_v17, %v3263_v4 }
 0x262   :  { %v492_v20 = vadd.f32 %v488_v19, %v479_v12  ;;  %v491_v21 = vadd.f32 %v484_v18, %v478_v11 }
 0x264   :  { %vm494_vm4 = vcmp.gt.f32.partialorder %v492_v20, 0.0  ;;  %v496_v22 = vmul.f32 0.2, %v492_v20  ;;  %vm493_vm5 = vcmp.gt.f32.partialorder %v491_v21, 0.0  ;;  %v495_v23 = vmul.f32 0.2, %v491_v21 }
 0x266   :  { %v498_v8 = vsel %vm494_vm4, %v492_v20, %v496_v22  ;;  %v497_v24 = vsel %vm493_vm5, %v491_v21, %v495_v23 }
 0x267   :  { %v564_v10 = vpack.c.bf16 %v498_v8, %v498_v8  ;;  %v3294_v26 = vpack.c.bf16 %v497_v24, %v497_v24 }
 0x269   :  { %940 = vmatprep.mubr.bf16.mxu1 %v564_v10 }
 0x26a   :  { %941 = vmatmul.mubr.bf16.vlgmr.msra.gmra.mrb[4].mxu1 %v3294_v26 }
 0x26b   :  { %950 = vmatpush1.bf16.msra.mxu1 %v2874_v25  ;;  %981 = vmatprep.mubr.bf16.mxu1 %v564_v10 }
 0x26c   :  { %951 = vmatprep.subr.bf16.mxu1 %v2879_v27 }
 0x26f   :  { %952 = vmatpush1.bf16.msra.mxu1 %v2877_v28 }
 0x270   :  { %953 = vmatprep.subr.bf16.mxu1 %v2882_v29 }
 0x273   :  { %954 = vmatpush1.bf16.msra.mxu1 %v2880_v30 }
 0x274   :  { %955 = vmatprep.subr.bf16.mxu1 %v2885_v31 }
 0x277   :  { %956 = vmatpush1.bf16.msra.mxu1 %v2883_v32 }
 0x278   :  { %957 = vmatprep.subr.bf16.mxu1 %v2888_v33 }
 0x27b   :  { %958 = vmatpush1.bf16.msra.mxu1 %v2886_v34 }
 0x27c   :  { %959 = vmatprep.subr.bf16.mxu1 %v2891_v35 }
 0x27f   :  { %960 = vmatpush1.bf16.msra.mxu1 %v2889_v36 }
 0x280   :  { %961 = vmatprep.subr.bf16.mxu1 %v2894_v37 }
 0x283   :  { %962 = vmatpush1.bf16.msra.mxu1 %v2892_v38 }
 0x284   :  { %963 = vmatprep.subr.bf16.mxu1 %v2897_v39 }
 0x287   :  { %964 = vmatpush1.bf16.msra.mxu1 %v2895_v40 }
 0x288   :  { %965 = vmatprep.subr.bf16.mxu1 %v2900_v41 }
 0x28b   :  { %966 = vmatpush1.bf16.msra.mxu1 %v2898_v42 }
 0x28c   :  { %967 = vmatprep.subr.bf16.mxu1 %v2903_v43 }
 0x28f   :  { %968 = vmatpush1.bf16.msra.mxu1 %v2901_v44 }
 0x290   :  { %969 = vmatprep.subr.bf16.mxu1 %v2906_v45 }
 0x293   :  { %970 = vmatpush1.bf16.msra.mxu1 %v2904_v46 }
 0x294   :  { %971 = vmatprep.subr.bf16.mxu1 %v2909_v47 }
 0x297   :  { %972 = vmatpush1.bf16.msra.mxu1 %v2907_v48 }
 0x298   :  { %973 = vmatprep.subr.bf16.mxu1 %v2912_v49 }
 0x29b   :  { %974 = vmatpush1.bf16.msra.mxu1 %v2910_v50 }
 0x29c   :  { %975 = vmatprep.subr.bf16.mxu1 %v2915_v51  ;;  %v3327_v51 = vsub.s32 2, %v3257_v1 }
 0x29f   :  { %976 = vmatpush1.bf16.msra.mxu1 %v2913_v52  ;;  %v3330_v52 = vsub.s32 3, %v3257_v1 }
 0x2a0   :  { %977 = vmatprep.subr.bf16.mxu1 %v2918_v53  ;;  %v579_v53 = vrot.slane %v3298_v57, %v3327_v51 }
 0x2a3   :  { %978 = vmatpush1.bf16.msra.mxu1 %v2916_v54  ;;  %v583_v54 = vrot.slane %v3298_v57, %v3330_v52 }
 0x2a4   :  { %979 = vmatprep.subr.bf16.mxu1 %v2921_v55 }
 0x2a7   :  { %980 = vmatpush1.bf16.msra.mxu1 %v2919_v56 }
 0x2aa   :  { %982 = vmatmul.mubr.bf16.vlgmr.msra.gmra.mrb[8].mxu1 %v3294_v26 }
 0x33d   :  { %v942_v61 = vpop.f32.mrb[4].mxu1 }
 0x33e   :  { %v3304_v62 = vadd.f32 %v942_v61, %v571_v58  ;;  %v944_v63 = vpop.f32.mrb[5].mxu1 }
 0x33f   :  { %v3306_v0 = vadd.f32 %v944_v63, %v575_v60  ;;  %v946_v3 = vpop.f32.mrb[6].mxu1 }
 0x340   :  { %v994_v5 = vsel %vm381_vm3, %v3304_v62, 0.0  ;;  %v1026_v6 = vmul.f32 %v3304_v62, %v3304_v62  ;;  %v947_v7 = vpop.f32.mrb[7].mxu1 }
 0x341   :  { %v995_v9 = vrot.slane %v994_v5, 4  ;;  %v1001_v11 = vsel %vm381_vm3, %v3306_v0, 0.0  ;;  %v1027_v12 = vmul.f32 %v3306_v0, %v3306_v0 }
 0x342   :  { %v1030_v13 = vsel %vm381_vm3, %v1026_v6, 0.0  ;;  %v1002_v14 = vrot.slane %v1001_v11, 4 }
 0x343   :  { %v996_v15 = vadd.f32 %v995_v9, %v994_v5  ;;  %v1031_v16 = vrot.slane %v1030_v13, 4  ;;  %v1037_v17 = vsel %vm381_vm3, %v1027_v12, 0.0 }
 0x344   :  { %v1003_v18 = vadd.f32 %v1002_v14, %v1001_v11  ;;  %v1038_v19 = vrot.slane %v1037_v17, 4 }
 0x345   :  { %v997_v20 = vrot.slane %v996_v15, 2  ;;  %v1032_v21 = vadd.f32 %v1031_v16, %v1030_v13 }
 0x346   :  { %v1004_v22 = vrot.slane %v1003_v18, 2  ;;  %v1039_v23 = vadd.f32 %v1038_v19, %v1037_v17 }
 0x347   :  { %v998_v8 = vadd.f32 %v997_v20, %v996_v15  ;;  %v1033_v24 = vrot.slane %v1032_v21, 2 }
 0x348   :  { %v1005_v10 = vadd.f32 %v1004_v22, %v1003_v18  ;;  %v1040_v25 = vrot.slane %v1039_v23, 2 }
 0x349   :  { %v999_v26 = vrot.slane %v998_v8, 1  ;;  %v1034_v27 = vadd.f32 %v1033_v24, %v1032_v21 }
 0x34a   :  { %v1006_v28 = vrot.slane %v1005_v10, 1  ;;  %v1041_v29 = vadd.f32 %v1040_v25, %v1039_v23 }
 0x34b   :  { %v1000_v30 = vadd.f32 %v999_v26, %v998_v8  ;;  %v1035_v31 = vrot.slane %v1034_v27, 1 }
 0x34c   :  { %v1007_v32 = vadd.f32 %v1006_v28, %v1005_v10  ;;  %v1042_v33 = vrot.slane %v1041_v29, 1 }
 0x34d   :  { %v3318_v34 = vmul.f32 0.5, %v1000_v30  ;;  %v1036_v35 = vadd.f32 %v1035_v31, %v1034_v27 }
 0x34e   :  { %v3320_v36 = vmul.f32 0.5, %v1007_v32  ;;  %v1043_v37 = vadd.f32 %v1042_v33, %v1041_v29 }
 0x34f   :  { %v1058_v38 = vmul.f32 0.5, %v1036_v35  ;;  %v1062_v39 = vmul.f32 %v3318_v34, %v3318_v34 }
 0x350   :  { %v1059_v40 = vmul.f32 0.5, %v1043_v37  ;;  %v1063_v41 = vmul.f32 %v3320_v36, %v3320_v36 }
 0x351   :  { %v1066_v42 = vsub.f32 %v1058_v38, %v1062_v39 }
 0x352   :  { %v1067_v43 = vsub.f32 %v1059_v40, %v1063_v41 }
 0x353   :  { %v1070_v44 = vmax.f32 %v1066_v42, 0.0 }
 0x354   :  { %v1071_v45 = vmax.f32 %v1067_v43, 0.0 }
 0x355   :  { %v1074_v46 = vadd.f32 0.8, %v1070_v44 }
 0x356   :  { %v1075_v47 = vadd.f32 0.8, %v1071_v45 }
 0x357   :  { %2926 = vrsqrt.f32 %v1074_v46 }
 0x358   :  { %2928 = vrsqrt.f32 %v1075_v47 }
 0x361   :  { %v2927_v48 = vpop.eup %2926 }
 0x362   :  { %v2929_v49 = vpop.eup %2928 }
 0x363   :  { %v1086_v50 = vcombine.low %v2927_v48, %v2929_v49 }
 0x37d   :  { %v983_v55 = vpop.f32.mrb[8].mxu1 }
 0x37e   :  { %v3336_v56 = vadd.f32 %v983_v55, %v579_v53  ;;  %v985_v58 = vpop.f32.mrb[9].mxu1  ;;  %v1094_v53 = vrot.slane %v1086_v50, %v3282_v59 }
 0x37f   :  { %v3338_v60 = vadd.f32 %v985_v58, %v583_v54  ;;  %v987_v61 = vpop.f32.mrb[10].mxu1  ;;  %v991_v58 = vld [vmem:[#allocation13 + $0x5] ss:$8 sm:$0xf] }
 0x380   :  { %v1008_v63 = vsel %vm381_vm3, %v3336_v56, 0.0  ;;  %v1028_v3 = vmul.f32 %v3336_v56, %v3336_v56  ;;  %v988_v5 = vpop.f32.mrb[11].mxu1 }
 0x381   :  { %v1009_v6 = vrot.slane %v1008_v63, 4  ;;  %v1015_v7 = vsel %vm381_vm3, %v3338_v60, 0.0  ;;  %v1029_v57 = vmul.f32 %v3338_v60, %v3338_v60 }
 0x382   :  { %v1044_v9 = vsel %vm381_vm3, %v1028_v3, 0.0  ;;  %v1016_v11 = vrot.slane %v1015_v7, 4 }
 0x383   :  { %v1010_v12 = vadd.f32 %v1009_v6, %v1008_v63  ;;  %v1045_v13 = vrot.slane %v1044_v9, 4  ;;  %v1051_v14 = vsel %vm381_vm3, %v1029_v57, 0.0 }
 0x384   :  { %v1017_v15 = vadd.f32 %v1016_v11, %v1015_v7  ;;  %v1052_v16 = vrot.slane %v1051_v14, 4 }
 0x385   :  { %v1011_v17 = vrot.slane %v1010_v12, 2  ;;  %v1046_v18 = vadd.f32 %v1045_v13, %v1044_v9 }
 0x386   :  { %v1018_v19 = vrot.slane %v1017_v15, 2  ;;  %v1053_v20 = vadd.f32 %v1052_v16, %v1051_v14 }
 0x387   :  { %v1012_v21 = vadd.f32 %v1011_v17, %v1010_v12  ;;  %v1047_v22 = vrot.slane %v1046_v18, 2 }
 0x388   :  { %v1019_v23 = vadd.f32 %v1018_v19, %v1017_v15  ;;  %v1054_v8 = vrot.slane %v1053_v20, 2 }
 0x389   :  { %v1013_v24 = vrot.slane %v1012_v21, 1  ;;  %v1048_v10 = vadd.f32 %v1047_v22, %v1046_v18 }
 0x38a   :  { %v1020_v25 = vrot.slane %v1019_v23, 1  ;;  %v1055_v26 = vadd.f32 %v1054_v8, %v1053_v20 }
 0x38b   :  { %v1014_v27 = vadd.f32 %v1013_v24, %v1012_v21  ;;  %v1049_v28 = vrot.slane %v1048_v10, 1 }
 0x38c   :  { %v1021_v29 = vadd.f32 %v1020_v25, %v1019_v23  ;;  %v1056_v30 = vrot.slane %v1055_v26, 1 }
 0x38d   :  { %v1024_v31 = vmul.f32 0.5, %v1014_v27  ;;  %v1050_v32 = vadd.f32 %v1049_v28, %v1048_v10 }
 0x38e   :  { %v1025_v33 = vmul.f32 0.5, %v1021_v29  ;;  %v1057_v35 = vadd.f32 %v1056_v30, %v1055_v26 }
 0x38f   :  { %v1060_v37 = vmul.f32 0.5, %v1050_v32  ;;  %v1064_v38 = vmul.f32 %v1024_v31, %v1024_v31 }
 0x390   :  { %v1061_v39 = vmul.f32 0.5, %v1057_v35  ;;  %v1065_v40 = vmul.f32 %v1025_v33, %v1025_v33 }
 0x391   :  { %v1068_v41 = vsub.f32 %v1060_v37, %v1064_v38 }
 0x392   :  { %v1069_v42 = vsub.f32 %v1061_v39, %v1065_v40 }
 0x393   :  { %v1072_v43 = vmax.f32 %v1068_v41, 0.0 }
 0x394   :  { %v1073_v44 = vmax.f32 %v1069_v42, 0.0 }
 0x395   :  { %v1076_v45 = vadd.f32 0.8, %v1072_v43 }
 0x396   :  { %v1077_v46 = vadd.f32 0.8, %v1073_v44 }
 0x397   :  { %2930 = vrsqrt.f32 %v1076_v45 }
 0x398   :  { %2932 = vrsqrt.f32 %v1077_v46 }
 0x3a1   :  { %v2931_v47 = vpop.eup %2930 }
 0x3a2   :  { %v2933_v48 = vpop.eup %2932 }
 0x3a3   :  { %v1087_v49 = vcombine.low %v2931_v47, %v2933_v48 }
 0x3a5   :  { %v1101_v54 = vrot.slane %v1087_v49, %v3282_v59 }
 0x3a7   :  { %v1102_v55 = vcombine.low %v1094_v53, %v1101_v54 }
 0x3a9   :  { %v1109_v61 = vrot.slane %v1102_v55, %v3282_v59 }
 0x3ab   :  { %v1111_v63 = vmul.f32 %v1109_v61, %v991_v58 }
 0x3ad   :  { %v1116_v3 = vrot.slane %v1111_v63, %v3260_v2  ;;  %v1120_v5 = vrot.slane %v1111_v63, %v3263_v4  ;;  %v1124_v6 = vrot.slane %v1111_v63, %v3327_v51  ;;  %v1128_v7 = vrot.slane %v1111_v63, %v3330_v52 }
 0x3af   :  { %v1133_v57 = vmul.f32 %v1116_v3, %v3318_v34  ;;  %v1134_v9 = vmul.f32 %v1120_v5, %v3320_v36  ;;  %v1135_v50 = vmul.f32 %v1124_v6, %v1024_v31  ;;  %v1136_v11 = vmul.f32 %v1128_v7, %v1025_v33  ;;  %v993_v34 = vld [vmem:[#allocation13 + $0x6] ss:$8 sm:$0xf] }
 0x3b0   :  { %v1167_v12 = vmul.f32 %v1116_v3, %v3304_v62  ;;  %v1168_v13 = vmul.f32 %v1120_v5, %v3306_v0  ;;  %v1169_v14 = vmul.f32 %v1124_v6, %v3336_v56  ;;  %v1170_v15 = vmul.f32 %v1128_v7, %v3338_v60 }
 0x3b1   :  { %v1141_v16 = vcombine.low %v1133_v57, %v1134_v9  ;;  %v1142_v17 = vcombine.low %v1135_v50, %v1136_v11 }
 0x3b3   :  { %v1149_v18 = vrot.slane %v1141_v16, %v3282_v59  ;;  %v1156_v19 = vrot.slane %v1142_v17, %v3282_v59 }
 0x3b5   :  { %v1157_v20 = vcombine.low %v1149_v18, %v1156_v19 }
 0x3b7   :  { %v1164_v36 = vrot.slane %v1157_v20, %v3282_v59 }
 0x3b9   :  { %v1166_v21 = vsub.f32 %v993_v34, %v1164_v36 }
 0x3bb   :  { %v1175_v22 = vrot.slane %v1166_v21, %v3260_v2  ;;  %v1179_v62 = vrot.slane %v1166_v21, %v3263_v4  ;;  %v1183_v0 = vrot.slane %v1166_v21, %v3327_v51  ;;  %v1187_v56 = vrot.slane %v1166_v21, %v3330_v52 }
 0x3bd   :  { %v1192_v60 = vadd.f32 %v1175_v22, %v1167_v12  ;;  %v1193_v23 = vadd.f32 %v1179_v62, %v1168_v13  ;;  %v1194_v8 = vadd.f32 %v1183_v0, %v1169_v14  ;;  %v1195_v24 = vadd.f32 %v1187_v56, %v1170_v15 }
 0x3bf   :  { %vm1196_vm6 = vcmp.gt.f32.partialorder %v1192_v60, 0.0  ;;  %vm1197_vm7 = vcmp.gt.f32.partialorder %v1193_v23, 0.0  ;;  %vm1198_vm8 = vcmp.gt.f32.partialorder %v1194_v8, 0.0  ;;  %vm1199_vm9 = vcmp.gt.f32.partialorder %v1195_v24, 0.0 }
 0x3c0   :  { %v1200_v10 = vmul.f32 0.2, %v1192_v60  ;;  %v1201_v25 = vmul.f32 0.2, %v1193_v23  ;;  %v1202_v26 = vmul.f32 0.2, %v1194_v8 }
 0x3c1   :  { %v1203_v27 = vmul.f32 0.2, %v1195_v24 }
 0x3c2   :  { %v3370_v28 = vsel %vm1196_vm6, %v1192_v60, %v1200_v10  ;;  %v1205_v29 = vsel %vm1197_vm7, %v1193_v23, %v1201_v25  ;;  %v3372_v30 = vsel %vm1198_vm8, %v1194_v8, %v1202_v26 }
 0x3c3   :  { %v1207_v31 = vsel %vm1199_vm9, %v1195_v24, %v1203_v27 }
 0x3c4   :  { %3092 = dma.done.wait [#allocation4], 32768 }
 0x3c5   :  { %3093 = vsyncadd [#allocation4], 4294934528  ;;  %v3374_v32 = vpack.c.bf16 %v1205_v29, %v1205_v29  ;;  %v3376_v33 = vpack.c.bf16 %v1207_v31, %v1207_v31  ;;  %v1213_v35 = vld [vmem:[#allocation2 + $0x8] sm:$0xff]  ;;  %v1212_v37 = vld [vmem:[#allocation2] sm:$0xff] }
 0x3c6   :  { %v1341_v38 = vld [vmem:[#allocation2 + $0x408] sm:$0xff]  ;;  %1517 = vmatprep.subr.bf16.mxu1 %v1213_v35  ;;  %v1340_v39 = vld [vmem:[#allocation2 + $0x400] sm:$0xff] }
 0x3c7   :  { %1549 = vmatprep.mubr.bf16.mxu1 %v3374_v32  ;;  %1590 = vmatprep.mubr.bf16.mxu0 %v3376_v33  ;;  %v1221_v40 = vld [vmem:[#allocation2 + $0x48] sm:$0xff]  ;;  %v1220_v42 = vld [vmem:[#allocation2 + $0x40] sm:$0xff] }
 0x3c8   :  { %1558 = vmatprep.subr.bf16.mxu0 %v1341_v38  ;;  %1518 = vmatpush1.bf16.msra.mxu1 %v1212_v37  ;;  %v1349_v41 = vld [vmem:[#allocation2 + $0x448] sm:$0xff]  ;;  %v1348_v43 = vld [vmem:[#allocation2 + $0x440] sm:$0xff] }
 0x3c9   :  { %1559 = vmatpush1.bf16.msra.mxu0 %v1340_v39  ;;  %1519 = vmatprep.subr.bf16.mxu1 %v1221_v40  ;;  %v1229_v44 = vld [vmem:[#allocation2 + $0x88] sm:$0xff]  ;;  %v1228_v46 = vld [vmem:[#allocation2 + $0x80] sm:$0xff] }
 0x3ca   :  { %1560 = vmatprep.subr.bf16.mxu0 %v1349_v41  ;;  %v1357_v45 = vld [vmem:[#allocation2 + $0x488] sm:$0xff]  ;;  %v1356_v47 = vld [vmem:[#allocation2 + $0x480] sm:$0xff] }
 0x3cb   :  { %v1237_v48 = vld [vmem:[#allocation2 + $0xc8] sm:$0xff]  ;;  %v1236_v53 = vld [vmem:[#allocation2 + $0xc0] sm:$0xff] }
 0x3cc   :  { %1520 = vmatpush1.bf16.msra.mxu1 %v1220_v42  ;;  %v1365_v49 = vld [vmem:[#allocation2 + $0x4c8] sm:$0xff]  ;;  %v1364_v54 = vld [vmem:[#allocation2 + $0x4c0] sm:$0xff] }
 0x3cd   :  { %1561 = vmatpush1.bf16.msra.mxu0 %v1348_v43  ;;  %1521 = vmatprep.subr.bf16.mxu1 %v1229_v44  ;;  %v1245_v55 = vld [vmem:[#allocation2 + $0x108] sm:$0xff]  ;;  %v1244_v61 = vld [vmem:[#allocation2 + $0x100] sm:$0xff] }
 0x3ce   :  { %1562 = vmatprep.subr.bf16.mxu0 %v1357_v45  ;;  %v1373_v58 = vld [vmem:[#allocation2 + $0x508] sm:$0xff]  ;;  %v1372_v63 = vld [vmem:[#allocation2 + $0x500] sm:$0xff] }
 0x3cf   :  { %v1253_v3 = vld [vmem:[#allocation2 + $0x148] sm:$0xff]  ;;  %v1252_v6 = vld [vmem:[#allocation2 + $0x140] sm:$0xff] }
 0x3d0   :  { %1522 = vmatpush1.bf16.msra.mxu1 %v1228_v46  ;;  %v1381_v5 = vld [vmem:[#allocation2 + $0x548] sm:$0xff]  ;;  %v1380_v7 = vld [vmem:[#allocation2 + $0x540] sm:$0xff]  ;;  %v1215_v46 = vld [vmem:[#allocation2 + $0x18] sm:$0xff] }
 0x3d1   :  { %1563 = vmatpush1.bf16.msra.mxu0 %v1356_v47  ;;  %1523 = vmatprep.subr.bf16.mxu1 %v1237_v48  ;;  %v1261_v57 = vld [vmem:[#allocation2 + $0x188] sm:$0xff]  ;;  %v1260_v50 = vld [vmem:[#allocation2 + $0x180] sm:$0xff]  ;;  %v3382_v48 = vpack.c.bf16 %v3370_v28, %v3370_v28  ;;  %v1222_v28 = vld [vmem:[#allocation2 + $0x50] sm:$0xff] }
 0x3d2   :  { %1564 = vmatprep.subr.bf16.mxu0 %v1365_v49  ;;  %v1389_v9 = vld [vmem:[#allocation2 + $0x588] sm:$0xff]  ;;  %v1388_v11 = vld [vmem:[#allocation2 + $0x580] sm:$0xff]  ;;  %v3386_v49 = vpack.c.bf16 %v3372_v30, %v3372_v30  ;;  %v1231_v30 = vld [vmem:[#allocation2 + $0x98] sm:$0xff] }
 0x3d3   :  { %v1269_v12 = vld [vmem:[#allocation2 + $0x1c8] sm:$0xff]  ;;  %v1268_v14 = vld [vmem:[#allocation2 + $0x1c0] sm:$0xff] }
 0x3d4   :  { %1524 = vmatpush1.bf16.msra.mxu1 %v1236_v53  ;;  %v1397_v13 = vld [vmem:[#allocation2 + $0x5c8] sm:$0xff]  ;;  %v1396_v15 = vld [vmem:[#allocation2 + $0x5c0] sm:$0xff]  ;;  %v1214_v53 = vld [vmem:[#allocation2 + $0x10] sm:$0xff] }
 0x3d5   :  { %1565 = vmatpush1.bf16.msra.mxu0 %v1364_v54  ;;  %1525 = vmatprep.subr.bf16.mxu1 %v1245_v55  ;;  %v1277_v16 = vld [vmem:[#allocation2 + $0x208] sm:$0xff]  ;;  %v1276_v18 = vld [vmem:[#allocation2 + $0x200] sm:$0xff]  ;;  %v1223_v55 = vld [vmem:[#allocation2 + $0x58] sm:$0xff] }
 0x3d6   :  { %1566 = vmatprep.subr.bf16.mxu0 %v1373_v58  ;;  %v1405_v17 = vld [vmem:[#allocation2 + $0x608] sm:$0xff]  ;;  %v1404_v19 = vld [vmem:[#allocation2 + $0x600] sm:$0xff] }
 0x3d7   :  { %v1285_v20 = vld [vmem:[#allocation2 + $0x248] sm:$0xff]  ;;  %v1284_v36 = vld [vmem:[#allocation2 + $0x240] sm:$0xff] }
 0x3d8   :  { %1526 = vmatpush1.bf16.msra.mxu1 %v1244_v61  ;;  %v1413_v34 = vld [vmem:[#allocation2 + $0x648] sm:$0xff]  ;;  %v1412_v21 = vld [vmem:[#allocation2 + $0x640] sm:$0xff] }
 0x3d9   :  { %1567 = vmatpush1.bf16.msra.mxu0 %v1372_v63  ;;  %1527 = vmatprep.subr.bf16.mxu1 %v1253_v3  ;;  %v1293_v22 = vld [vmem:[#allocation2 + $0x288] sm:$0xff]  ;;  %v1292_v0 = vld [vmem:[#allocation2 + $0x280] sm:$0xff]  ;;  %v1230_v3 = vld [vmem:[#allocation2 + $0x90] sm:$0xff] }
 0x3da   :  { %1568 = vmatprep.subr.bf16.mxu0 %v1381_v5  ;;  %v1421_v62 = vld [vmem:[#allocation2 + $0x688] sm:$0xff]  ;;  %v1420_v56 = vld [vmem:[#allocation2 + $0x680] sm:$0xff] }
 0x3db   :  { %v1301_v60 = vld [vmem:[#allocation2 + $0x2c8] sm:$0xff]  ;;  %v1300_v8 = vld [vmem:[#allocation2 + $0x2c0] sm:$0xff] }
 0x3dc   :  { %1528 = vmatpush1.bf16.msra.mxu1 %v1252_v6  ;;  %v1429_v23 = vld [vmem:[#allocation2 + $0x6c8] sm:$0xff]  ;;  %v1428_v24 = vld [vmem:[#allocation2 + $0x6c0] sm:$0xff]  ;;  %v1239_v6 = vld [vmem:[#allocation2 + $0xd8] sm:$0xff] }
 0x3dd   :  { %1569 = vmatpush1.bf16.msra.mxu0 %v1380_v7  ;;  %1529 = vmatprep.subr.bf16.mxu1 %v1261_v57  ;;  %v1309_v10 = vld [vmem:[#allocation2 + $0x308] sm:$0xff]  ;;  %v1308_v26 = vld [vmem:[#allocation2 + $0x300] sm:$0xff]  ;;  %v1238_v57 = vld [vmem:[#allocation2 + $0xd0] sm:$0xff] }
 0x3de   :  { %1570 = vmatprep.subr.bf16.mxu0 %v1389_v9  ;;  %v1437_v25 = vld [vmem:[#allocation2 + $0x708] sm:$0xff]  ;;  %v1436_v27 = vld [vmem:[#allocation2 + $0x700] sm:$0xff] }
 0x3df   :  { %v1317_v29 = vld [vmem:[#allocation2 + $0x348] sm:$0xff]  ;;  %v1316_v35 = vld [vmem:[#allocation2 + $0x340] sm:$0xff] }
 0x3e0   :  { %1530 = vmatpush1.bf16.msra.mxu1 %v1260_v50  ;;  %v1445_v31 = vld [vmem:[#allocation2 + $0x748] sm:$0xff]  ;;  %v1444_v37 = vld [vmem:[#allocation2 + $0x740] sm:$0xff]  ;;  %v1247_v50 = vld [vmem:[#allocation2 + $0x118] sm:$0xff] }
 0x3e1   :  { %1571 = vmatpush1.bf16.msra.mxu0 %v1388_v11  ;;  %1531 = vmatprep.subr.bf16.mxu1 %v1269_v12  ;;  %v1325_v38 = vld [vmem:[#allocation2 + $0x388] sm:$0xff]  ;;  %v1324_v40 = vld [vmem:[#allocation2 + $0x380] sm:$0xff]  ;;  %v1246_v12 = vld [vmem:[#allocation2 + $0x110] sm:$0xff] }
 0x3e2   :  { %1572 = vmatprep.subr.bf16.mxu0 %v1397_v13  ;;  %v1453_v39 = vld [vmem:[#allocation2 + $0x788] sm:$0xff]  ;;  %v1452_v41 = vld [vmem:[#allocation2 + $0x780] sm:$0xff] }
 0x3e3   :  { %v1333_v42 = vld [vmem:[#allocation2 + $0x3c8] sm:$0xff]  ;;  %v1332_v44 = vld [vmem:[#allocation2 + $0x3c0] sm:$0xff] }
 0x3e4   :  { %1532 = vmatpush1.bf16.msra.mxu1 %v1268_v14  ;;  %v1461_v43 = vld [vmem:[#allocation2 + $0x7c8] sm:$0xff]  ;;  %v1460_v45 = vld [vmem:[#allocation2 + $0x7c0] sm:$0xff]  ;;  %v1255_v14 = vld [vmem:[#allocation2 + $0x158] sm:$0xff] }
 0x3e5   :  { %1573 = vmatpush1.bf16.msra.mxu0 %v1396_v15  ;;  %1533 = vmatprep.subr.bf16.mxu1 %v1277_v16  ;;  %v1217_v47 = vld [vmem:[#allocation2 + $0x28] sm:$0xff]  ;;  %v1216_v54 = vld [vmem:[#allocation2 + $0x20] sm:$0xff]  ;;  %v1254_v16 = vld [vmem:[#allocation2 + $0x150] sm:$0xff] }
 0x3e6   :  { %1574 = vmatprep.subr.bf16.mxu0 %v1405_v17  ;;  %v1225_v58 = vld [vmem:[#allocation2 + $0x68] sm:$0xff]  ;;  %v1224_v61 = vld [vmem:[#allocation2 + $0x60] sm:$0xff] }
 0x3e7   :  { %v1233_v63 = vld [vmem:[#allocation2 + $0xa8] sm:$0xff]  ;;  %v1232_v5 = vld [vmem:[#allocation2 + $0xa0] sm:$0xff] }
 0x3e8   :  { %1534 = vmatpush1.bf16.msra.mxu1 %v1276_v18  ;;  %v1241_v7 = vld [vmem:[#allocation2 + $0xe8] sm:$0xff]  ;;  %v1240_v9 = vld [vmem:[#allocation2 + $0xe0] sm:$0xff]  ;;  %v1263_v18 = vld [vmem:[#allocation2 + $0x198] sm:$0xff] }
 0x3e9   :  { %1575 = vmatpush1.bf16.msra.mxu0 %v1404_v19  ;;  %1535 = vmatprep.subr.bf16.mxu1 %v1285_v20  ;;  %v1249_v11 = vld [vmem:[#allocation2 + $0x128] sm:$0xff]  ;;  %v1248_v13 = vld [vmem:[#allocation2 + $0x120] sm:$0xff]  ;;  %v1262_v20 = vld [vmem:[#allocation2 + $0x190] sm:$0xff] }
 0x3ea   :  { %1576 = vmatprep.subr.bf16.mxu0 %v1413_v34  ;;  %v1257_v15 = vld [vmem:[#allocation2 + $0x168] sm:$0xff]  ;;  %v1256_v17 = vld [vmem:[#allocation2 + $0x160] sm:$0xff] }
 0x3eb   :  { %v1265_v19 = vld [vmem:[#allocation2 + $0x1a8] sm:$0xff]  ;;  %v1264_v34 = vld [vmem:[#allocation2 + $0x1a0] sm:$0xff] }
 0x3ec   :  { %1536 = vmatpush1.bf16.msra.mxu1 %v1284_v36  ;;  %v1271_v36 = vld [vmem:[#allocation2 + $0x1d8] sm:$0xff] }
 0x3ed   :  { %1577 = vmatpush1.bf16.msra.mxu0 %v1412_v21  ;;  %1537 = vmatprep.subr.bf16.mxu1 %v1293_v22  ;;  %v1273_v21 = vld [vmem:[#allocation2 + $0x1e8] sm:$0xff]  ;;  %v1270_v22 = vld [vmem:[#allocation2 + $0x1d0] sm:$0xff] }
 0x3ee   :  { %1578 = vmatprep.subr.bf16.mxu0 %v1421_v62  ;;  %v1272_v62 = vld [vmem:[#allocation2 + $0x1e0] sm:$0xff] }
 0x3f0   :  { %1538 = vmatpush1.bf16.msra.mxu1 %v1292_v0  ;;  %v1279_v0 = vld [vmem:[#allocation2 + $0x218] sm:$0xff] }
 0x3f1   :  { %1579 = vmatpush1.bf16.msra.mxu0 %v1420_v56  ;;  %1539 = vmatprep.subr.bf16.mxu1 %v1301_v60  ;;  %v1281_v56 = vld [vmem:[#allocation2 + $0x228] sm:$0xff]  ;;  %v1278_v60 = vld [vmem:[#allocation2 + $0x210] sm:$0xff] }
 0x3f2   :  { %1580 = vmatprep.subr.bf16.mxu0 %v1429_v23  ;;  %v1280_v23 = vld [vmem:[#allocation2 + $0x220] sm:$0xff] }
 0x3f4   :  { %1540 = vmatpush1.bf16.msra.mxu1 %v1300_v8  ;;  %v1287_v8 = vld [vmem:[#allocation2 + $0x258] sm:$0xff] }
 0x3f5   :  { %1581 = vmatpush1.bf16.msra.mxu0 %v1428_v24  ;;  %1541 = vmatprep.subr.bf16.mxu1 %v1309_v10  ;;  %v1289_v24 = vld [vmem:[#allocation2 + $0x268] sm:$0xff]  ;;  %v1286_v10 = vld [vmem:[#allocation2 + $0x250] sm:$0xff] }
 0x3f6   :  { %1582 = vmatprep.subr.bf16.mxu0 %v1437_v25  ;;  %v1288_v25 = vld [vmem:[#allocation2 + $0x260] sm:$0xff] }
 0x3f8   :  { %1542 = vmatpush1.bf16.msra.mxu1 %v1308_v26  ;;  %v1295_v26 = vld [vmem:[#allocation2 + $0x298] sm:$0xff] }
 0x3f9   :  { %1583 = vmatpush1.bf16.msra.mxu0 %v1436_v27  ;;  %1543 = vmatprep.subr.bf16.mxu1 %v1317_v29  ;;  %v1297_v27 = vld [vmem:[#allocation2 + $0x2a8] sm:$0xff]  ;;  %v1294_v29 = vld [vmem:[#allocation2 + $0x290] sm:$0xff] }
 0x3fa   :  { %1584 = vmatprep.subr.bf16.mxu0 %v1445_v31  ;;  %v1296_v31 = vld [vmem:[#allocation2 + $0x2a0] sm:$0xff] }
 0x3fc   :  { %1544 = vmatpush1.bf16.msra.mxu1 %v1316_v35  ;;  %v1303_v35 = vld [vmem:[#allocation2 + $0x2d8] sm:$0xff] }
 0x3fd   :  { %1585 = vmatpush1.bf16.msra.mxu0 %v1444_v37  ;;  %1545 = vmatprep.subr.bf16.mxu1 %v1325_v38  ;;  %v1305_v37 = vld [vmem:[#allocation2 + $0x2e8] sm:$0xff]  ;;  %v1302_v38 = vld [vmem:[#allocation2 + $0x2d0] sm:$0xff] }
 0x3fe   :  { %1586 = vmatprep.subr.bf16.mxu0 %v1453_v39  ;;  %v1304_v39 = vld [vmem:[#allocation2 + $0x2e0] sm:$0xff] }
 0x400   :  { %1546 = vmatpush1.bf16.msra.mxu1 %v1324_v40  ;;  %v1311_v40 = vld [vmem:[#allocation2 + $0x318] sm:$0xff] }
 0x401   :  { %1587 = vmatpush1.bf16.msra.mxu0 %v1452_v41  ;;  %1547 = vmatprep.subr.bf16.mxu1 %v1333_v42  ;;  %v1313_v41 = vld [vmem:[#allocation2 + $0x328] sm:$0xff]  ;;  %v1310_v42 = vld [vmem:[#allocation2 + $0x310] sm:$0xff] }
 0x402   :  { %1588 = vmatprep.subr.bf16.mxu0 %v1461_v43  ;;  %v1312_v43 = vld [vmem:[#allocation2 + $0x320] sm:$0xff] }
 0x404   :  { %1548 = vmatpush1.bf16.msra.mxu1 %v1332_v44  ;;  %v1319_v44 = vld [vmem:[#allocation2 + $0x358] sm:$0xff] }
 0x405   :  { %1589 = vmatpush1.bf16.msra.mxu0 %v1460_v45  ;;  %1599 = vmatprep.subr.bf16.mxu1 %v1215_v46  ;;  %v1321_v45 = vld [vmem:[#allocation2 + $0x368] sm:$0xff]  ;;  %v1318_v46 = vld [vmem:[#allocation2 + $0x350] sm:$0xff] }
 0x406   :  { %1681 = vmatprep.subr.bf16.mxu0 %v1217_v47  ;;  %v1320_v47 = vld [vmem:[#allocation2 + $0x360] sm:$0xff] }
 0x407   :  { %1550 = vmatmul.mubr.bf16.vlgmr.msra.gmra.mrb[12].mxu1 %v3382_v48 }
 0x408   :  { %1591 = vmatmul.mubr.bf16.vlgmr.msra.gmra.mrb[4].mxu0 %v3386_v49  ;;  %1600 = vmatpush1.bf16.msra.mxu1 %v1214_v53  ;;  %v1327_v53 = vld [vmem:[#allocation2 + $0x398] sm:$0xff] }
 0x409   :  { %1682 = vmatpush1.bf16.msra.mxu0 %v1216_v54  ;;  %1601 = vmatprep.subr.bf16.mxu1 %v1223_v55  ;;  %v1329_v54 = vld [vmem:[#allocation2 + $0x3a8] sm:$0xff]  ;;  %v1326_v55 = vld [vmem:[#allocation2 + $0x390] sm:$0xff] }
 0x40a   :  { %1683 = vmatprep.subr.bf16.mxu0 %v1225_v58  ;;  %1631 = vmatprep.mubr.bf16.mxu1 %v3374_v32  ;;  %v1328_v58 = vld [vmem:[#allocation2 + $0x3a0] sm:$0xff] }
 0x40b   :  { %1713 = vmatprep.mubr.bf16.mxu0 %v3374_v32 }
 0x40c   :  { %1602 = vmatpush1.bf16.msra.mxu1 %v1222_v28  ;;  %v1335_v28 = vld [vmem:[#allocation2 + $0x3d8] sm:$0xff] }
 0x40d   :  { %1684 = vmatpush1.bf16.msra.mxu0 %v1224_v61  ;;  %1603 = vmatprep.subr.bf16.mxu1 %v1231_v30  ;;  %v1337_v61 = vld [vmem:[#allocation2 + $0x3e8] sm:$0xff]  ;;  %v1334_v30 = vld [vmem:[#allocation2 + $0x3d0] sm:$0xff] }
 0x40e   :  { %1685 = vmatprep.subr.bf16.mxu0 %v1233_v63  ;;  %v1336_v63 = vld [vmem:[#allocation2 + $0x3e0] sm:$0xff] }
 0x410   :  { %1604 = vmatpush1.bf16.msra.mxu1 %v1230_v3  ;;  %v1343_v3 = vld [vmem:[#allocation2 + $0x418] sm:$0xff] }
 0x411   :  { %1686 = vmatpush1.bf16.msra.mxu0 %v1232_v5  ;;  %1605 = vmatprep.subr.bf16.mxu1 %v1239_v6  ;;  %v1345_v5 = vld [vmem:[#allocation2 + $0x428] sm:$0xff]  ;;  %v1342_v6 = vld [vmem:[#allocation2 + $0x410] sm:$0xff] }
 0x412   :  { %1687 = vmatprep.subr.bf16.mxu0 %v1241_v7  ;;  %v1344_v7 = vld [vmem:[#allocation2 + $0x420] sm:$0xff] }
 0x414   :  { %1606 = vmatpush1.bf16.msra.mxu1 %v1238_v57  ;;  %v1351_v57 = vld [vmem:[#allocation2 + $0x458] sm:$0xff] }
 0x415   :  { %1688 = vmatpush1.bf16.msra.mxu0 %v1240_v9  ;;  %1607 = vmatprep.subr.bf16.mxu1 %v1247_v50  ;;  %v1353_v9 = vld [vmem:[#allocation2 + $0x468] sm:$0xff]  ;;  %v1350_v50 = vld [vmem:[#allocation2 + $0x450] sm:$0xff] }
 0x416   :  { %1689 = vmatprep.subr.bf16.mxu0 %v1249_v11  ;;  %v1352_v11 = vld [vmem:[#allocation2 + $0x460] sm:$0xff] }
 0x418   :  { %1608 = vmatpush1.bf16.msra.mxu1 %v1246_v12  ;;  %v1359_v12 = vld [vmem:[#allocation2 + $0x498] sm:$0xff] }
 0x419   :  { %1690 = vmatpush1.bf16.msra.mxu0 %v1248_v13  ;;  %1609 = vmatprep.subr.bf16.mxu1 %v1255_v14  ;;  %v1361_v13 = vld [vmem:[#allocation2 + $0x4a8] sm:$0xff]  ;;  %v1358_v14 = vld [vmem:[#allocation2 + $0x490] sm:$0xff] }
 0x41a   :  { %1691 = vmatprep.subr.bf16.mxu0 %v1257_v15  ;;  %v1360_v15 = vld [vmem:[#allocation2 + $0x4a0] sm:$0xff] }
 0x41c   :  { %1610 = vmatpush1.bf16.msra.mxu1 %v1254_v16  ;;  %v1367_v16 = vld [vmem:[#allocation2 + $0x4d8] sm:$0xff] }
 0x41d   :  { %1692 = vmatpush1.bf16.msra.mxu0 %v1256_v17  ;;  %1611 = vmatprep.subr.bf16.mxu1 %v1263_v18  ;;  %v1369_v17 = vld [vmem:[#allocation2 + $0x4e8] sm:$0xff]  ;;  %v1366_v18 = vld [vmem:[#allocation2 + $0x4d0] sm:$0xff] }
 0x41e   :  { %1693 = vmatprep.subr.bf16.mxu0 %v1265_v19  ;;  %v1368_v19 = vld [vmem:[#allocation2 + $0x4e0] sm:$0xff] }
 0x420   :  { %1612 = vmatpush1.bf16.msra.mxu1 %v1262_v20  ;;  %v1375_v20 = vld [vmem:[#allocation2 + $0x518] sm:$0xff] }
 0x421   :  { %1694 = vmatpush1.bf16.msra.mxu0 %v1264_v34  ;;  %1613 = vmatprep.subr.bf16.mxu1 %v1271_v36  ;;  %v1377_v34 = vld [vmem:[#allocation2 + $0x528] sm:$0xff]  ;;  %v1374_v36 = vld [vmem:[#allocation2 + $0x510] sm:$0xff] }
 0x422   :  { %1695 = vmatprep.subr.bf16.mxu0 %v1273_v21  ;;  %v1376_v21 = vld [vmem:[#allocation2 + $0x520] sm:$0xff] }
 0x424   :  { %1614 = vmatpush1.bf16.msra.mxu1 %v1270_v22  ;;  %v1383_v22 = vld [vmem:[#allocation2 + $0x558] sm:$0xff] }
 0x425   :  { %1696 = vmatpush1.bf16.msra.mxu0 %v1272_v62  ;;  %1615 = vmatprep.subr.bf16.mxu1 %v1279_v0  ;;  %v1385_v62 = vld [vmem:[#allocation2 + $0x568] sm:$0xff]  ;;  %v1382_v0 = vld [vmem:[#allocation2 + $0x550] sm:$0xff] }
 0x426   :  { %1697 = vmatprep.subr.bf16.mxu0 %v1281_v56  ;;  %v1384_v56 = vld [vmem:[#allocation2 + $0x560] sm:$0xff] }
 0x428   :  { %1616 = vmatpush1.bf16.msra.mxu1 %v1278_v60  ;;  %v1391_v60 = vld [vmem:[#allocation2 + $0x598] sm:$0xff] }
 0x429   :  { %1698 = vmatpush1.bf16.msra.mxu0 %v1280_v23  ;;  %1617 = vmatprep.subr.bf16.mxu1 %v1287_v8  ;;  %v1393_v23 = vld [vmem:[#allocation2 + $0x5a8] sm:$0xff]  ;;  %v1390_v8 = vld [vmem:[#allocation2 + $0x590] sm:$0xff] }
 0x42a   :  { %1699 = vmatprep.subr.bf16.mxu0 %v1289_v24  ;;  %v1392_v24 = vld [vmem:[#allocation2 + $0x5a0] sm:$0xff] }
 0x42c   :  { %1618 = vmatpush1.bf16.msra.mxu1 %v1286_v10  ;;  %v1399_v10 = vld [vmem:[#allocation2 + $0x5d8] sm:$0xff] }
 0x42d   :  { %1700 = vmatpush1.bf16.msra.mxu0 %v1288_v25  ;;  %1619 = vmatprep.subr.bf16.mxu1 %v1295_v26  ;;  %v1401_v25 = vld [vmem:[#allocation2 + $0x5e8] sm:$0xff]  ;;  %v1398_v26 = vld [vmem:[#allocation2 + $0x5d0] sm:$0xff] }
 0x42e   :  { %1701 = vmatprep.subr.bf16.mxu0 %v1297_v27  ;;  %v1400_v27 = vld [vmem:[#allocation2 + $0x5e0] sm:$0xff] }
 0x430   :  { %1620 = vmatpush1.bf16.msra.mxu1 %v1294_v29  ;;  %v1407_v29 = vld [vmem:[#allocation2 + $0x618] sm:$0xff] }
 0x431   :  { %1702 = vmatpush1.bf16.msra.mxu0 %v1296_v31  ;;  %1621 = vmatprep.subr.bf16.mxu1 %v1303_v35  ;;  %v1409_v31 = vld [vmem:[#allocation2 + $0x628] sm:$0xff]  ;;  %v1406_v35 = vld [vmem:[#allocation2 + $0x610] sm:$0xff] }
 0x432   :  { %1703 = vmatprep.subr.bf16.mxu0 %v1305_v37  ;;  %v1408_v37 = vld [vmem:[#allocation2 + $0x620] sm:$0xff] }
 0x434   :  { %1622 = vmatpush1.bf16.msra.mxu1 %v1302_v38  ;;  %v1415_v38 = vld [vmem:[#allocation2 + $0x658] sm:$0xff] }
 0x435   :  { %1704 = vmatpush1.bf16.msra.mxu0 %v1304_v39  ;;  %1623 = vmatprep.subr.bf16.mxu1 %v1311_v40  ;;  %v1417_v39 = vld [vmem:[#allocation2 + $0x668] sm:$0xff]  ;;  %v1414_v40 = vld [vmem:[#allocation2 + $0x650] sm:$0xff] }
 0x436   :  { %1705 = vmatprep.subr.bf16.mxu0 %v1313_v41  ;;  %v1416_v41 = vld [vmem:[#allocation2 + $0x660] sm:$0xff] }
 0x438   :  { %1624 = vmatpush1.bf16.msra.mxu1 %v1310_v42  ;;  %v1423_v42 = vld [vmem:[#allocation2 + $0x698] sm:$0xff] }
 0x439   :  { %1706 = vmatpush1.bf16.msra.mxu0 %v1312_v43  ;;  %1625 = vmatprep.subr.bf16.mxu1 %v1319_v44  ;;  %v1425_v43 = vld [vmem:[#allocation2 + $0x6a8] sm:$0xff]  ;;  %v1422_v44 = vld [vmem:[#allocation2 + $0x690] sm:$0xff] }
 0x43a   :  { %1707 = vmatprep.subr.bf16.mxu0 %v1321_v45  ;;  %v1424_v45 = vld [vmem:[#allocation2 + $0x6a0] sm:$0xff] }
 0x43c   :  { %1626 = vmatpush1.bf16.msra.mxu1 %v1318_v46  ;;  %v1431_v46 = vld [vmem:[#allocation2 + $0x6d8] sm:$0xff] }
 0x43d   :  { %1708 = vmatpush1.bf16.msra.mxu0 %v1320_v47  ;;  %1627 = vmatprep.subr.bf16.mxu1 %v1327_v53  ;;  %v1433_v47 = vld [vmem:[#allocation2 + $0x6e8] sm:$0xff]  ;;  %v1430_v53 = vld [vmem:[#allocation2 + $0x6d0] sm:$0xff] }
 0x43e   :  { %1709 = vmatprep.subr.bf16.mxu0 %v1329_v54  ;;  %v1432_v54 = vld [vmem:[#allocation2 + $0x6e0] sm:$0xff] }
 0x440   :  { %1628 = vmatpush1.bf16.msra.mxu1 %v1326_v55  ;;  %v1439_v55 = vld [vmem:[#allocation2 + $0x718] sm:$0xff] }
 0x441   :  { %1710 = vmatpush1.bf16.msra.mxu0 %v1328_v58  ;;  %1629 = vmatprep.subr.bf16.mxu1 %v1335_v28  ;;  %v1441_v58 = vld [vmem:[#allocation2 + $0x728] sm:$0xff]  ;;  %v1438_v28 = vld [vmem:[#allocation2 + $0x710] sm:$0xff] }
 0x442   :  { %1711 = vmatprep.subr.bf16.mxu0 %v1337_v61  ;;  %v1440_v61 = vld [vmem:[#allocation2 + $0x720] sm:$0xff] }
 0x444   :  { %1630 = vmatpush1.bf16.msra.mxu1 %v1334_v30  ;;  %v1447_v30 = vld [vmem:[#allocation2 + $0x758] sm:$0xff] }
 0x445   :  { %1712 = vmatpush1.bf16.msra.mxu0 %v1336_v63  ;;  %1640 = vmatprep.subr.bf16.mxu1 %v1343_v3  ;;  %v1449_v63 = vld [vmem:[#allocation2 + $0x768] sm:$0xff]  ;;  %v1446_v3 = vld [vmem:[#allocation2 + $0x750] sm:$0xff] }
 0x446   :  { %1722 = vmatprep.subr.bf16.mxu0 %v1345_v5  ;;  %v1448_v5 = vld [vmem:[#allocation2 + $0x760] sm:$0xff] }
 0x447   :  { %1632 = vmatmul.mubr.bf16.vlgmr.msra.gmra.mrb[16].mxu1 %v3382_v48 }
 0x448   :  { %1714 = vmatmul.mubr.bf16.vlgmr.msra.gmra.mrb[8].mxu0 %v3382_v48  ;;  %1641 = vmatpush1.bf16.msra.mxu1 %v1342_v6  ;;  %v1455_v6 = vld [vmem:[#allocation2 + $0x798] sm:$0xff] }
 0x449   :  { %1723 = vmatpush1.bf16.msra.mxu0 %v1344_v7  ;;  %1642 = vmatprep.subr.bf16.mxu1 %v1351_v57  ;;  %v1457_v7 = vld [vmem:[#allocation2 + $0x7a8] sm:$0xff]  ;;  %v1454_v57 = vld [vmem:[#allocation2 + $0x790] sm:$0xff] }
 0x44a   :  { %1724 = vmatprep.subr.bf16.mxu0 %v1353_v9  ;;  %1672 = vmatprep.mubr.bf16.mxu1 %v3376_v33  ;;  %v1456_v9 = vld [vmem:[#allocation2 + $0x7a0] sm:$0xff] }
 0x44b   :  { %1754 = vmatprep.mubr.bf16.mxu0 %v3376_v33 }
 0x44c   :  { %1643 = vmatpush1.bf16.msra.mxu1 %v1350_v50  ;;  %v1463_v50 = vld [vmem:[#allocation2 + $0x7d8] sm:$0xff] }
 0x44d   :  { %1725 = vmatpush1.bf16.msra.mxu0 %v1352_v11  ;;  %1644 = vmatprep.subr.bf16.mxu1 %v1359_v12  ;;  %v1465_v11 = vld [vmem:[#allocation2 + $0x7e8] sm:$0xff]  ;;  %v1462_v12 = vld [vmem:[#allocation2 + $0x7d0] sm:$0xff] }
 0x44e   :  { %1726 = vmatprep.subr.bf16.mxu0 %v1361_v13  ;;  %v1464_v13 = vld [vmem:[#allocation2 + $0x7e0] sm:$0xff] }
 0x450   :  { %1645 = vmatpush1.bf16.msra.mxu1 %v1358_v14  ;;  %v1219_v14 = vld [vmem:[#allocation2 + $0x38] sm:$0xff] }
 0x451   :  { %1727 = vmatpush1.bf16.msra.mxu0 %v1360_v15  ;;  %1646 = vmatprep.subr.bf16.mxu1 %v1367_v16  ;;  %v1218_v15 = vld [vmem:[#allocation2 + $0x30] sm:$0xff]  ;;  %v1227_v16 = vld [vmem:[#allocation2 + $0x78] sm:$0xff] }
 0x452   :  { %1728 = vmatprep.subr.bf16.mxu0 %v1369_v17  ;;  %v1226_v17 = vld [vmem:[#allocation2 + $0x70] sm:$0xff] }
 0x454   :  { %1647 = vmatpush1.bf16.msra.mxu1 %v1366_v18  ;;  %v1235_v18 = vld [vmem:[#allocation2 + $0xb8] sm:$0xff] }
 0x455   :  { %1729 = vmatpush1.bf16.msra.mxu0 %v1368_v19  ;;  %1648 = vmatprep.subr.bf16.mxu1 %v1375_v20  ;;  %v1234_v19 = vld [vmem:[#allocation2 + $0xb0] sm:$0xff]  ;;  %v1243_v20 = vld [vmem:[#allocation2 + $0xf8] sm:$0xff] }
 0x456   :  { %1730 = vmatprep.subr.bf16.mxu0 %v1377_v34  ;;  %v1242_v34 = vld [vmem:[#allocation2 + $0xf0] sm:$0xff] }
 0x458   :  { %1649 = vmatpush1.bf16.msra.mxu1 %v1374_v36  ;;  %v1251_v36 = vld [vmem:[#allocation2 + $0x138] sm:$0xff] }
 0x459   :  { %1731 = vmatpush1.bf16.msra.mxu0 %v1376_v21  ;;  %1650 = vmatprep.subr.bf16.mxu1 %v1383_v22  ;;  %v1250_v21 = vld [vmem:[#allocation2 + $0x130] sm:$0xff]  ;;  %v1259_v22 = vld [vmem:[#allocation2 + $0x178] sm:$0xff] }
 0x45a   :  { %1732 = vmatprep.subr.bf16.mxu0 %v1385_v62  ;;  %v1258_v62 = vld [vmem:[#allocation2 + $0x170] sm:$0xff] }
 0x45c   :  { %1651 = vmatpush1.bf16.msra.mxu1 %v1382_v0  ;;  %v1267_v0 = vld [vmem:[#allocation2 + $0x1b8] sm:$0xff] }
 0x45d   :  { %1733 = vmatpush1.bf16.msra.mxu0 %v1384_v56  ;;  %1652 = vmatprep.subr.bf16.mxu1 %v1391_v60  ;;  %v1275_v56 = vld [vmem:[#allocation2 + $0x1f8] sm:$0xff]  ;;  %v1274_v60 = vld [vmem:[#allocation2 + $0x1f0] sm:$0xff] }
 0x45e   :  { %1734 = vmatprep.subr.bf16.mxu0 %v1393_v23  ;;  %v1283_v23 = vld [vmem:[#allocation2 + $0x238] sm:$0xff] }
 0x460   :  { %1653 = vmatpush1.bf16.msra.mxu1 %v1390_v8  ;;  %v1282_v8 = vld [vmem:[#allocation2 + $0x230] sm:$0xff] }
 0x461   :  { %1735 = vmatpush1.bf16.msra.mxu0 %v1392_v24  ;;  %1654 = vmatprep.subr.bf16.mxu1 %v1399_v10  ;;  %v1291_v24 = vld [vmem:[#allocation2 + $0x278] sm:$0xff]  ;;  %v1290_v10 = vld [vmem:[#allocation2 + $0x270] sm:$0xff] }
 0x462   :  { %1736 = vmatprep.subr.bf16.mxu0 %v1401_v25  ;;  %v1299_v25 = vld [vmem:[#allocation2 + $0x2b8] sm:$0xff] }
 0x464   :  { %1655 = vmatpush1.bf16.msra.mxu1 %v1398_v26  ;;  %v1298_v26 = vld [vmem:[#allocation2 + $0x2b0] sm:$0xff] }
 0x465   :  { %1737 = vmatpush1.bf16.msra.mxu0 %v1400_v27  ;;  %1656 = vmatprep.subr.bf16.mxu1 %v1407_v29  ;;  %v1307_v27 = vld [vmem:[#allocation2 + $0x2f8] sm:$0xff]  ;;  %v1306_v29 = vld [vmem:[#allocation2 + $0x2f0] sm:$0xff] }
 0x466   :  { %1738 = vmatprep.subr.bf16.mxu0 %v1409_v31  ;;  %v1315_v31 = vld [vmem:[#allocation2 + $0x338] sm:$0xff] }
 0x468   :  { %1657 = vmatpush1.bf16.msra.mxu1 %v1406_v35  ;;  %v1314_v35 = vld [vmem:[#allocation2 + $0x330] sm:$0xff] }
 0x469   :  { %1739 = vmatpush1.bf16.msra.mxu0 %v1408_v37  ;;  %1658 = vmatprep.subr.bf16.mxu1 %v1415_v38  ;;  %v1323_v37 = vld [vmem:[#allocation2 + $0x378] sm:$0xff]  ;;  %v1322_v38 = vld [vmem:[#allocation2 + $0x370] sm:$0xff] }
 0x46a   :  { %1740 = vmatprep.subr.bf16.mxu0 %v1417_v39  ;;  %v1331_v39 = vld [vmem:[#allocation2 + $0x3b8] sm:$0xff] }
 0x46c   :  { %1659 = vmatpush1.bf16.msra.mxu1 %v1414_v40  ;;  %v1330_v40 = vld [vmem:[#allocation2 + $0x3b0] sm:$0xff] }
 0x46d   :  { %1741 = vmatpush1.bf16.msra.mxu0 %v1416_v41  ;;  %1660 = vmatprep.subr.bf16.mxu1 %v1423_v42  ;;  %v1339_v41 = vld [vmem:[#allocation2 + $0x3f8] sm:$0xff]  ;;  %v1338_v42 = vld [vmem:[#allocation2 + $0x3f0] sm:$0xff] }
 0x46e   :  { %1742 = vmatprep.subr.bf16.mxu0 %v1425_v43  ;;  %v1347_v43 = vld [vmem:[#allocation2 + $0x438] sm:$0xff] }
 0x470   :  { %1661 = vmatpush1.bf16.msra.mxu1 %v1422_v44  ;;  %v1346_v44 = vld [vmem:[#allocation2 + $0x430] sm:$0xff] }
 0x471   :  { %1743 = vmatpush1.bf16.msra.mxu0 %v1424_v45  ;;  %1662 = vmatprep.subr.bf16.mxu1 %v1431_v46  ;;  %v1355_v45 = vld [vmem:[#allocation2 + $0x478] sm:$0xff]  ;;  %v1354_v46 = vld [vmem:[#allocation2 + $0x470] sm:$0xff] }
 0x472   :  { %1744 = vmatprep.subr.bf16.mxu0 %v1433_v47  ;;  %v1363_v47 = vld [vmem:[#allocation2 + $0x4b8] sm:$0xff] }
 0x474   :  { %1663 = vmatpush1.bf16.msra.mxu1 %v1430_v53  ;;  %v1362_v53 = vld [vmem:[#allocation2 + $0x4b0] sm:$0xff] }
 0x475   :  { %1745 = vmatpush1.bf16.msra.mxu0 %v1432_v54  ;;  %1664 = vmatprep.subr.bf16.mxu1 %v1439_v55  ;;  %v1371_v54 = vld [vmem:[#allocation2 + $0x4f8] sm:$0xff] }
 0x476   :  { %1746 = vmatprep.subr.bf16.mxu0 %v1441_v58  ;;  %v1473_v55 = vld [vmem:[#allocation13 + $0x7] ss:$8 sm:$0xf] }
 0x477   :  { %v1474_v58 = vld [vmem:[#allocation13 + $0x7] ss:$8 sm:$0xf0] }
 0x478   :  { %1665 = vmatpush1.bf16.msra.mxu1 %v1438_v28  ;;  %v1370_v28 = vld [vmem:[#allocation2 + $0x4f0] sm:$0xff] }
 0x479   :  { %1747 = vmatpush1.bf16.msra.mxu0 %v1440_v61  ;;  %1666 = vmatprep.subr.bf16.mxu1 %v1447_v30  ;;  %v1379_v61 = vld [vmem:[#allocation2 + $0x538] sm:$0xff]  ;;  %v3401_v30 = vor.u32 %v1474_v58, %v1473_v55 }
 0x47a   :  { %1748 = vmatprep.subr.bf16.mxu0 %v1449_v63  ;;  %v1387_v63 = vld [vmem:[#allocation2 + $0x578] sm:$0xff] }
 0x47c   :  { %1667 = vmatpush1.bf16.msra.mxu1 %v1446_v3  ;;  %v1484_v3 = vrot.slane %v3401_v30, %v3263_v4 }
 0x47d   :  { %1749 = vmatpush1.bf16.msra.mxu0 %v1448_v5  ;;  %1668 = vmatprep.subr.bf16.mxu1 %v1455_v6  ;;  %v1386_v5 = vld [vmem:[#allocation2 + $0x570] sm:$0xff] }
 0x47e   :  { %1750 = vmatprep.subr.bf16.mxu0 %v1457_v7 }
 0x480   :  { %1669 = vmatpush1.bf16.msra.mxu1 %v1454_v57  ;;  %v1395_v57 = vld [vmem:[#allocation2 + $0x5b8] sm:$0xff] }
 0x481   :  { %1751 = vmatpush1.bf16.msra.mxu0 %v1456_v9  ;;  %1670 = vmatprep.subr.bf16.mxu1 %v1463_v50 }
 0x482   :  { %1752 = vmatprep.subr.bf16.mxu0 %v1465_v11 }
 0x484   :  { %1671 = vmatpush1.bf16.msra.mxu1 %v1462_v12 }
 0x485   :  { %1753 = vmatpush1.bf16.msra.mxu0 %v1464_v13  ;;  %1763 = vmatprep.subr.bf16.mxu1 %v1219_v14 }
 0x487   :  { %1673 = vmatmul.mubr.bf16.vlgmr.msra.gmra.mrb[16].mxu1 %v3386_v49 }
 0x488   :  { %1755 = vmatmul.mubr.bf16.vlgmr.msra.gmra.mrb[8].mxu0 %v3386_v49  ;;  %1764 = vmatpush1.bf16.msra.mxu1 %v1218_v15 }
 0x489   :  { %1795 = vmatprep.mubr.bf16.mxu1 %v3374_v32  ;;  %1765 = vmatprep.subr.bf16.mxu1 %v1227_v16  ;;  %v1266_v32 = vld [vmem:[#allocation2 + $0x1b0] sm:$0xff] }
 0x48c   :  { %1766 = vmatpush1.bf16.msra.mxu1 %v1226_v17  ;;  %v1394_v17 = vld [vmem:[#allocation2 + $0x5b0] sm:$0xff] }
 0x48d   :  { %1767 = vmatprep.subr.bf16.mxu1 %v1235_v18 }
 0x490   :  { %1768 = vmatpush1.bf16.msra.mxu1 %v1234_v19 }
 0x491   :  { %1769 = vmatprep.subr.bf16.mxu1 %v1243_v20  ;;  %v1403_v20 = vld [vmem:[#allocation2 + $0x5f8] sm:$0xff] }
 0x494   :  { %1770 = vmatpush1.bf16.msra.mxu1 %v1242_v34 }
 0x495   :  { %1771 = vmatprep.subr.bf16.mxu1 %v1251_v36 }
 0x498   :  { %1772 = vmatpush1.bf16.msra.mxu1 %v1250_v21 }
 0x499   :  { %1773 = vmatprep.subr.bf16.mxu1 %v1259_v22 }
 0x49c   :  { %1774 = vmatpush1.bf16.msra.mxu1 %v1258_v62 }
 0x49d   :  { %1775 = vmatprep.subr.bf16.mxu1 %v1267_v0 }
 0x4a0   :  { %1776 = vmatpush1.bf16.msra.mxu1 %v1266_v32 }
 0x4a1   :  { %1777 = vmatprep.subr.bf16.mxu1 %v1275_v56  ;;  %v1402_v56 = vld [vmem:[#allocation2 + $0x5f0] sm:$0xff] }
 0x4a4   :  { %1778 = vmatpush1.bf16.msra.mxu1 %v1274_v60 }
 0x4a5   :  { %1779 = vmatprep.subr.bf16.mxu1 %v1283_v23 }
 0x4a8   :  { %1780 = vmatpush1.bf16.msra.mxu1 %v1282_v8 }
 0x4a9   :  { %1781 = vmatprep.subr.bf16.mxu1 %v1291_v24  ;;  %v1411_v24 = vld [vmem:[#allocation2 + $0x638] sm:$0xff] }
 0x4ac   :  { %1782 = vmatpush1.bf16.msra.mxu1 %v1290_v10 }
 0x4ad   :  { %1783 = vmatprep.subr.bf16.mxu1 %v1299_v25 }
 0x4b0   :  { %1784 = vmatpush1.bf16.msra.mxu1 %v1298_v26 }
 0x4b1   :  { %1785 = vmatprep.subr.bf16.mxu1 %v1307_v27 }
 0x4b4   :  { %1786 = vmatpush1.bf16.msra.mxu1 %v1306_v29 }
 0x4b5   :  { %1787 = vmatprep.subr.bf16.mxu1 %v1315_v31 }
 0x4b8   :  { %1788 = vmatpush1.bf16.msra.mxu1 %v1314_v35  ;;  %v1410_v35 = vld [vmem:[#allocation2 + $0x630] sm:$0xff] }
 0x4b9   :  { %1789 = vmatprep.subr.bf16.mxu1 %v1323_v37 }
 0x4bc   :  { %1790 = vmatpush1.bf16.msra.mxu1 %v1322_v38 }
 0x4bd   :  { %1791 = vmatprep.subr.bf16.mxu1 %v1331_v39  ;;  %v1419_v39 = vld [vmem:[#allocation2 + $0x678] sm:$0xff] }
 0x4c0   :  { %1792 = vmatpush1.bf16.msra.mxu1 %v1330_v40 }
 0x4c1   :  { %1793 = vmatprep.subr.bf16.mxu1 %v1339_v41 }
 0x4c4   :  { %1794 = vmatpush1.bf16.msra.mxu1 %v1338_v42 }
 0x4c5   :  { %1804 = vmatprep.subr.bf16.mxu1 %v1347_v43 }
 0x4c7   :  { %1796 = vmatmul.mubr.bf16.vlgmr.msra.gmra.mrb[20].mxu1 %v3382_v48  ;;  %v1378_v48 = vld [vmem:[#allocation2 + $0x530] sm:$0xff] }
 0x4c8   :  { %1805 = vmatpush1.bf16.msra.mxu1 %v1346_v44  ;;  %1836 = vmatprep.mubr.bf16.mxu1 %v3376_v33  ;;  %v1480_v33 = vrot.slane %v3401_v30, %v3260_v2 }
 0x4c9   :  { %1806 = vmatprep.subr.bf16.mxu1 %v1355_v45 }
 0x4cc   :  { %1807 = vmatpush1.bf16.msra.mxu1 %v1354_v46  ;;  %v1418_v46 = vld [vmem:[#allocation2 + $0x670] sm:$0xff] }
 0x4cd   :  { %1808 = vmatprep.subr.bf16.mxu1 %v1363_v47 }
 0x4d0   :  { %1809 = vmatpush1.bf16.msra.mxu1 %v1362_v53 }
 0x4d1   :  { %1810 = vmatprep.subr.bf16.mxu1 %v1371_v54  ;;  %v1427_v54 = vld [vmem:[#allocation2 + $0x6b8] sm:$0xff] }
 0x4d4   :  { %1811 = vmatpush1.bf16.msra.mxu1 %v1370_v28 }
 0x4d5   :  { %1812 = vmatprep.subr.bf16.mxu1 %v1379_v61 }
 0x4d8   :  { %1813 = vmatpush1.bf16.msra.mxu1 %v1378_v48 }
 0x4d9   :  { %1814 = vmatprep.subr.bf16.mxu1 %v1387_v63 }
 0x4da   :  { %v1551_v6 = vpop.f32.mrb[12].mxu1 }
 0x4db   :  { %v1592_v7 = vpop.f32.mrb[4].mxu0  ;;  %v1552_v9 = vadd.f32 %v1551_v6, %v1480_v33  ;;  %v1553_v50 = vpop.f32.mrb[13].mxu1  ;;  %v1426_v33 = vld [vmem:[#allocation2 + $0x6b0] sm:$0xff]  ;;  %v1435_v6 = vld [vmem:[#allocation2 + $0x6f8] sm:$0xff] }
 0x4dc   :  { %v1594_v11 = vpop.f32.mrb[5].mxu0  ;;  %v1554_v12 = vadd.f32 %v1553_v50, %v1484_v3  ;;  %v1555_v13 = vpop.f32.mrb[14].mxu1  ;;  %1815 = vmatpush1.bf16.msra.mxu1 %v1386_v5 }
 0x4dd   :  { %v1596_v14 = vpop.f32.mrb[6].mxu0  ;;  %v3407_v15 = vadd.f32 %v1592_v7, %v1552_v9  ;;  %v1556_v16 = vpop.f32.mrb[15].mxu1  ;;  %1816 = vmatprep.subr.bf16.mxu1 %v1395_v57  ;;  %v1443_v13 = vld [vmem:[#allocation2 + $0x738] sm:$0xff] }
 0x4de   :  { %v1597_v18 = vpop.f32.mrb[7].mxu0  ;;  %v3409_v19 = vadd.f32 %v1594_v11, %v1554_v12  ;;  %v1434_v11 = vld [vmem:[#allocation2 + $0x6f0] sm:$0xff] }
 0x4df   :  { %v1853_v34 = vsel %vm381_vm3, %v3407_v15, 0.0  ;;  %v1917_v36 = vmul.f32 %v3407_v15, %v3407_v15  ;;  %v1442_v18 = vld [vmem:[#allocation2 + $0x730] sm:$0xff] }
 0x4e0   :  { %v1854_v21 = vrot.slane %v1853_v34, 4  ;;  %v1860_v22 = vsel %vm381_vm3, %v3409_v19, 0.0  ;;  %v1918_v62 = vmul.f32 %v3409_v19, %v3409_v19  ;;  %1817 = vmatpush1.bf16.msra.mxu1 %v1394_v17 }
 0x4e1   :  { %v1925_v0 = vsel %vm381_vm3, %v1917_v36, 0.0  ;;  %v1861_v32 = vrot.slane %v1860_v22, 4  ;;  %1818 = vmatprep.subr.bf16.mxu1 %v1403_v20  ;;  %v1451_v20 = vld [vmem:[#allocation2 + $0x778] sm:$0xff] }
 0x4e2   :  { %v1855_v60 = vadd.f32 %v1854_v21, %v1853_v34  ;;  %v1926_v23 = vrot.slane %v1925_v0, 4  ;;  %v1932_v8 = vsel %vm381_vm3, %v1918_v62, 0.0  ;;  %v1450_v34 = vld [vmem:[#allocation2 + $0x770] sm:$0xff]  ;;  %v1459_v36 = vld [vmem:[#allocation2 + $0x7b8] sm:$0xff] }
 0x4e3   :  { %v1862_v10 = vadd.f32 %v1861_v32, %v1860_v22  ;;  %v1933_v25 = vrot.slane %v1932_v8, 4  ;;  %v1458_v21 = vld [vmem:[#allocation2 + $0x7b0] sm:$0xff]  ;;  %v1467_v22 = vld [vmem:[#allocation2 + $0x7f8] sm:$0xff] }
 0x4e4   :  { %v1856_v26 = vrot.slane %v1855_v60, 2  ;;  %v1927_v27 = vadd.f32 %v1926_v23, %v1925_v0  ;;  %1819 = vmatpush1.bf16.msra.mxu1 %v1402_v56  ;;  %v1466_v32 = vld [vmem:[#allocation2 + $0x7f0] sm:$0xff]  ;;  %v3440_v23 = vsub.s32 5, %v3257_v1 }
 0x4e5   :  { %v1863_v29 = vrot.slane %v1862_v10, 2  ;;  %v1934_v31 = vadd.f32 %v1933_v25, %v1932_v8  ;;  %1820 = vmatprep.subr.bf16.mxu1 %v1411_v24  ;;  %v1488_v8 = vrot.slane %v3401_v30, %v3327_v51 }
 0x4e6   :  { %v1857_v37 = vadd.f32 %v1856_v26, %v1855_v60  ;;  %v1928_v38 = vrot.slane %v1927_v27, 2  ;;  %v3437_v60 = vsub.s32 4, %v3257_v1  ;;  %v1500_v25 = vrot.slane %v3401_v30, %v3440_v23 }
 0x4e7   :  { %v1864_v40 = vadd.f32 %v1863_v29, %v1862_v10  ;;  %v1935_v41 = vrot.slane %v1934_v31, 2  ;;  %v1492_v10 = vrot.slane %v3401_v30, %v3330_v52 }
 0x4e8   :  { %v1858_v42 = vrot.slane %v1857_v37, 1  ;;  %v1929_v43 = vadd.f32 %v1928_v38, %v1927_v27  ;;  %1821 = vmatpush1.bf16.msra.mxu1 %v1410_v35  ;;  %v1496_v24 = vrot.slane %v3401_v30, %v3437_v60 }
 0x4e9   :  { %v1865_v44 = vrot.slane %v1864_v40, 1  ;;  %v1936_v45 = vadd.f32 %v1935_v41, %v1934_v31  ;;  %1822 = vmatprep.subr.bf16.mxu1 %v1419_v39 }
 0x4ea   :  { %v1859_v47 = vadd.f32 %v1858_v42, %v1857_v37  ;;  %v1930_v53 = vrot.slane %v1929_v43, 1 }
 0x4eb   :  { %v1866_v55 = vadd.f32 %v1865_v44, %v1864_v40  ;;  %v1937_v58 = vrot.slane %v1936_v45, 1 }
 0x4ec   :  { %v3421_v28 = vmul.f32 0.5, %v1859_v47  ;;  %v1931_v61 = vadd.f32 %v1930_v53, %v1929_v43  ;;  %1823 = vmatpush1.bf16.msra.mxu1 %v1418_v46 }
 0x4ed   :  { %v3423_v48 = vmul.f32 0.5, %v1866_v55  ;;  %v1938_v63 = vadd.f32 %v1937_v58, %v1936_v45  ;;  %1824 = vmatprep.subr.bf16.mxu1 %v1427_v54 }
 0x4ee   :  { %v1981_v3 = vmul.f32 0.5, %v1931_v61  ;;  %v1989_v5 = vmul.f32 %v3421_v28, %v3421_v28 }
 0x4ef   :  { %v1982_v7 = vmul.f32 0.5, %v1938_v63  ;;  %v1990_v57 = vmul.f32 %v3423_v48, %v3423_v48 }
 0x4f0   :  { %v1997_v9 = vsub.f32 %v1981_v3, %v1989_v5  ;;  %1825 = vmatpush1.bf16.msra.mxu1 %v1426_v33 }
 0x4f1   :  { %v1998_v50 = vsub.f32 %v1982_v7, %v1990_v57  ;;  %1826 = vmatprep.subr.bf16.mxu1 %v1435_v6 }
 0x4f2   :  { %v2005_v12 = vmax.f32 %v1997_v9, 0.0 }
 0x4f3   :  { %v2006_v14 = vmax.f32 %v1998_v50, 0.0 }
 0x4f4   :  { %v2013_v16 = vadd.f32 0.8, %v2005_v12  ;;  %1827 = vmatpush1.bf16.msra.mxu1 %v1434_v11 }
 0x4f5   :  { %v2014_v17 = vadd.f32 0.8, %v2006_v14  ;;  %1828 = vmatprep.subr.bf16.mxu1 %v1443_v13 }
 0x4f6   :  { %2934 = vrsqrt.f32 %v2013_v16 }
 0x4f7   :  { %2936 = vrsqrt.f32 %v2014_v17 }
 0x4f8   :  { %1829 = vmatpush1.bf16.msra.mxu1 %v1442_v18 }
 0x4f9   :  { %1830 = vmatprep.subr.bf16.mxu1 %v1451_v20 }
 0x4fc   :  { %1831 = vmatpush1.bf16.msra.mxu1 %v1450_v34 }
 0x4fd   :  { %1832 = vmatprep.subr.bf16.mxu1 %v1459_v36 }
 0x500   :  { %v3429_v62 = vpop.eup %2934  ;;  %1833 = vmatpush1.bf16.msra.mxu1 %v1458_v21 }
 0x501   :  { %v3431_v0 = vpop.eup %2936  ;;  %1834 = vmatprep.subr.bf16.mxu1 %v1467_v22 }
 0x502   :  { %v2037_v56 = vcombine.low %v3429_v62, %v3431_v0 }
 0x504   :  { %1835 = vmatpush1.bf16.msra.mxu1 %v1466_v32 }
 0x507   :  { %1837 = vmatmul.mubr.bf16.vlgmr.msra.gmra.mrb[20].mxu1 %v3386_v49 }
 0x55a   :  { %v1674_v26 = vpop.f32.mrb[16].mxu1 }
 0x55b   :  { %v1756_v49 = vpop.f32.mrb[8].mxu0  ;;  %v3450_v27 = vadd.f32 %v1674_v26, %v1488_v8  ;;  %v1676_v29 = vpop.f32.mrb[17].mxu1 }
 0x55c   :  { %v3452_v31 = vadd.f32 %v1756_v49, %v1496_v24  ;;  %v1758_v35 = vpop.f32.mrb[9].mxu0  ;;  %v3454_v37 = vadd.f32 %v1676_v29, %v1492_v10  ;;  %v1678_v38 = vpop.f32.mrb[18].mxu1 }
 0x55d   :  { %v3456_v39 = vadd.f32 %v1758_v35, %v1500_v25  ;;  %v1760_v40 = vpop.f32.mrb[10].mxu0  ;;  %v1867_v41 = vsel %vm381_vm3, %v3450_v27, 0.0  ;;  %v1919_v42 = vmul.f32 %v3450_v27, %v3450_v27  ;;  %v1679_v43 = vpop.f32.mrb[19].mxu1 }
 0x55e   :  { %v1881_v44 = vsel %vm381_vm3, %v3452_v31, 0.0  ;;  %v1921_v45 = vmul.f32 %v3452_v31, %v3452_v31  ;;  %v1761_v46 = vpop.f32.mrb[11].mxu0  ;;  %v1868_v47 = vrot.slane %v1867_v41, 4  ;;  %v1874_v53 = vsel %vm381_vm3, %v3454_v37, 0.0 }
 0x55f   :  { %v1920_v54 = vmul.f32 %v3454_v37, %v3454_v37  ;;  %v1882_v55 = vrot.slane %v1881_v44, 4  ;;  %v1939_v58 = vsel %vm381_vm3, %v1919_v42, 0.0  ;;  %v1875_v61 = vrot.slane %v1874_v53, 4 }
 0x560   :  { %v1953_v63 = vsel %vm381_vm3, %v1921_v45, 0.0  ;;  %v1888_v33 = vsel %vm381_vm3, %v3456_v39, 0.0  ;;  %v1869_v3 = vadd.f32 %v1868_v47, %v1867_v41  ;;  %v1940_v5 = vrot.slane %v1939_v58, 4 }
 0x561   :  { %v1946_v6 = vsel %vm381_vm3, %v1920_v54, 0.0  ;;  %v1883_v7 = vadd.f32 %v1882_v55, %v1881_v44  ;;  %v1876_v57 = vadd.f32 %v1875_v61, %v1874_v53  ;;  %v1954_v50 = vrot.slane %v1953_v63, 4 }
 0x562   :  { %v1947_v9 = vrot.slane %v1946_v6, 4  ;;  %v1889_v11 = vrot.slane %v1888_v33, 4  ;;  %v1870_v12 = vrot.slane %v1869_v3, 2  ;;  %v1941_v13 = vadd.f32 %v1940_v5, %v1939_v58 }
 0x563   :  { %v1884_v14 = vrot.slane %v1883_v7, 2  ;;  %v1922_v16 = vmul.f32 %v3456_v39, %v3456_v39  ;;  %v1877_v17 = vrot.slane %v1876_v57, 2  ;;  %v1955_v20 = vadd.f32 %v1954_v50, %v1953_v63 }
 0x564   :  { %v1948_v18 = vadd.f32 %v1947_v9, %v1946_v6  ;;  %v1890_v34 = vadd.f32 %v1889_v11, %v1888_v33  ;;  %v1871_v36 = vadd.f32 %v1870_v12, %v1869_v3  ;;  %v1942_v21 = vrot.slane %v1941_v13, 2 }
 0x565   :  { %v1885_v22 = vadd.f32 %v1884_v14, %v1883_v7  ;;  %v1960_v32 = vsel %vm381_vm3, %v1922_v16, 0.0  ;;  %v1878_v8 = vadd.f32 %v1877_v17, %v1876_v57  ;;  %v1956_v10 = vrot.slane %v1955_v20, 2 }
 0x566   :  { %v1949_v24 = vrot.slane %v1948_v18, 2  ;;  %v1891_v25 = vrot.slane %v1890_v34, 2  ;;  %v1872_v26 = vrot.slane %v1871_v36, 1  ;;  %v1943_v49 = vadd.f32 %v1942_v21, %v1941_v13 }
 0x567   :  { %v1886_v29 = vrot.slane %v1885_v22, 1  ;;  %v1961_v35 = vrot.slane %v1960_v32, 4  ;;  %v1879_v38 = vrot.slane %v1878_v8, 1  ;;  %v1957_v41 = vadd.f32 %v1956_v10, %v1955_v20 }
 0x568   :  { %v1950_v40 = vadd.f32 %v1949_v24, %v1948_v18  ;;  %v1892_v42 = vadd.f32 %v1891_v25, %v1890_v34  ;;  %v1873_v43 = vadd.f32 %v1872_v26, %v1871_v36  ;;  %v1944_v44 = vrot.slane %v1943_v49, 1 }
 0x569   :  { %v1887_v45 = vadd.f32 %v1886_v29, %v1885_v22  ;;  %v1962_v46 = vadd.f32 %v1961_v35, %v1960_v32  ;;  %v1880_v47 = vadd.f32 %v1879_v38, %v1878_v8  ;;  %v1958_v54 = vrot.slane %v1957_v41, 1 }
 0x56a   :  { %v1951_v53 = vrot.slane %v1950_v40, 1  ;;  %v1893_v55 = vrot.slane %v1892_v42, 1  ;;  %v3478_v58 = vmul.f32 0.5, %v1873_v43  ;;  %v1945_v61 = vadd.f32 %v1944_v44, %v1943_v49 }
 0x56b   :  { %v3480_v63 = vmul.f32 0.5, %v1887_v45  ;;  %v1963_v33 = vrot.slane %v1962_v46, 2  ;;  %v3482_v3 = vmul.f32 0.5, %v1880_v47  ;;  %v1959_v6 = vadd.f32 %v1958_v54, %v1957_v41 }
 0x56c   :  { %v1952_v5 = vadd.f32 %v1951_v53, %v1950_v40  ;;  %v1894_v7 = vadd.f32 %v1893_v55, %v1892_v42  ;;  %v1983_v57 = vmul.f32 0.5, %v1945_v61  ;;  %v1991_v9 = vmul.f32 %v3478_v58, %v3478_v58 }
 0x56d   :  { %v1993_v50 = vmul.f32 %v3480_v63, %v3480_v63  ;;  %v1964_v11 = vadd.f32 %v1963_v33, %v1962_v46  ;;  %v1992_v13 = vmul.f32 %v3482_v3, %v3482_v3  ;;  %v1985_v14 = vmul.f32 0.5, %v1959_v6 }
 0x56e   :  { %v1984_v12 = vmul.f32 0.5, %v1952_v5  ;;  %v3490_v16 = vmul.f32 0.5, %v1894_v7  ;;  %v1999_v17 = vsub.f32 %v1983_v57, %v1991_v9  ;;  %v3500_v43 = vrot.slane %v2037_v56, %v3282_v59 }
 0x56f   :  { %v1965_v18 = vrot.slane %v1964_v11, 1  ;;  %v2001_v34 = vsub.f32 %v1985_v14, %v1993_v50  ;;  %v3509_v53 = vsub.s32 6, %v3257_v1  ;;  %v3512_v54 = vsub.s32 7, %v3257_v1 }
 0x570   :  { %v2000_v20 = vsub.f32 %v1984_v12, %v1992_v13  ;;  %v2007_v36 = vmax.f32 %v1999_v17, 0.0  ;;  %v1994_v22 = vmul.f32 %v3490_v16, %v3490_v16 }
 0x571   :  { %v1966_v21 = vadd.f32 %v1965_v18, %v1964_v11  ;;  %v2009_v8 = vmax.f32 %v2001_v34, 0.0  ;;  %v1504_v62 = vrot.slane %v3401_v30, %v3509_v53  ;;  %v1508_v0 = vrot.slane %v3401_v30, %v3512_v54 }
 0x572   :  { %v2008_v32 = vmax.f32 %v2000_v20, 0.0  ;;  %v2015_v24 = vadd.f32 0.8, %v2007_v36 }
 0x573   :  { %v1986_v10 = vmul.f32 0.5, %v1966_v21  ;;  %v2017_v26 = vadd.f32 0.8, %v2009_v8 }
 0x574   :  { %v2016_v25 = vadd.f32 0.8, %v2008_v32  ;;  %2938 = vrsqrt.f32 %v2015_v24 }
 0x575   :  { %v2002_v49 = vsub.f32 %v1986_v10, %v1994_v22 }
 0x576   :  { %2940 = vrsqrt.f32 %v2016_v25 }
 0x577   :  { %v2010_v29 = vmax.f32 %v2002_v49, 0.0  ;;  %2942 = vrsqrt.f32 %v2017_v26 }
 0x579   :  { %v2018_v35 = vadd.f32 0.8, %v2010_v29 }
 0x57b   :  { %2944 = vrsqrt.f32 %v2018_v35 }
 0x57e   :  { %v2939_v38 = vpop.eup %2938 }
 0x580   :  { %v2941_v40 = vpop.eup %2940 }
 0x581   :  { %v2038_v41 = vcombine.low %v2939_v38, %v2941_v40  ;;  %v3494_v42 = vpop.eup %2942 }
 0x583   :  { %v3503_v44 = vrot.slane %v2038_v41, %v3282_v59 }
 0x585   :  { %v2945_v45 = vpop.eup %2944  ;;  %v2069_v46 = vcombine.low %v3500_v43, %v3503_v44 }
 0x586   :  { %v2039_v47 = vcombine.low %v3494_v42, %v2945_v45 }
 0x5da   :  { %v1838_v56 = vpop.f32.mrb[20].mxu1 }
 0x5db   :  { %v3518_v55 = vadd.f32 %v1838_v56, %v1504_v62  ;;  %v1840_v61 = vpop.f32.mrb[21].mxu1 }
 0x5dc   :  { %v3520_v33 = vadd.f32 %v1840_v61, %v1508_v0  ;;  %v1842_v5 = vpop.f32.mrb[22].mxu1 }
 0x5dd   :  { %v1895_v6 = vsel %vm381_vm3, %v3518_v55, 0.0  ;;  %v1923_v1 = vmul.f32 %v3518_v55, %v3518_v55  ;;  %v1843_v7 = vpop.f32.mrb[23].mxu1 }
 0x5de   :  { %v1896_v57 = vrot.slane %v1895_v6, 4  ;;  %v1902_v9 = vsel %vm381_vm3, %v3520_v33, 0.0  ;;  %v1924_v30 = vmul.f32 %v3520_v33, %v3520_v33 }
 0x5df   :  { %v1967_v50 = vsel %vm381_vm3, %v1923_v1, 0.0  ;;  %v1903_v11 = vrot.slane %v1902_v9, 4 }
 0x5e0   :  { %v1897_v12 = vadd.f32 %v1896_v57, %v1895_v6  ;;  %v1968_v13 = vrot.slane %v1967_v50, 4  ;;  %v1974_v14 = vsel %vm381_vm3, %v1924_v30, 0.0 }
 0x5e1   :  { %v1904_v17 = vadd.f32 %v1903_v11, %v1902_v9  ;;  %v1975_v18 = vrot.slane %v1974_v14, 4 }
 0x5e2   :  { %v1898_v20 = vrot.slane %v1897_v12, 2  ;;  %v1969_v34 = vadd.f32 %v1968_v13, %v1967_v50  ;;  %v2061_v13 = vrot.slane %v2039_v47, %v3282_v59 }
 0x5e3   :  { %v1905_v36 = vrot.slane %v1904_v17, 2  ;;  %v1976_v21 = vadd.f32 %v1975_v18, %v1974_v14  ;;  %v1847_v18 = vld [vmem:[#allocation13 + $0x40] ss:$8 sm:$0xf0] }
 0x5e4   :  { %v1899_v22 = vadd.f32 %v1898_v20, %v1897_v12  ;;  %v1970_v32 = vrot.slane %v1969_v34, 2 }
 0x5e5   :  { %v1906_v8 = vadd.f32 %v1905_v36, %v1904_v17  ;;  %v1977_v24 = vrot.slane %v1976_v21, 2  ;;  %v1846_v17 = vld [vmem:[#allocation13 + $0x40] ss:$8 sm:$0xf] }
 0x5e6   :  { %v1900_v10 = vrot.slane %v1899_v22, 1  ;;  %v1971_v25 = vadd.f32 %v1970_v32, %v1969_v34  ;;  %v2077_v34 = vrot.slane %v2069_v46, %v3282_v59  ;;  %v1848_v36 = vor.u32 %v1847_v18, %v1846_v17 }
 0x5e7   :  { %v1907_v26 = vrot.slane %v1906_v8, 1  ;;  %v1978_v49 = vadd.f32 %v1977_v24, %v1976_v21 }
 0x5e8   :  { %v1901_v29 = vadd.f32 %v1900_v10, %v1899_v22  ;;  %v1972_v35 = vrot.slane %v1971_v25, 1 }
 0x5e9   :  { %v1908_v38 = vadd.f32 %v1907_v26, %v1906_v8  ;;  %v1979_v40 = vrot.slane %v1978_v49, 1 }
 0x5ea   :  { %v1915_v41 = vmul.f32 0.5, %v1901_v29  ;;  %v1973_v42 = vadd.f32 %v1972_v35, %v1971_v25 }
 0x5eb   :  { %v1916_v45 = vmul.f32 0.5, %v1908_v38  ;;  %v1980_v62 = vadd.f32 %v1979_v40, %v1978_v49 }
 0x5ec   :  { %v1987_v0 = vmul.f32 0.5, %v1973_v42  ;;  %v1995_v56 = vmul.f32 %v1915_v41, %v1915_v41 }
 0x5ed   :  { %v1988_v61 = vmul.f32 0.5, %v1980_v62  ;;  %v1996_v5 = vmul.f32 %v1916_v45, %v1916_v45 }
 0x5ee   :  { %v2003_v6 = vsub.f32 %v1987_v0, %v1995_v56 }
 0x5ef   :  { %v2004_v1 = vsub.f32 %v1988_v61, %v1996_v5 }
 0x5f0   :  { %v2011_v7 = vmax.f32 %v2003_v6, 0.0 }
 0x5f1   :  { %v2012_v57 = vmax.f32 %v2004_v1, 0.0 }
 0x5f2   :  { %v2019_v9 = vadd.f32 0.8, %v2011_v7  ;;  %v1850_v7 = vld [vmem:[#allocation13 + $0x41] ss:$8 sm:$0xf] }
 0x5f3   :  { %v2020_v30 = vadd.f32 0.8, %v2012_v57 }
 0x5f4   :  { %2946 = vrsqrt.f32 %v2019_v9 }
 0x5f5   :  { %2948 = vrsqrt.f32 %v2020_v30 }
 0x5fe   :  { %v2947_v50 = vpop.eup %2946 }
 0x5ff   :  { %v2949_v11 = vpop.eup %2948 }
 0x600   :  { %v2040_v12 = vcombine.low %v2947_v50, %v2949_v11 }
 0x602   :  { %v2068_v14 = vrot.slane %v2040_v12, %v3282_v59 }
 0x604   :  { %v2070_v20 = vcombine.low %v2061_v13, %v2068_v14 }
 0x606   :  { %v2084_v21 = vrot.slane %v2070_v20, %v3282_v59 }
 0x608   :  { %v2085_v22 = vcombine.low %v2077_v34, %v2084_v21 }
 0x60a   :  { %v2087_v32 = vmul.f32 %v2085_v22, %v1848_v36 }
 0x60c   :  { %v2092_v8 = vrot.slane %v2087_v32, %v3260_v2  ;;  %v2096_v24 = vrot.slane %v2087_v32, %v3263_v4  ;;  %v2100_v47 = vrot.slane %v2087_v32, %v3327_v51  ;;  %v2104_v10 = vrot.slane %v2087_v32, %v3330_v52 }
 0x60d   :  { %v2108_v25 = vrot.slane %v2087_v32, %v3437_v60  ;;  %v2112_v26 = vrot.slane %v2087_v32, %v3440_v23  ;;  %v2116_v43 = vrot.slane %v2087_v32, %v3509_v53  ;;  %v2120_v44 = vrot.slane %v2087_v32, %v3512_v54 }
 0x60e   :  { %v2129_v46 = vmul.f32 %v2092_v8, %v3421_v28  ;;  %v2130_v49 = vmul.f32 %v2096_v24, %v3423_v48  ;;  %v2131_v29 = vmul.f32 %v2100_v47, %v3478_v58  ;;  %v2132_v35 = vmul.f32 %v2104_v10, %v3482_v3 }
 0x60f   :  { %v2133_v38 = vmul.f32 %v2108_v25, %v3480_v63  ;;  %v2134_v40 = vmul.f32 %v2112_v26, %v3490_v16  ;;  %v2135_v42 = vmul.f32 %v2116_v43, %v1915_v41  ;;  %v2136_v62 = vmul.f32 %v2120_v44, %v1916_v45 }
 0x610   :  { %v2145_v0 = vcombine.low %v2129_v46, %v2130_v49  ;;  %v2146_v56 = vcombine.low %v2131_v29, %v2132_v35  ;;  %v2196_v61 = vmul.f32 %v2092_v8, %v3407_v15  ;;  %v2197_v5 = vmul.f32 %v2096_v24, %v3409_v19 }
 0x611   :  { %v2147_v6 = vcombine.low %v2133_v38, %v2134_v40  ;;  %v2148_v28 = vcombine.low %v2135_v42, %v2136_v62  ;;  %v2198_v48 = vmul.f32 %v3450_v27, %v2100_v47  ;;  %v2199_v58 = vmul.f32 %v3454_v37, %v2104_v10  ;;  %v1851_v27 = vld [vmem:[#allocation13 + $0x41] ss:$8 sm:$0xf0] }
 0x612   :  { %v2155_v3 = vrot.slane %v2145_v0, %v3282_v59  ;;  %v2162_v63 = vrot.slane %v2146_v56, %v3282_v59  ;;  %v2200_v16 = vmul.f32 %v3452_v31, %v2108_v25  ;;  %v2201_v41 = vmul.f32 %v3456_v39, %v2112_v26 }
 0x613   :  { %v2169_v45 = vrot.slane %v2147_v6, %v3282_v59  ;;  %v2176_v15 = vrot.slane %v2148_v28, %v3282_v59  ;;  %v2202_v19 = vmul.f32 %v3518_v55, %v2116_v43  ;;  %v2203_v1 = vmul.f32 %v3520_v33, %v2120_v44 }
 0x614   :  { %v2177_v57 = vcombine.low %v2155_v3, %v2162_v63  ;;  %v1852_v30 = vor.u32 %v1851_v27, %v1850_v7 }
 0x615   :  { %v2178_v37 = vcombine.low %v2169_v45, %v2176_v15 }
 0x616   :  { %v2185_v9 = vrot.slane %v2177_v57, %v3282_v59 }
 0x617   :  { %v2192_v50 = vrot.slane %v2178_v37, %v3282_v59 }
 0x619   :  { %v2193_v31 = vcombine.low %v2185_v9, %v2192_v50 }
 0x61b   :  { %v2195_v11 = vsub.f32 %v1852_v30, %v2193_v31 }
 0x61d   :  { %v2208_v39 = vrot.slane %v2195_v11, %v3260_v2  ;;  %v2212_v12 = vrot.slane %v2195_v11, %v3263_v4  ;;  %v2216_v13 = vrot.slane %v2195_v11, %v3327_v51  ;;  %v2220_v55 = vrot.slane %v2195_v11, %v3330_v52 }
 0x61e   :  { %v2224_v33 = vrot.slane %v2195_v11, %v3437_v60  ;;  %v2228_v14 = vrot.slane %v2195_v11, %v3440_v23  ;;  %v2232_v17 = vrot.slane %v2195_v11, %v3509_v53  ;;  %v2236_v18 = vrot.slane %v2195_v11, %v3512_v54 }
 0x61f   :  { %v2245_v20 = vadd.f32 %v2208_v39, %v2196_v61  ;;  %v2246_v59 = vadd.f32 %v2212_v12, %v2197_v5  ;;  %v2247_v34 = vadd.f32 %v2216_v13, %v2198_v48  ;;  %v2248_v36 = vadd.f32 %v2220_v55, %v2199_v58 }
 0x620   :  { %v2249_v21 = vadd.f32 %v2224_v33, %v2200_v16  ;;  %v2250_v22 = vadd.f32 %v2228_v14, %v2201_v41  ;;  %v2251_v32 = vadd.f32 %v2232_v17, %v2202_v19  ;;  %v2252_v8 = vadd.f32 %v2236_v18, %v2203_v1 }
 0x621   :  { %vm2253_vm10 = vcmp.gt.f32.partialorder %v2245_v20, 0.0  ;;  %vm2254_vm11 = vcmp.gt.f32.partialorder %v2246_v59, 0.0  ;;  %vm2255_vm12 = vcmp.gt.f32.partialorder %v2247_v34, 0.0  ;;  %vm2256_vm13 = vcmp.gt.f32.partialorder %v2248_v36, 0.0 }
 0x622   :  { %vm2257_vm14 = vcmp.gt.f32.partialorder %v2249_v21, 0.0  ;;  %vm2258_vm15 = vcmp.gt.f32.partialorder %v2250_v22, 0.0  ;;  %vm2259_vm0 = vcmp.gt.f32.partialorder %v2251_v32, 0.0  ;;  %vm2260_vm1 = vcmp.gt.f32.partialorder %v2252_v8, 0.0 }
 0x623   :  { %v2261_v51 = vmul.f32 0.2, %v2245_v20  ;;  %v2262_v52 = vmul.f32 0.2, %v2246_v59  ;;  %v2263_v60 = vmul.f32 0.2, %v2247_v34 }
 0x624   :  { %v2264_v23 = vmul.f32 0.2, %v2248_v36  ;;  %v2265_v53 = vmul.f32 0.2, %v2249_v21  ;;  %v2266_v54 = vmul.f32 0.2, %v2250_v22 }
 0x625   :  { %v2267_v24 = vmul.f32 0.2, %v2251_v32  ;;  %v2268_v47 = vmul.f32 0.2, %v2252_v8  ;;  %v3576_v10 = vsel %vm2253_vm10, %v2245_v20, %v2261_v51  ;;  %v2270_v25 = vsel %vm2254_vm11, %v2246_v59, %v2262_v52 }
 0x626   :  { %v3580_v26 = vsel %vm2255_vm12, %v2247_v34, %v2263_v60  ;;  %v3583_v43 = vsel %vm2256_vm13, %v2248_v36, %v2264_v23  ;;  %v3586_v44 = vsel %vm2257_vm14, %v2249_v21, %v2265_v53  ;;  %v3589_v46 = vsel %vm2258_vm15, %v2250_v22, %v2266_v54 }
 0x627   :  { %v3592_v49 = vsel %vm2259_vm0, %v2251_v32, %v2267_v24  ;;  %v3595_v29 = vsel %vm2260_vm1, %v2252_v8, %v2268_v47 }
 0x628   :  { %3094 = dma.done.wait [#allocation4 + $0x1], 16384 }
 0x629   :  { %3095 = vsyncadd [#allocation4 + $0x1], 4294950912  ;;  %v2410_v35 = vpack.c.bf16 %v2270_v25, %v2270_v25  ;;  %v2282_v38 = vld [vmem:[#allocation3 + $0x8] sm:$0xff]  ;;  %v2281_v40 = vld [vmem:[#allocation3] sm:$0xff]  ;;  %v2409_v33 = vpack.c.bf16 %v3576_v10, %v3576_v10  ;;  %v2412_v14 = vpack.c.bf16 %v3583_v43, %v3583_v43  ;;  %s3122_s5 = smov [#allocation14]  }
 0x62a   :  { %v2284_v42 = vld [vmem:[#allocation3 + $0x18] sm:$0xff]  ;;  %2430 = vmatprep.subr.bf16.mxu0 %v2282_v38  ;;  %v2283_v62 = vld [vmem:[#allocation3 + $0x10] sm:$0xff]  ;;  %v2286_v0 = vld [vmem:[#allocation3 + $0x28] sm:$0xff]  ;;  %s2614_s11 = sshll.u32 %s3122_s5, 4  ;;  %s2615_s11 = int_to_ptr.vmem [resolvable:$true] %s2614_s11 }
 0x62b   :  { %2462 = vmatprep.mubr.bf16.mxu0 %v2410_v35  ;;  %2431 = vmatpush1.bf16.msra.mxu0 %v2281_v40  ;;  %v2285_v56 = vld [vmem:[#allocation3 + $0x20] sm:$0xff]  ;;  %v2288_v61 = vld [vmem:[#allocation3 + $0x38] sm:$0xff]  ;;  %v2287_v5 = vld [vmem:[#allocation3 + $0x30] sm:$0xff]  ;;  %s3064_s12 = scalar_lea.vmem %s2615_s11, 64  ;;  %p3069_p13 = scmp.lt.s32.totalorder %s2615_s11, %s2615_s11 }
 0x62c   :  { %2432 = vmatprep.subr.bf16.mxu0 %v2284_v42  ;;  %v2290_v6 = vld [vmem:[#allocation3 + $0x48] sm:$0xff]  ;;  %v2289_v28 = vld [vmem:[#allocation3 + $0x40] sm:$0xff]  ;;  %v2292_v48 = vld [vmem:[#allocation3 + $0x58] sm:$0xff]  ;;  %p3065_p12 = scmp.ne.s32.totalorder %s2615_s11, %s3064_s12  ;;  %p3070_p0 = scmp.lt.s32.totalorder %s3064_s12, %s3064_s12 }
 0x62d   :  { %v2291_v58 = vld [vmem:[#allocation3 + $0x50] sm:$0xff]  ;;  %v2294_v3 = vld [vmem:[#allocation3 + $0x68] sm:$0xff]  ;;  %v2293_v63 = vld [vmem:[#allocation3 + $0x60] sm:$0xff] }
 0x62e   :  { %v2296_v16 = vld [vmem:[#allocation3 + $0x78] sm:$0xff]  ;;  %v2295_v41 = vld [vmem:[#allocation3 + $0x70] sm:$0xff]  ;;  %v2298_v45 = vld [vmem:[#allocation3 + $0x88] sm:$0xff]  ;;  %p3071_p1 = por %p3070_p0, %p3069_p13 }
 0x62f   :  { %2433 = vmatpush1.bf16.msra.mxu0 %v2283_v62  ;;  %v2297_v15 = vld [vmem:[#allocation3 + $0x80] sm:$0xff]  ;;  %v2300_v19 = vld [vmem:[#allocation3 + $0x98] sm:$0xff]  ;;  %v2299_v1 = vld [vmem:[#allocation3 + $0x90] sm:$0xff] }
 0x630   :  { %2434 = vmatprep.subr.bf16.mxu0 %v2286_v0  ;;  %v2302_v7 = vld [vmem:[#allocation3 + $0xa8] sm:$0xff]  ;;  %v2301_v27 = vld [vmem:[#allocation3 + $0xa0] sm:$0xff]  ;;  %v2304_v57 = vld [vmem:[#allocation3 + $0xb8] sm:$0xff]  ;;  %p3072_p2 = pnand %p3071_p1, %p3065_p12 }
 0x631   :  { %v2303_v37 = vld [vmem:[#allocation3 + $0xb0] sm:$0xff]  ;;  %v2306_v9 = vld [vmem:[#allocation3 + $0xc8] sm:$0xff]  ;;  %v2305_v30 = vld [vmem:[#allocation3 + $0xc0] sm:$0xff] }
 0x632   :  { %v2308_v50 = vld [vmem:[#allocation3 + $0xd8] sm:$0xff]  ;;  %v2307_v31 = vld [vmem:[#allocation3 + $0xd0] sm:$0xff]  ;;  %v2310_v11 = vld [vmem:[#allocation3 + $0xe8] sm:$0xff] }
 0x633   :  { %2435 = vmatpush1.bf16.msra.mxu0 %v2285_v56  ;;  %v2309_v39 = vld [vmem:[#allocation3 + $0xe0] sm:$0xff]  ;;  %v2312_v12 = vld [vmem:[#allocation3 + $0xf8] sm:$0xff]  ;;  %v2311_v13 = vld [vmem:[#allocation3 + $0xf0] sm:$0xff] }
 0x634   :  { %2436 = vmatprep.subr.bf16.mxu0 %v2288_v61  ;;  %v2314_v55 = vld [vmem:[#allocation3 + $0x108] sm:$0xff]  ;;  %v2313_v17 = vld [vmem:[#allocation3 + $0x100] sm:$0xff]  ;;  %v2316_v18 = vld [vmem:[#allocation3 + $0x118] sm:$0xff] }
 0x635   :  { %v2315_v20 = vld [vmem:[#allocation3 + $0x110] sm:$0xff]  ;;  %v2318_v59 = vld [vmem:[#allocation3 + $0x128] sm:$0xff]  ;;  %v2317_v34 = vld [vmem:[#allocation3 + $0x120] sm:$0xff] }
 0x636   :  { %v2320_v36 = vld [vmem:[#allocation3 + $0x138] sm:$0xff]  ;;  %v2319_v21 = vld [vmem:[#allocation3 + $0x130] sm:$0xff]  ;;  %v2322_v22 = vld [vmem:[#allocation3 + $0x148] sm:$0xff] }
 0x637   :  { %2437 = vmatpush1.bf16.msra.mxu0 %v2287_v5  ;;  %v2321_v32 = vld [vmem:[#allocation3 + $0x140] sm:$0xff]  ;;  %v2324_v8 = vld [vmem:[#allocation3 + $0x158] sm:$0xff]  ;;  %v2323_v51 = vld [vmem:[#allocation3 + $0x150] sm:$0xff] }
 0x638   :  { %2438 = vmatprep.subr.bf16.mxu0 %v2290_v6  ;;  %v2326_v52 = vld [vmem:[#allocation3 + $0x168] sm:$0xff]  ;;  %v2325_v60 = vld [vmem:[#allocation3 + $0x160] sm:$0xff]  ;;  %v2328_v23 = vld [vmem:[#allocation3 + $0x178] sm:$0xff] }
 0x639   :  { %v2327_v53 = vld [vmem:[#allocation3 + $0x170] sm:$0xff]  ;;  %v2330_v54 = vld [vmem:[#allocation3 + $0x188] sm:$0xff]  ;;  %v2329_v24 = vld [vmem:[#allocation3 + $0x180] sm:$0xff] }
 0x63a   :  { %v2332_v47 = vld [vmem:[#allocation3 + $0x198] sm:$0xff]  ;;  %v2331_v10 = vld [vmem:[#allocation3 + $0x190] sm:$0xff]  ;;  %v2334_v25 = vld [vmem:[#allocation3 + $0x1a8] sm:$0xff] }
 0x63b   :  { %2439 = vmatpush1.bf16.msra.mxu0 %v2289_v28  ;;  %v2333_v43 = vld [vmem:[#allocation3 + $0x1a0] sm:$0xff]  ;;  %v2336_v35 = vld [vmem:[#allocation3 + $0x1b8] sm:$0xff]  ;;  %v2335_v38 = vld [vmem:[#allocation3 + $0x1b0] sm:$0xff] }
 0x63c   :  { %2440 = vmatprep.subr.bf16.mxu0 %v2292_v48  ;;  %v2338_v40 = vld [vmem:[#allocation3 + $0x1c8] sm:$0xff]  ;;  %v2337_v42 = vld [vmem:[#allocation3 + $0x1c0] sm:$0xff]  ;;  %v2340_v62 = vld [vmem:[#allocation3 + $0x1d8] sm:$0xff]  ;;  %v2411_v48 = vpack.c.bf16 %v3580_v26, %v3580_v26 }
 0x63d   :  { %v2339_v0 = vld [vmem:[#allocation3 + $0x1d0] sm:$0xff]  ;;  %v2342_v56 = vld [vmem:[#allocation3 + $0x1e8] sm:$0xff]  ;;  %v2341_v61 = vld [vmem:[#allocation3 + $0x1e0] sm:$0xff] }
 0x63e   :  { %v2344_v5 = vld [vmem:[#allocation3 + $0x1f8] sm:$0xff]  ;;  %v2343_v6 = vld [vmem:[#allocation3 + $0x1f0] sm:$0xff]  ;;  %v2346_v28 = vld [vmem:[#allocation3 + $0x208] sm:$0xff] }
 0x63f   :  { %2441 = vmatpush1.bf16.msra.mxu0 %v2291_v58  ;;  %v2414_v58 = vpack.c.bf16 %v3589_v46, %v3589_v46  ;;  %v2351_v26 = vld [vmem:[#allocation3 + $0x230] sm:$0xff]  ;;  %v2353_v46 = vld [vmem:[#allocation3 + $0x240] sm:$0xff] }
 0x640   :  { %2442 = vmatprep.subr.bf16.mxu0 %v2294_v3  ;;  %v2345_v3 = vld [vmem:[#allocation3 + $0x200] sm:$0xff] }
 0x643   :  { %2443 = vmatpush1.bf16.msra.mxu0 %v2293_v63  ;;  %v2348_v63 = vld [vmem:[#allocation3 + $0x218] sm:$0xff] }
 0x644   :  { %2444 = vmatprep.subr.bf16.mxu0 %v2296_v16  ;;  %v2347_v16 = vld [vmem:[#allocation3 + $0x210] sm:$0xff] }
 0x647   :  { %2445 = vmatpush1.bf16.msra.mxu0 %v2295_v41  ;;  %v2350_v41 = vld [vmem:[#allocation3 + $0x228] sm:$0xff] }
 0x648   :  { %2446 = vmatprep.subr.bf16.mxu0 %v2298_v45  ;;  %v2349_v45 = vld [vmem:[#allocation3 + $0x220] sm:$0xff] }
 0x64b   :  { %2447 = vmatpush1.bf16.msra.mxu0 %v2297_v15  ;;  %v2352_v15 = vld [vmem:[#allocation3 + $0x238] sm:$0xff] }
 0x64c   :  { %2448 = vmatprep.subr.bf16.mxu0 %v2300_v19  ;;  %v2354_v19 = vld [vmem:[#allocation3 + $0x248] sm:$0xff] }
 0x64f   :  { %2449 = vmatpush1.bf16.msra.mxu0 %v2299_v1  ;;  %v2356_v1 = vld [vmem:[#allocation3 + $0x258] sm:$0xff] }
 0x650   :  { %2450 = vmatprep.subr.bf16.mxu0 %v2302_v7  ;;  %v2355_v7 = vld [vmem:[#allocation3 + $0x250] sm:$0xff] }
 0x653   :  { %2451 = vmatpush1.bf16.msra.mxu0 %v2301_v27  ;;  %v2358_v27 = vld [vmem:[#allocation3 + $0x268] sm:$0xff] }
 0x654   :  { %2452 = vmatprep.subr.bf16.mxu0 %v2304_v57  ;;  %v2357_v57 = vld [vmem:[#allocation3 + $0x260] sm:$0xff] }
 0x657   :  { %2453 = vmatpush1.bf16.msra.mxu0 %v2303_v37  ;;  %v2360_v37 = vld [vmem:[#allocation3 + $0x278] sm:$0xff] }
 0x658   :  { %2454 = vmatprep.subr.bf16.mxu0 %v2306_v9  ;;  %v2359_v9 = vld [vmem:[#allocation3 + $0x270] sm:$0xff] }
 0x65b   :  { %2455 = vmatpush1.bf16.msra.mxu0 %v2305_v30  ;;  %v2362_v30 = vld [vmem:[#allocation3 + $0x288] sm:$0xff] }
 0x65c   :  { %2456 = vmatprep.subr.bf16.mxu0 %v2308_v50  ;;  %v2361_v50 = vld [vmem:[#allocation3 + $0x280] sm:$0xff] }
 0x65f   :  { %2457 = vmatpush1.bf16.msra.mxu0 %v2307_v31  ;;  %v2364_v31 = vld [vmem:[#allocation3 + $0x298] sm:$0xff] }
 0x660   :  { %2458 = vmatprep.subr.bf16.mxu0 %v2310_v11  ;;  %v2363_v11 = vld [vmem:[#allocation3 + $0x290] sm:$0xff] }
 0x663   :  { %2459 = vmatpush1.bf16.msra.mxu0 %v2309_v39  ;;  %v2366_v39 = vld [vmem:[#allocation3 + $0x2a8] sm:$0xff] }
 0x664   :  { %2460 = vmatprep.subr.bf16.mxu0 %v2312_v12  ;;  %v2365_v12 = vld [vmem:[#allocation3 + $0x2a0] sm:$0xff] }
 0x667   :  { %2461 = vmatpush1.bf16.msra.mxu0 %v2311_v13  ;;  %v2368_v13 = vld [vmem:[#allocation3 + $0x2b8] sm:$0xff] }
 0x668   :  { %2471 = vmatprep.subr.bf16.mxu0 %v2314_v55  ;;  %v2367_v55 = vld [vmem:[#allocation3 + $0x2b0] sm:$0xff] }
 0x66a   :  { %2463 = vmatmul.mubr.bf16.vlgmr.msra.gmra.mrb[12].mxu0 %v2409_v33  ;;  %v2370_v33 = vld [vmem:[#allocation3 + $0x2c8] sm:$0xff] }
 0x66b   :  { %2472 = vmatpush1.bf16.msra.mxu0 %v2313_v17  ;;  %2503 = vmatprep.mubr.bf16.mxu0 %v2412_v14  ;;  %v2369_v14 = vld [vmem:[#allocation3 + $0x2c0] sm:$0xff]  ;;  %v2372_v17 = vld [vmem:[#allocation3 + $0x2d8] sm:$0xff] }
 0x66c   :  { %2473 = vmatprep.subr.bf16.mxu0 %v2316_v18  ;;  %v2371_v18 = vld [vmem:[#allocation3 + $0x2d0] sm:$0xff] }
 0x66f   :  { %2474 = vmatpush1.bf16.msra.mxu0 %v2315_v20  ;;  %v2374_v20 = vld [vmem:[#allocation3 + $0x2e8] sm:$0xff] }
 0x670   :  { %2475 = vmatprep.subr.bf16.mxu0 %v2318_v59  ;;  %v2373_v59 = vld [vmem:[#allocation3 + $0x2e0] sm:$0xff] }
 0x673   :  { %2476 = vmatpush1.bf16.msra.mxu0 %v2317_v34  ;;  %v2376_v34 = vld [vmem:[#allocation3 + $0x2f8] sm:$0xff] }
 0x674   :  { %2477 = vmatprep.subr.bf16.mxu0 %v2320_v36  ;;  %v2375_v36 = vld [vmem:[#allocation3 + $0x2f0] sm:$0xff] }
 0x677   :  { %2478 = vmatpush1.bf16.msra.mxu0 %v2319_v21  ;;  %v2378_v21 = vld [vmem:[#allocation3 + $0x308] sm:$0xff] }
 0x678   :  { %2479 = vmatprep.subr.bf16.mxu0 %v2322_v22  ;;  %v2413_v22 = vpack.c.bf16 %v3586_v44, %v3586_v44  ;;  %v2383_v44 = vld [vmem:[#allocation3 + $0x330] sm:$0xff] }
 0x67b   :  { %2480 = vmatpush1.bf16.msra.mxu0 %v2321_v32  ;;  %v2416_v32 = vpack.c.bf16 %v3595_v29, %v3595_v29  ;;  %v2385_v29 = vld [vmem:[#allocation3 + $0x340] sm:$0xff] }
 0x67c   :  { %2481 = vmatprep.subr.bf16.mxu0 %v2324_v8  ;;  %v2377_v8 = vld [vmem:[#allocation3 + $0x300] sm:$0xff] }
 0x67f   :  { %2482 = vmatpush1.bf16.msra.mxu0 %v2323_v51  ;;  %v2380_v51 = vld [vmem:[#allocation3 + $0x318] sm:$0xff] }
 0x680   :  { %2483 = vmatprep.subr.bf16.mxu0 %v2326_v52  ;;  %v2379_v52 = vld [vmem:[#allocation3 + $0x310] sm:$0xff] }
 0x683   :  { %2484 = vmatpush1.bf16.msra.mxu0 %v2325_v60  ;;  %v2382_v60 = vld [vmem:[#allocation3 + $0x328] sm:$0xff] }
 0x684   :  { %2485 = vmatprep.subr.bf16.mxu0 %v2328_v23  ;;  %v2381_v23 = vld [vmem:[#allocation3 + $0x320] sm:$0xff] }
 0x687   :  { %2486 = vmatpush1.bf16.msra.mxu0 %v2327_v53  ;;  %v2384_v53 = vld [vmem:[#allocation3 + $0x338] sm:$0xff] }
 0x688   :  { %2487 = vmatprep.subr.bf16.mxu0 %v2330_v54  ;;  %v2386_v54 = vld [vmem:[#allocation3 + $0x348] sm:$0xff] }
 0x68b   :  { %2488 = vmatpush1.bf16.msra.mxu0 %v2329_v24  ;;  %v2388_v24 = vld [vmem:[#allocation3 + $0x358] sm:$0xff] }
 0x68c   :  { %2489 = vmatprep.subr.bf16.mxu0 %v2332_v47  ;;  %v2387_v47 = vld [vmem:[#allocation3 + $0x350] sm:$0xff] }
 0x68f   :  { %2490 = vmatpush1.bf16.msra.mxu0 %v2331_v10  ;;  %v2390_v10 = vld [vmem:[#allocation3 + $0x368] sm:$0xff] }
 0x690   :  { %2491 = vmatprep.subr.bf16.mxu0 %v2334_v25  ;;  %v2389_v25 = vld [vmem:[#allocation3 + $0x360] sm:$0xff] }
 0x693   :  { %2492 = vmatpush1.bf16.msra.mxu0 %v2333_v43  ;;  %v2392_v43 = vld [vmem:[#allocation3 + $0x378] sm:$0xff] }
 0x694   :  { %2493 = vmatprep.subr.bf16.mxu0 %v2336_v35  ;;  %v2391_v35 = vld [vmem:[#allocation3 + $0x370] sm:$0xff] }
 0x697   :  { %2494 = vmatpush1.bf16.msra.mxu0 %v2335_v38  ;;  %v2394_v38 = vld [vmem:[#allocation3 + $0x388] sm:$0xff] }
 0x698   :  { %2495 = vmatprep.subr.bf16.mxu0 %v2338_v40  ;;  %v2393_v40 = vld [vmem:[#allocation3 + $0x380] sm:$0xff] }
 0x69b   :  { %2496 = vmatpush1.bf16.msra.mxu0 %v2337_v42  ;;  %v2396_v42 = vld [vmem:[#allocation3 + $0x398] sm:$0xff] }
 0x69c   :  { %2497 = vmatprep.subr.bf16.mxu0 %v2340_v62  ;;  %v2395_v62 = vld [vmem:[#allocation3 + $0x390] sm:$0xff] }
 0x69f   :  { %2498 = vmatpush1.bf16.msra.mxu0 %v2339_v0  ;;  %v2398_v0 = vld [vmem:[#allocation3 + $0x3a8] sm:$0xff] }
 0x6a0   :  { %2499 = vmatprep.subr.bf16.mxu0 %v2342_v56  ;;  %v2397_v56 = vld [vmem:[#allocation3 + $0x3a0] sm:$0xff] }
 0x6a3   :  { %2500 = vmatpush1.bf16.msra.mxu0 %v2341_v61  ;;  %v2400_v61 = vld [vmem:[#allocation3 + $0x3b8] sm:$0xff] }
 0x6a4   :  { %2501 = vmatprep.subr.bf16.mxu0 %v2344_v5  ;;  %v2399_v5 = vld [vmem:[#allocation3 + $0x3b0] sm:$0xff] }
 0x6a7   :  { %2502 = vmatpush1.bf16.msra.mxu0 %v2343_v6  ;;  %v2402_v6 = vld [vmem:[#allocation3 + $0x3c8] sm:$0xff] }
 0x6a8   :  { %2512 = vmatprep.subr.bf16.mxu0 %v2346_v28  ;;  %v2401_v28 = vld [vmem:[#allocation3 + $0x3c0] sm:$0xff] }
 0x6aa   :  { %2504 = vmatmul.mubr.bf16.vlgmr.msra.gmra.mrb[12].mxu0 %v2411_v48  ;;  %v2404_v48 = vld [vmem:[#allocation3 + $0x3d8] sm:$0xff] }
 0x6ab   :  { %2513 = vmatpush1.bf16.msra.mxu0 %v2345_v3  ;;  %2544 = vmatprep.mubr.bf16.mxu0 %v2414_v58  ;;  %v2403_v58 = vld [vmem:[#allocation3 + $0x3d0] sm:$0xff]  ;;  %v2406_v3 = vld [vmem:[#allocation3 + $0x3e8] sm:$0xff] }
 0x6ac   :  { %2514 = vmatprep.subr.bf16.mxu0 %v2348_v63  ;;  %v2405_v63 = vld [vmem:[#allocation3 + $0x3e0] sm:$0xff] }
 0x6af   :  { %2515 = vmatpush1.bf16.msra.mxu0 %v2347_v16  ;;  %v2408_v16 = vld [vmem:[#allocation3 + $0x3f8] sm:$0xff] }
 0x6b0   :  { %2516 = vmatprep.subr.bf16.mxu0 %v2350_v41  ;;  %v2407_v41 = vld [vmem:[#allocation3 + $0x3f0] sm:$0xff] }
 0x6b3   :  { %2517 = vmatpush1.bf16.msra.mxu0 %v2349_v45  ;;  %v2415_v45 = vpack.c.bf16 %v3592_v49, %v3592_v49 }
 0x6b4   :  { %2518 = vmatprep.subr.bf16.mxu0 %v2352_v15  ;;  %v2418_v15 = vld [vmem:[#allocation13 + $0x42] ss:$8 sm:$0x3] }
 0x6b7   :  { %2519 = vmatpush1.bf16.msra.mxu0 %v2351_v26  ;;  %v2423_v26 = vrot.slane %v2418_v15, %v3260_v2 }
 0x6b8   :  { %2520 = vmatprep.subr.bf16.mxu0 %v2354_v19  ;;  %v2427_v19 = vrot.slane %v2418_v15, %v3263_v4 }
 0x6bb   :  { %2521 = vmatpush1.bf16.msra.mxu0 %v2353_v46 }
 0x6bc   :  { %2522 = vmatprep.subr.bf16.mxu0 %v2356_v1 }
 0x6bf   :  { %2523 = vmatpush1.bf16.msra.mxu0 %v2355_v7 }
 0x6c0   :  { %2524 = vmatprep.subr.bf16.mxu0 %v2358_v27 }
 0x6c3   :  { %2525 = vmatpush1.bf16.msra.mxu0 %v2357_v57 }
 0x6c4   :  { %2526 = vmatprep.subr.bf16.mxu0 %v2360_v37 }
 0x6c7   :  { %2527 = vmatpush1.bf16.msra.mxu0 %v2359_v9 }
 0x6c8   :  { %2528 = vmatprep.subr.bf16.mxu0 %v2362_v30 }
 0x6cb   :  { %2529 = vmatpush1.bf16.msra.mxu0 %v2361_v50 }
 0x6cc   :  { %2530 = vmatprep.subr.bf16.mxu0 %v2364_v31 }
 0x6cf   :  { %2531 = vmatpush1.bf16.msra.mxu0 %v2363_v11 }
 0x6d0   :  { %2532 = vmatprep.subr.bf16.mxu0 %v2366_v39 }
 0x6d3   :  { %2533 = vmatpush1.bf16.msra.mxu0 %v2365_v12 }
 0x6d4   :  { %2534 = vmatprep.subr.bf16.mxu0 %v2368_v13 }
 0x6d7   :  { %2535 = vmatpush1.bf16.msra.mxu0 %v2367_v55 }
 0x6d8   :  { %2536 = vmatprep.subr.bf16.mxu0 %v2370_v33 }
 0x6db   :  { %2537 = vmatpush1.bf16.msra.mxu0 %v2369_v14 }
 0x6dc   :  { %2538 = vmatprep.subr.bf16.mxu0 %v2372_v17 }
 0x6df   :  { %2539 = vmatpush1.bf16.msra.mxu0 %v2371_v18 }
 0x6e0   :  { %2540 = vmatprep.subr.bf16.mxu0 %v2374_v20 }
 0x6e3   :  { %2541 = vmatpush1.bf16.msra.mxu0 %v2373_v59 }
 0x6e4   :  { %2542 = vmatprep.subr.bf16.mxu0 %v2376_v34 }
 0x6e7   :  { %2543 = vmatpush1.bf16.msra.mxu0 %v2375_v36 }
 0x6e8   :  { %2553 = vmatprep.subr.bf16.mxu0 %v2378_v21 }
 0x6ea   :  { %2545 = vmatmul.mubr.bf16.vlgmr.msra.gmra.mrb[12].mxu0 %v2413_v22 }
 0x6eb   :  { %2554 = vmatpush1.bf16.msra.mxu0 %v2377_v8  ;;  %2585 = vmatprep.mubr.bf16.mxu0 %v2416_v32 }
 0x6ec   :  { %2555 = vmatprep.subr.bf16.mxu0 %v2380_v51 }
 0x6ef   :  { %2556 = vmatpush1.bf16.msra.mxu0 %v2379_v52 }
 0x6f0   :  { %2557 = vmatprep.subr.bf16.mxu0 %v2382_v60 }
 0x6f3   :  { %2558 = vmatpush1.bf16.msra.mxu0 %v2381_v23 }
 0x6f4   :  { %2559 = vmatprep.subr.bf16.mxu0 %v2384_v53 }
 0x6f7   :  { %2560 = vmatpush1.bf16.msra.mxu0 %v2383_v44 }
 0x6f8   :  { %2561 = vmatprep.subr.bf16.mxu0 %v2386_v54 }
 0x6fb   :  { %2562 = vmatpush1.bf16.msra.mxu0 %v2385_v29 }
 0x6fc   :  { %2563 = vmatprep.subr.bf16.mxu0 %v2388_v24 }
 0x6ff   :  { %2564 = vmatpush1.bf16.msra.mxu0 %v2387_v47 }
 0x700   :  { %2565 = vmatprep.subr.bf16.mxu0 %v2390_v10 }
 0x703   :  { %2566 = vmatpush1.bf16.msra.mxu0 %v2389_v25 }
 0x704   :  { %2567 = vmatprep.subr.bf16.mxu0 %v2392_v43 }
 0x707   :  { %2568 = vmatpush1.bf16.msra.mxu0 %v2391_v35 }
 0x708   :  { %2569 = vmatprep.subr.bf16.mxu0 %v2394_v38 }
 0x70b   :  { %2570 = vmatpush1.bf16.msra.mxu0 %v2393_v40 }
 0x70c   :  { %2571 = vmatprep.subr.bf16.mxu0 %v2396_v42 }
 0x70f   :  { %2572 = vmatpush1.bf16.msra.mxu0 %v2395_v62 }
 0x710   :  { %2573 = vmatprep.subr.bf16.mxu0 %v2398_v0 }
 0x713   :  { %2574 = vmatpush1.bf16.msra.mxu0 %v2397_v56 }
 0x714   :  { %2575 = vmatprep.subr.bf16.mxu0 %v2400_v61 }
 0x717   :  { %2576 = vmatpush1.bf16.msra.mxu0 %v2399_v5 }
 0x718   :  { %2577 = vmatprep.subr.bf16.mxu0 %v2402_v6 }
 0x71b   :  { %2578 = vmatpush1.bf16.msra.mxu0 %v2401_v28 }
 0x71c   :  { %2579 = vmatprep.subr.bf16.mxu0 %v2404_v48 }
 0x71f   :  { %2580 = vmatpush1.bf16.msra.mxu0 %v2403_v58 }
 0x720   :  { %2581 = vmatprep.subr.bf16.mxu0 %v2406_v3 }
 0x723   :  { %2582 = vmatpush1.bf16.msra.mxu0 %v2405_v63 }
 0x724   :  { %2583 = vmatprep.subr.bf16.mxu0 %v2408_v16 }
 0x727   :  { %2584 = vmatpush1.bf16.msra.mxu0 %v2407_v41 }
 0x72a   :  { %2586 = vmatmul.mubr.bf16.vlgmr.msra.gmra.mrb[12].mxu0 %v2415_v45 }
 0x7fd   :  { %v2587_v46 = vpop.f32.mrb[12].mxu0 }
 0x7fe   :  { %v2749_v1 = vadd.f32 %v2587_v46, %v2423_v26  ;;  %v2589_v7 = vpop.f32.mrb[13].mxu0 }
 0x7ff   :  { %v2750_v27 = vadd.f32 %v2589_v7, %v2427_v19  ;;  %v2591_v57 = vpop.f32.mrb[14].mxu0 }
 0x800   :  { %2950 = vtanh.f32 %v2749_v1  ;;  %v2592_v37 = vpop.f32.mrb[15].mxu0 }
 0x801   :  { %2952 = vtanh.f32 %v2750_v27 }
 0x80a   :  { %v2951_v9 = vpop.eup %2950 }
 0x80b   :  { %v2953_v30 = vpop.eup %2952 }
 0x80c   :  { %v2598_v49 = vcombine.low %v2951_v9, %v2953_v30 }
 0x80e   :  { %2725 = vst.sshfl [vmem:[#allocation14] sm:$0x33 pattern:$0x76325410] %v2598_v49 }
 0x80f   :  { %3075 = shalt.err (!%p3072_p2)
}
 0x810   :  { %s3076_s17 = scalar_lea.hbm %s3632_s7, 64 }
 0x811   :  { %p3077_p3 = scmp.ne.s32.totalorder %s3632_s7, %s3076_s17  ;;  %p3080_p4 = scmp.lt.u32.totalorder %s3076_s17, %s3632_s7 }
 0x813   :  { %p3082_p5 = pnand %p3080_p4, %p3077_p3 }
 0x815   :  { %3085 = shalt.err (!%p3082_p5)
}
 0x816   :  { %2617 = dma.vmem_to_hbm [thread:$0]  %s2615_s11, 64, %s3632_s7, [#allocation7]  }
 0x817   :  { %3096 = dma.done.wait [#allocation7], 64  }
 0x818   :  { %3097 = vsyncadd [#allocation7], 4294967232 }
 0x819   :  { %2621 = vsyncpa [#allocation6], 1 }
 0x81a   :  { %2622 = vsyncpa [#allocation9], 1 }
 0x81b   :  { %2623 = vsyncpa [#allocation12], 1 }
 0x81c   :  { %2624 = vsyncpa [#allocation7], 1 }
 0x81d   :  { %2625 = vsyncmov [#allocation4] }
 0x820   :  { %s2626_s20 = vpop.sfrf %2625 }
 0x821   :  { %p2726_p6 = scmp.ne.s32.totalorder %s2626_s20, 0 }
 0x823   :  { %2630 = shalt.err (%p2726_p6)  }
 0x824   :  { %2632 = vsyncmov [#allocation4 + $0x1] }
 0x827   :  { %s2633_s21 = vpop.sfrf %2632 }
 0x828   :  { %p2727_p7 = scmp.ne.s32.totalorder %s2633_s21, 0 }
 0x82a   :  { %2637 = shalt.err (%p2727_p7)  }

</bundles_post_ra>
